<compile_context>
chip_gen: v5e
topology: v5e:2x2
jax: 0.10.0
libtpu: 0.0.40
codegen_flags: <defaults>
</compile_context>

<pallas_src>
import functools

import jax
import jax.numpy as jnp
from jax.experimental import pallas as pl
from jax.experimental.pallas import tpu as pltpu

EPS = 1e-5
LANES = 128


def _round_up(v, m):
    return (v + m - 1) // m * m


def _pick_tile_rows(m, target):
    """Largest multiple-of-8 divisor of m that is <= target (else m itself)."""
    if m <= target:
        return m
    best = None
    d = 8
    while d <= target:
        if m % d == 0:
            best = d
        d += 8
    return best if best is not None else m


# ---------------------------------------------------------------------------
# In-kernel helpers
# ---------------------------------------------------------------------------
def _tile_moments(vals_f32, mom_ref):
    """Write this tile's per-channel [sum; sum_of_squares] into its own (1,2,C) block."""
    s = jnp.sum(vals_f32, axis=0, keepdims=True)
    ss = jnp.sum(vals_f32 * vals_f32, axis=0, keepdims=True)
    mom_ref[0] = jnp.concatenate([s, ss], axis=0)


# ---------------------------------------------------------------------------
# Kernels
# ---------------------------------------------------------------------------
def _stats_matmul_kernel(x_ref, w_ref, mom_ref):
    # conv1 (1x1): bn1 per-tile batch statistics only (z1 is cheap to recompute in
    # pass 2, which saves a full activation write+read through HBM).
    z = jnp.dot(x_ref[...], w_ref[...], preferred_element_type=jnp.float32)
    _tile_moments(z, mom_ref)


def _make_conv12_kernel(img_w, rows, cp):
    """conv1(1x1) + folded bn1 + relu + conv2(3x3, stride=1, pad=1) + bn2 tile stats.

    One image per grid step (rows = H*W NHWC-flattened rows).  The 3x3 conv taps
    are XLU rolls of the post-bn1 activation (no halo buffer, no sublane-unaligned
    VMEM slice copies); (rows, 1) masks zero exactly the rows a circular roll
    would corrupt (image top/bottom and left/right column wrap).  The 3 kx taps
    of each ky row are packed along the lane axis -> one K=3*cp matmul per ky.
    """
    def kernel(x_ref, w1_ref, a1_ref, w2_ref, z2_ref, mom_ref):
        # conv1 (1x1) + folded bn1 (scale/shift) + relu, kept in VMEM only
        z1 = jnp.dot(x_ref[...], w1_ref[...], preferred_element_type=jnp.float32)
        h1 = jnp.maximum(z1 * a1_ref[0:1, :] + a1_ref[1:2, :], 0.0)      # f32 (rows,cp)

        # Edge masks generated in-kernel (VPU), applied in f32 before the bf16 cast.
        ridx = jax.lax.broadcasted_iota(jnp.int32, (rows, 1), 0)
        col = ridx % img_w
        ml = (col > 0).astype(jnp.float32)                # dx = -1 is in-image
        mr = (col < img_w - 1).astype(jnp.float32)        # dx = +1 is in-image
        mt = (ridx >= img_w).astype(jnp.float32)          # dy = -1 is in-image
        mb = (ridx < rows - img_w).astype(jnp.float32)    # dy = +1 is in-image

        acc = jnp.zeros((rows, cp), jnp.float32)
        for ky in range(3):
            dy = ky - 1
            if dy == 0:
                base = h1                                               # tap[r]=h1[r]
            else:
                base = pltpu.roll(h1, (-dy * img_w) % rows, 0)          # tap[r]=h1[r+dy*W]
                base = base * (mt if dy == -1 else mb)
            left = pltpu.roll(base, 1, 0) * ml                          # dx = -1 tap
            right = pltpu.roll(base, rows - 1, 0) * mr                  # dx = +1 tap
            op = jnp.concatenate([left, base, right], axis=1).astype(jnp.bfloat16)
            w_blk = w2_ref[3 * ky * cp:3 * (ky + 1) * cp, :]            # (3*cp, cp)
            acc = acc + jnp.dot(op, w_blk, preferred_element_type=jnp.float32)

        z2_ref[...] = acc.astype(z2_ref.dtype)
        _tile_moments(acc, mom_ref)

    return kernel


def _bn_relu_stats_kernel(z_ref, aff_ref, w_ref, mom_ref):
    # folded bn2 + relu + conv3 (1x1): bn3 per-tile batch statistics only
    # (z3 is recomputed in pass 4 instead of being round-tripped through HBM).
    h = jnp.maximum(z_ref[...].astype(jnp.float32) * aff_ref[0:1, :] + aff_ref[1:2, :],
                    0.0)
    z = jnp.dot(h.astype(jnp.bfloat16), w_ref[...], preferred_element_type=jnp.float32)
    _tile_moments(z, mom_ref)


def _make_final_kernel(cexp):
    def kernel(z2_ref, aff2_ref, w3_ref, aff3_ref, res_ref, y_ref):
        # recompute bn2 + relu + conv3 from z2, then folded bn3 + residual + relu.
        # Output is written UNPADDED (tm, cexp) f32 -> no host-side depad slice.
        h = jnp.maximum(z2_ref[...].astype(jnp.float32) * aff2_ref[0:1, :]
                        + aff2_ref[1:2, :], 0.0)
        z3 = jnp.dot(h.astype(jnp.bfloat16), w3_ref[...],
                     preferred_element_type=jnp.float32)[:, :cexp]
        y = z3 * aff3_ref[0:1, :cexp] + aff3_ref[1:2, :cexp] + res_ref[...]
        y_ref[...] = jnp.maximum(y, 0.0)
    return kernel


# ---------------------------------------------------------------------------
# Host-side helpers
# ---------------------------------------------------------------------------
def _fold_bn(mom, gamma_row, beta_row, count):
    """Fold batch statistics + affine params into a (2, C) [scale; shift] array."""
    mean = mom[0:1, :] / count
    var = jnp.maximum(mom[1:2, :] / count - mean * mean, 0.0)
    scale = gamma_row * jax.lax.rsqrt(var + EPS)
    shift = beta_row - mean * scale
    return jnp.concatenate([scale, shift], axis=0).astype(jnp.float32)


def _compiler_params(*block_bytes):
    # All passes write disjoint output blocks per grid step -> "parallel" grid
    # (lets v7x shard steps across its two TensorCores; no-op on v5e/v6e).
    # VMEM budget from the double-buffered working set, clamped well under the
    # v7x 64 MiB physical VMEM.
    need = 4 * sum(block_bytes) + (6 << 20)
    limit = int(min(40 << 20, max(need, 16 << 20)))
    return pltpu.CompilerParams(dimension_semantics=("parallel",),
                                vmem_limit_bytes=limit)


def _cost(flops, bytes_accessed):
    return pl.CostEstimate(flops=int(flops), transcendentals=0,
                           bytes_accessed=int(bytes_accessed))


# ---------------------------------------------------------------------------
# Wrapper
# ---------------------------------------------------------------------------
@functools.partial(jax.jit, static_argnames=("out_channels", "stride", "tile_rows"))
def bottleneck_forward(x_nhwc, params, *, out_channels, stride=1, tile_rows=1024):
    # TODO(synk): downsample is None in this configuration (inp == 4*oup, stride==1);
    #             the strided / projection shortcut branch is not implemented.
    assert stride == 1, "identity shortcut requires stride == 1"
    n, h, w, cin = x_nhwc.shape
    cexp = out_channels
    assert cin == cexp, "identity residual requires inp == 4 * oup"
    cin_p, cmid_p = params["w1"].shape
    cexp_p = params["w3"].shape[1]
    rows = h * w                                    # rows per image
    m = n * rows
    assert rows % 8 == 0, "H*W must be a multiple of 8 for the per-image conv2 block"
    tm = _pick_tile_rows(m, tile_rows)
    nt = m // tm

    f32, bf16 = jnp.float32, jnp.bfloat16

    # Lane-dense bf16 ingest slab (channel-padded); residual stays unpadded f32.
    x2d = jnp.pad(x_nhwc.reshape(m, cin).astype(f32),
                  ((0, 0), (0, cin_p - cin))).astype(bf16)
    res2d = x_nhwc.reshape(m, cin).astype(f32)

    # ---- pass 1: bn1 batch statistics of the conv1 output (per-tile partials) -------
    mom1_p = pl.pallas_call(
        _stats_matmul_kernel,
        out_shape=jax.ShapeDtypeStruct((nt, 2, cmid_p), f32),
        grid=(nt,),
        in_specs=[pl.BlockSpec((tm, cin_p), lambda i: (i, 0)),
                  pl.BlockSpec((cin_p, cmid_p), lambda i: (0, 0))],
        out_specs=pl.BlockSpec((1, 2, cmid_p), lambda i: (i, 0, 0)),
        compiler_params=_compiler_params(tm * cin_p * 2, cin_p * cmid_p * 2),
        cost_estimate=_cost(2 * m * cin_p * cmid_p, m * cin_p * 2),
    )(x2d, params["w1"])
    aff1 = _fold_bn(jnp.sum(mom1_p, axis=0), params["g1"], params["b1"], m)

    # ---- pass 2: conv1 + bn1 + relu + conv2 (3x3 via XLU rolls) + bn2 stats ----------
    # TODO(synk): for 56x56+ feature maps on v7x, strip-mine this pass into row bands
    #             with a 1-row halo to keep the per-step working set small.
    conv12 = _make_conv12_kernel(w, rows, cmid_p)
    z2, mom2_p = pl.pallas_call(
        conv12,
        out_shape=(jax.ShapeDtypeStruct((m, cmid_p), bf16),
                   jax.ShapeDtypeStruct((n, 2, cmid_p), f32)),
        grid=(n,),
        in_specs=[pl.BlockSpec((rows, cin_p), lambda i: (i, 0)),
                  pl.BlockSpec((cin_p, cmid_p), lambda i: (0, 0)),
                  pl.BlockSpec((2, cmid_p), lambda i: (0, 0)),
                  pl.BlockSpec((9 * cmid_p, cmid_p), lambda i: (0, 0))],
        out_specs=(pl.BlockSpec((rows, cmid_p), lambda i: (i, 0)),
                   pl.BlockSpec((1, 2, cmid_p), lambda i: (i, 0, 0))),
        compiler_params=_compiler_params(
            rows * cin_p * 2, rows * cmid_p * 2, 9 * cmid_p * cmid_p * 2,
            rows * cmid_p * 4 * 4),
        cost_estimate=_cost(2 * m * cmid_p * (cin_p + 9 * cmid_p),
                            m * (cin_p + cmid_p) * 2 + 9 * cmid_p * cmid_p * 2),
    )(x2d, params["w1"], aff1, params["w2"])
    aff2 = _fold_bn(jnp.sum(mom2_p, axis=0), params["g2"], params["b2"], m)

    # ---- pass 3: bn2 + relu + conv3 (1x1) -> bn3 statistics only (no z3 in HBM) ------
    mom3_p = pl.pallas_call(
        _bn_relu_stats_kernel,
        out_shape=jax.ShapeDtypeStruct((nt, 2, cexp_p), f32),
        grid=(nt,),
        in_specs=[pl.BlockSpec((tm, cmid_p), lambda i: (i, 0)),
                  pl.BlockSpec((2, cmid_p), lambda i: (0, 0)),
                  pl.BlockSpec((cmid_p, cexp_p), lambda i: (0, 0))],
        out_specs=pl.BlockSpec((1, 2, cexp_p), lambda i: (i, 0, 0)),
        compiler_params=_compiler_params(tm * cmid_p * 2, cmid_p * cexp_p * 2),
        cost_estimate=_cost(2 * m * cmid_p * cexp_p, m * cmid_p * 2),
    )(z2, aff2, params["w3"])
    aff3 = _fold_bn(jnp.sum(mom3_p, axis=0), params["g3"], params["b3"], m)

    # ---- pass 4: recompute conv3 from z2, bn3 + residual + relu -> unpadded output ---
    y = pl.pallas_call(
        _make_final_kernel(cexp),
        out_shape=jax.ShapeDtypeStruct((m, cexp), f32),
        grid=(nt,),
        in_specs=[pl.BlockSpec((tm, cmid_p), lambda i: (i, 0)),
                  pl.BlockSpec((2, cmid_p), lambda i: (0, 0)),
                  pl.BlockSpec((cmid_p, cexp_p), lambda i: (0, 0)),
                  pl.BlockSpec((2, cexp_p), lambda i: (0, 0)),
                  pl.BlockSpec((tm, cexp), lambda i: (i, 0))],
        out_specs=pl.BlockSpec((tm, cexp), lambda i: (i, 0)),
        compiler_params=_compiler_params(tm * cmid_p * 2, cmid_p * cexp_p * 2,
                                         tm * cexp * 4, tm * cexp * 4),
        cost_estimate=_cost(2 * m * cmid_p * cexp_p,
                            m * cmid_p * 2 + 2 * m * cexp * 4),
    )(z2, aff2, params["w3"], aff3, res2d)

    return y.reshape(n, h, w, cexp)


def prepare_params(w1_oihw, w2_oihw, w3_oihw, g1, b1, g2, b2, g3, b3):
    """Convert PyTorch-layout (O, I, kH, kW) weights into lane-dense matmul layout.

    Channel axes are zero-padded to multiples of 128 (bf16 weights); gammas and
    betas are padded with zeros so padded channels normalize to exactly 0.
    w2 is stored as 9 stacked (cmid_p, cmid_p) blocks ordered (ky, kx) so each
    ky row of 3 taps is one contiguous (3*cmid_p, cmid_p) matmul operand.
    """
    oup, inp = w1_oihw.shape[0], w1_oihw.shape[1]
    cexp = w3_oihw.shape[0]
    cin_p = _round_up(inp, LANES)
    cmid_p = _round_up(oup, LANES)
    cexp_p = _round_up(cexp, LANES)

    def pad2(mat, r, c):
        mat = mat.astype(jnp.float32)
        return jnp.pad(mat, ((0, r - mat.shape[0]), (0, c - mat.shape[1])))

    w1 = pad2(w1_oihw[:, :, 0, 0].T, cin_p, cmid_p).astype(jnp.bfloat16)
    taps = [pad2(w2_oihw[:, :, ky, kx].T, cmid_p, cmid_p)
            for ky in range(3) for kx in range(3)]
    w2 = jnp.concatenate(taps, axis=0).astype(jnp.bfloat16)      # (9*cmid_p, cmid_p)
    w3 = pad2(w3_oihw[:, :, 0, 0].T, cmid_p, cexp_p).astype(jnp.bfloat16)

    def row(v, cp):
        v = v.astype(jnp.float32).reshape(1, -1)
        return jnp.pad(v, ((0, 0), (0, cp - v.shape[1])))

    return dict(w1=w1, w2=w2, w3=w3,
                g1=row(g1, cmid_p), b1=row(b1, cmid_p),
                g2=row(g2, cmid_p), b2=row(b2, cmid_p),
                g3=row(g3, cexp_p), b3=row(b3, cexp_p))


# ---------------------------------------------------------------------------
# Pure-JAX reference (training-mode BN, bf16 matmul operands like the kernel)
# ---------------------------------------------------------------------------
def _ref_conv(x, w_oihw, stride, pad):
    w_hwio = jnp.transpose(w_oihw, (2, 3, 1, 0)).astype(jnp.bfloat16)
    return jax.lax.conv_general_dilated(
        x.astype(jnp.bfloat16), w_hwio, (stride, stride), [(pad, pad), (pad, pad)],
        dimension_numbers=("NHWC", "HWIO", "NHWC"),
        preferred_element_type=jnp.float32)


def _ref_bn(h, gamma, beta):
    mean = jnp.mean(h, axis=(0, 1, 2), keepdims=True)
    var = jnp.mean(jnp.square(h - mean), axis=(0, 1, 2), keepdims=True)
    return (h - mean) * jax.lax.rsqrt(var + EPS) * gamma + beta


def bottleneck_ref(x_nhwc, w1, w2, w3, g1, b1, g2, b2, g3, b3):
    h = jnp.maximum(_ref_bn(_ref_conv(x_nhwc, w1, 1, 0), g1, b1), 0.0)
    h = jnp.maximum(_ref_bn(_ref_conv(h, w2, 1, 1), g2, b2), 0.0)
    h = _ref_bn(_ref_conv(h, w3, 1, 0), g3, b3)
    return jnp.maximum(h + x_nhwc, 0.0)


# ---------------------------------------------------------------------------
if __name__ == "__main__":
    # Bottleneck(inp=32, oup=8, stride=1, downsample=None)  ->  inp == 4*oup
    N, inp, H, W = 2, 32, 16, 16
    oup = 8

    key = jax.random.PRNGKey(0)
    k = jax.random.split(key, 10)
    x_nchw = jax.random.normal(k[0], (N, inp, H, W), jnp.float32)        # PyTorch layout
    # Round the input to the bf16 grid so the kernel's bf16 ingest is lossless and the
    # f32 reference sees numerically identical inputs (including the residual add).
    x_nchw = x_nchw.astype(jnp.bfloat16).astype(jnp.float32)
    w1_oihw = 0.1 * jax.random.normal(k[1], (oup, inp, 1, 1), jnp.float32)
    w2_oihw = 0.1 * jax.random.normal(k[2], (oup, oup, 3, 3), jnp.float32)
    w3_oihw = 0.1 * jax.random.normal(k[3], (4 * oup, oup, 1, 1), jnp.float32)
    g1 = 1.0 + 0.1 * jax.random.normal(k[4], (oup,), jnp.float32)
    b1 = 0.1 * jax.random.normal(k[5], (oup,), jnp.float32)
    g2 = 1.0 + 0.1 * jax.random.normal(k[6], (oup,), jnp.float32)
    b2 = 0.1 * jax.random.normal(k[7], (oup,), jnp.float32)
    g3 = 1.0 + 0.1 * jax.random.normal(k[8], (4 * oup,), jnp.float32)
    b3 = 0.1 * jax.random.normal(k[9], (4 * oup,), jnp.float32)

    x_nhwc = jnp.transpose(x_nchw, (0, 2, 3, 1))                         # NCHW -> NHWC
    params = prepare_params(w1_oihw, w2_oihw, w3_oihw, g1, b1, g2, b2, g3, b3)

    # Small demo shapes: 256-row tiles so every row-tiled pass runs a multi-step grid
    # and exercises the per-tile BatchNorm-statistics partials + host reduction.
    out_nhwc = bottleneck_forward(x_nhwc, params, out_channels=4 * oup,
                                  stride=1, tile_rows=256)
    out_nhwc = jax.block_until_ready(out_nhwc)
    out_nchw = jnp.transpose(out_nhwc, (0, 3, 1, 2))                     # back to NCHW

    ref_nhwc = bottleneck_ref(x_nhwc, w1_oihw, w2_oihw, w3_oihw,
                              g1, b1, g2, b2, g3, b3)
    max_err = float(jnp.max(jnp.abs(out_nhwc - ref_nhwc)))
    mean_err = float(jnp.mean(jnp.abs(out_nhwc - ref_nhwc)))
    assert out_nchw.shape == (N, 4 * oup, H, W), out_nchw.shape
    # Tolerance accounts for bf16 MXU operands + bf16 storage of the conv2 output.
    assert max_err < 5e-2, f"max abs error {max_err} (mean {mean_err})"
    print("KERNEL_OK")
</pallas_src>

<mosaic_0001>
module attributes {stable_mosaic.version = 11 : i64} {
  func.func @_stats_matmul_kernel(%arg0: i32, %arg1: memref<256x128xbf16, #tpu.memory_space<vmem>>, %arg2: memref<128x128xbf16, #tpu.memory_space<vmem>>, %arg3: memref<1x2x128xf32, #tpu.memory_space<vmem>>) attributes {dimension_semantics = [#tpu.dimension_semantics<parallel>], iteration_bounds = array<i64: 2>, scalar_prefetch = 0 : i64, scratch_operands = 0 : i64, tpu.core_type = #tpu.core_type<tc>, window_params = [{transform_indices = @transform_0, window_bounds = array<i64: 256, 128>}, {pipeline_mode = #tpu.pipeline_mode<synchronous>, transform_indices = @transform_1, window_bounds = array<i64: 128, 128>}, {transform_indices = @transform_2, window_bounds = array<i64: 1, 2, 128>}]} {
    %c0 = arith.constant 0 : index
    %c0_0 = arith.constant 0 : index
    %0 = vector.load %arg1[%c0, %c0_0] : memref<256x128xbf16, #tpu.memory_space<vmem>>, vector<256x128xbf16>
    %c0_1 = arith.constant 0 : index
    %c0_2 = arith.constant 0 : index
    %1 = vector.load %arg2[%c0_1, %c0_2] : memref<128x128xbf16, #tpu.memory_space<vmem>>, vector<128x128xbf16>
    %cst = arith.constant dense<0.000000e+00> : vector<256x128xf32>
    %2 = tpu.matmul %0, %1, %cst {dimension_numbers = #tpu.dot_dimension_numbers<[1], [0], [0], [1], [0, 0, 1, 1], [], []>} : vector<256x128xbf16>, vector<128x128xbf16>, vector<256x128xf32> -> vector<256x128xf32>
    %cst_3 = arith.constant dense<0.000000e+00> : vector<128xf32>
    %3 = vector.multi_reduction <add>, %2, %cst_3 [0] : vector<256x128xf32> to vector<128xf32>
    %4 = vector.shape_cast %3 : vector<128xf32> to vector<1x128xf32>
    %5 = arith.mulf %2, %2 : vector<256x128xf32>
    %cst_4 = arith.constant dense<0.000000e+00> : vector<128xf32>
    %6 = vector.multi_reduction <add>, %5, %cst_4 [0] : vector<256x128xf32> to vector<128xf32>
    %7 = vector.shape_cast %6 : vector<128xf32> to vector<1x128xf32>
    %8 = tpu.concatenate %4, %7 in 0 : vector<1x128xf32>, vector<1x128xf32> -> vector<2x128xf32>
    %c0_5 = arith.constant 0 : index
    %c0_6 = arith.constant 0 : index
    %c0_7 = arith.constant 0 : index
    %9 = vector.load %arg3[%c0_5, %c0_6, %c0_7] : memref<1x2x128xf32, #tpu.memory_space<vmem>>, vector<1x2x128xf32>
    %10 = vector.shape_cast %9 : vector<1x2x128xf32> to vector<2x128xf32>
    %11 = vector.shape_cast %8 : vector<2x128xf32> to vector<1x2x128xf32>
    tpu.vector_store %arg3[%c0_5, %c0_6, %c0_7], %11 {strides = array<i32>} : memref<1x2x128xf32, #tpu.memory_space<vmem>>, vector<1x2x128xf32>,
    return
  }
  func.func @transform_0(%arg0: i32) -> (i32, i32) {
    %c0_i32 = arith.constant 0 : i32
    %c0_i32_0 = arith.constant 0 : i32
    return %arg0, %c0_i32 : i32, i32
  }
  func.func @transform_1(%arg0: i32) -> (i32, i32) {
    %c0_i32 = arith.constant 0 : i32
    %c0_i32_0 = arith.constant 0 : i32
    %c0_i32_1 = arith.constant 0 : i32
    return %c0_i32, %c0_i32_0 : i32, i32
  }
  func.func @transform_2(%arg0: i32) -> (i32, i32, i32) {
    %c0_i32 = arith.constant 0 : i32
    %c0_i32_0 = arith.constant 0 : i32
    %c0_i32_1 = arith.constant 0 : i32
    return %arg0, %c0_i32, %c0_i32_0 : i32, i32, i32
  }
}

module attributes {stable_mosaic.version = 11 : i64} {
  func.func @_bn_relu_stats_kernel(%arg0: i32, %arg1: memref<256x128xbf16, #tpu.memory_space<vmem>>, %arg2: memref<2x128xf32, #tpu.memory_space<vmem>>, %arg3: memref<128x128xbf16, #tpu.memory_space<vmem>>, %arg4: memref<1x2x128xf32, #tpu.memory_space<vmem>>) attributes {dimension_semantics = [#tpu.dimension_semantics<parallel>], iteration_bounds = array<i64: 2>, scalar_prefetch = 0 : i64, scratch_operands = 0 : i64, tpu.core_type = #tpu.core_type<tc>, window_params = [{transform_indices = @transform_0, window_bounds = array<i64: 256, 128>}, {pipeline_mode = #tpu.pipeline_mode<synchronous>, transform_indices = @transform_1, window_bounds = array<i64: 2, 128>}, {pipeline_mode = #tpu.pipeline_mode<synchronous>, transform_indices = @transform_2, window_bounds = array<i64: 128, 128>}, {transform_indices = @transform_3, window_bounds = array<i64: 1, 2, 128>}]} {
    %c0 = arith.constant 0 : index
    %c0_0 = arith.constant 0 : index
    %0 = vector.load %arg1[%c0, %c0_0] : memref<256x128xbf16, #tpu.memory_space<vmem>>, vector<256x128xbf16>
    %1 = arith.extf %0 : vector<256x128xbf16> to vector<256x128xf32>
    %c0_1 = arith.constant 0 : index
    %c0_2 = arith.constant 0 : index
    %2 = vector.load %arg2[%c0_1, %c0_2] : memref<2x128xf32, #tpu.memory_space<vmem>>, vector<1x128xf32>
    %3 = vector.broadcast %2 : vector<1x128xf32> to vector<256x128xf32>
    %4 = arith.mulf %1, %3 : vector<256x128xf32>
    %c1 = arith.constant 1 : index
    %c0_3 = arith.constant 0 : index
    %5 = vector.load %arg2[%c1, %c0_3] : memref<2x128xf32, #tpu.memory_space<vmem>>, vector<1x128xf32>
    %6 = vector.broadcast %5 : vector<1x128xf32> to vector<256x128xf32>
    %7 = arith.addf %4, %6 : vector<256x128xf32>
    %cst = arith.constant 0.000000e+00 : f32
    %8 = vector.broadcast %cst : f32 to vector<256x128xf32>
    %9 = arith.maximumf %7, %8 : vector<256x128xf32>
    %10 = arith.truncf %9 : vector<256x128xf32> to vector<256x128xbf16>
    %c0_4 = arith.constant 0 : index
    %c0_5 = arith.constant 0 : index
    %11 = vector.load %arg3[%c0_4, %c0_5] : memref<128x128xbf16, #tpu.memory_space<vmem>>, vector<128x128xbf16>
    %cst_6 = arith.constant dense<0.000000e+00> : vector<256x128xf32>
    %12 = tpu.matmul %10, %11, %cst_6 {dimension_numbers = #tpu.dot_dimension_numbers<[1], [0], [0], [1], [0, 0, 1, 1], [], []>} : vector<256x128xbf16>, vector<128x128xbf16>, vector<256x128xf32> -> vector<256x128xf32>
    %cst_7 = arith.constant dense<0.000000e+00> : vector<128xf32>
    %13 = vector.multi_reduction <add>, %12, %cst_7 [0] : vector<256x128xf32> to vector<128xf32>
    %14 = vector.shape_cast %13 : vector<128xf32> to vector<1x128xf32>
    %15 = arith.mulf %12, %12 : vector<256x128xf32>
    %cst_8 = arith.constant dense<0.000000e+00> : vector<128xf32>
    %16 = vector.multi_reduction <add>, %15, %cst_8 [0] : vector<256x128xf32> to vector<128xf32>
    %17 = vector.shape_cast %16 : vector<128xf32> to vector<1x128xf32>
    %18 = tpu.concatenate %14, %17 in 0 : vector<1x128xf32>, vector<1x128xf32> -> vector<2x128xf32>
    %c0_9 = arith.constant 0 : index
    %c0_10 = arith.constant 0 : index
    %c0_11 = arith.constant 0 : index
    %19 = vector.load %arg4[%c0_9, %c0_10, %c0_11] : memref<1x2x128xf32, #tpu.memory_space<vmem>>, vector<1x2x128xf32>
    %20 = vector.shape_cast %19 : vector<1x2x128xf32> to vector<2x128xf32>
    %21 = vector.shape_cast %18 : vector<2x128xf32> to vector<1x2x128xf32>
    tpu.vector_store %arg4[%c0_9, %c0_10, %c0_11], %21 {strides = array<i32>} : memref<1x2x128xf32, #tpu.memory_space<vmem>>, vector<1x2x128xf32>,
    return
  }
  func.func @transform_0(%arg0: i32) -> (i32, i32) {
    %c0_i32 = arith.constant 0 : i32
    %c0_i32_0 = arith.constant 0 : i32
    return %arg0, %c0_i32 : i32, i32
  }
  func.func @transform_1(%arg0: i32) -> (i32, i32) {
    %c0_i32 = arith.constant 0 : i32
    %c0_i32_0 = arith.constant 0 : i32
    %c0_i32_1 = arith.constant 0 : i32
    return %c0_i32, %c0_i32_0 : i32, i32
  }
  func.func @transform_2(%arg0: i32) -> (i32, i32) {
    %c0_i32 = arith.constant 0 : i32
    %c0_i32_0 = arith.constant 0 : i32
    %c0_i32_1 = arith.constant 0 : i32
    return %c0_i32, %c0_i32_0 : i32, i32
  }
  func.func @transform_3(%arg0: i32) -> (i32, i32, i32) {
    %c0_i32 = arith.constant 0 : i32
    %c0_i32_0 = arith.constant 0 : i32
    %c0_i32_1 = arith.constant 0 : i32
    return %arg0, %c0_i32, %c0_i32_0 : i32, i32, i32
  }
}

module attributes {stable_mosaic.version = 11 : i64} {
  func.func @kernel(%arg0: i32, %arg1: memref<256x128xbf16, #tpu.memory_space<vmem>>, %arg2: memref<128x128xbf16, #tpu.memory_space<vmem>>, %arg3: memref<2x128xf32, #tpu.memory_space<vmem>>, %arg4: memref<1152x128xbf16, #tpu.memory_space<vmem>>, %arg5: memref<256x128xbf16, #tpu.memory_space<vmem>>, %arg6: memref<1x2x128xf32, #tpu.memory_space<vmem>>) attributes {dimension_semantics = [#tpu.dimension_semantics<parallel>], iteration_bounds = array<i64: 2>, scalar_prefetch = 0 : i64, scratch_operands = 0 : i64, tpu.core_type = #tpu.core_type<tc>, window_params = [{transform_indices = @transform_0, window_bounds = array<i64: 256, 128>}, {pipeline_mode = #tpu.pipeline_mode<synchronous>, transform_indices = @transform_1, window_bounds = array<i64: 128, 128>}, {pipeline_mode = #tpu.pipeline_mode<synchronous>, transform_indices = @transform_2, window_bounds = array<i64: 2, 128>}, {pipeline_mode = #tpu.pipeline_mode<synchronous>, transform_indices = @transform_3, window_bounds = array<i64: 1152, 128>}, {transform_indices = @transform_4, window_bounds = array<i64: 256, 128>}, {transform_indices = @transform_5, window_bounds = array<i64: 1, 2, 128>}]} {
    %c0 = arith.constant 0 : index
    %c0_0 = arith.constant 0 : index
    %0 = vector.load %arg1[%c0, %c0_0] : memref<256x128xbf16, #tpu.memory_space<vmem>>, vector<256x128xbf16>
    %c0_1 = arith.constant 0 : index
    %c0_2 = arith.constant 0 : index
    %1 = vector.load %arg2[%c0_1, %c0_2] : memref<128x128xbf16, #tpu.memory_space<vmem>>, vector<128x128xbf16>
    %cst = arith.constant dense<0.000000e+00> : vector<256x128xf32>
    %2 = tpu.matmul %0, %1, %cst {dimension_numbers = #tpu.dot_dimension_numbers<[1], [0], [0], [1], [0, 0, 1, 1], [], []>} : vector<256x128xbf16>, vector<128x128xbf16>, vector<256x128xf32> -> vector<256x128xf32>
    %c0_3 = arith.constant 0 : index
    %c0_4 = arith.constant 0 : index
    %3 = vector.load %arg3[%c0_3, %c0_4] : memref<2x128xf32, #tpu.memory_space<vmem>>, vector<1x128xf32>
    %4 = vector.broadcast %3 : vector<1x128xf32> to vector<256x128xf32>
    %5 = arith.mulf %2, %4 : vector<256x128xf32>
    %c1 = arith.constant 1 : index
    %c0_5 = arith.constant 0 : index
    %6 = vector.load %arg3[%c1, %c0_5] : memref<2x128xf32, #tpu.memory_space<vmem>>, vector<1x128xf32>
    %7 = vector.broadcast %6 : vector<1x128xf32> to vector<256x128xf32>
    %8 = arith.addf %5, %7 : vector<256x128xf32>
    %cst_6 = arith.constant 0.000000e+00 : f32
    %9 = vector.broadcast %cst_6 : f32 to vector<256x128xf32>
    %10 = arith.maximumf %8, %9 : vector<256x128xf32>
    %11 = tpu.iota {dimensions = array<i32: 0>} : vector<256x1xi32>
    %c16_i32 = arith.constant 16 : i32
    %c0_i32 = arith.constant 0 : i32
    %12 = arith.cmpi eq, %c16_i32, %c0_i32 : i32
    %c1_i32 = arith.constant 1 : i32
    %13 = arith.select %12, %c1_i32, %c16_i32 : i32
    %14 = vector.broadcast %13 : i32 to vector<256x1xi32>
    %15 = arith.remsi %11, %14 : vector<256x1xi32>
    %c0_i32_7 = arith.constant 0 : i32
    %16 = vector.broadcast %c0_i32_7 : i32 to vector<256x1xi32>
    %17 = arith.cmpi ne, %15, %16 : vector<256x1xi32>
    %c0_i32_8 = arith.constant 0 : i32
    %18 = vector.broadcast %c0_i32_8 : i32 to vector<256x1xi32>
    %19 = arith.cmpi slt, %15, %18 : vector<256x1xi32>
    %c0_i32_9 = arith.constant 0 : i32
    %20 = arith.cmpi slt, %13, %c0_i32_9 : i32
    %21 = vector.broadcast %20 : i1 to vector<256x1xi1>
    %22 = vector.broadcast %21 : vector<256x1xi1> to vector<256x1xi1>
    %23 = arith.xori %19, %22 : vector<256x1xi1>
    %24 = arith.andi %23, %17 : vector<256x1xi1>
    %25 = vector.broadcast %13 : i32 to vector<256x1xi32>
    %26 = arith.addi %15, %25 : vector<256x1xi32>
    %27 = arith.select %24, %26, %15 : vector<256x1xi1>, vector<256x1xi32>
    %c0_i32_10 = arith.constant 0 : i32
    %28 = vector.broadcast %c0_i32_10 : i32 to vector<256x1xi32>
    %29 = arith.cmpi sgt, %27, %28 : vector<256x1xi32>
    %30 = arith.extui %29 : vector<256x1xi1> to vector<256x1xi32>
    %31 = arith.sitofp %30 : vector<256x1xi32> to vector<256x1xf32>
    %c15_i32 = arith.constant 15 : i32
    %32 = vector.broadcast %c15_i32 : i32 to vector<256x1xi32>
    %33 = arith.cmpi slt, %27, %32 : vector<256x1xi32>
    %34 = arith.extui %33 : vector<256x1xi1> to vector<256x1xi32>
    %35 = arith.sitofp %34 : vector<256x1xi32> to vector<256x1xf32>
    %c16_i32_11 = arith.constant 16 : i32
    %36 = vector.broadcast %c16_i32_11 : i32 to vector<256x1xi32>
    %37 = arith.cmpi sge, %11, %36 : vector<256x1xi32>
    %38 = arith.extui %37 : vector<256x1xi1> to vector<256x1xi32>
    %39 = arith.sitofp %38 : vector<256x1xi32> to vector<256x1xf32>
    %c240_i32 = arith.constant 240 : i32
    %40 = vector.broadcast %c240_i32 : i32 to vector<256x1xi32>
    %41 = arith.cmpi slt, %11, %40 : vector<256x1xi32>
    %42 = arith.extui %41 : vector<256x1xi1> to vector<256x1xi32>
    %43 = arith.sitofp %42 : vector<256x1xi32> to vector<256x1xf32>
    %cst_12 = arith.constant 0.000000e+00 : f32
    %44 = vector.broadcast %cst_12 : f32 to vector<256x128xf32>
    %c16_i32_13 = arith.constant 16 : i32
    %45 = tpu.dynamic_rotate %10 by %c16_i32_13 dim 0 : vector<256x128xf32>, i32 -> vector<256x128xf32>
    %46 = vector.broadcast %39 : vector<256x1xf32> to vector<256x128xf32>
    %47 = arith.mulf %45, %46 : vector<256x128xf32>
    %c1_i32_14 = arith.constant 1 : i32
    %48 = tpu.dynamic_rotate %47 by %c1_i32_14 dim 0 : vector<256x128xf32>, i32 -> vector<256x128xf32>
    %49 = vector.broadcast %31 : vector<256x1xf32> to vector<256x128xf32>
    %50 = arith.mulf %48, %49 : vector<256x128xf32>
    %c255_i32 = arith.constant 255 : i32
    %51 = tpu.dynamic_rotate %47 by %c255_i32 dim 0 : vector<256x128xf32>, i32 -> vector<256x128xf32>
    %52 = vector.broadcast %35 : vector<256x1xf32> to vector<256x128xf32>
    %53 = arith.mulf %51, %52 : vector<256x128xf32>
    %54 = tpu.concatenate %50, %47, %53 in 1 : vector<256x128xf32>, vector<256x128xf32>, vector<256x128xf32> -> vector<256x384xf32>
    %55 = arith.truncf %54 : vector<256x384xf32> to vector<256x384xbf16>
    %c0_15 = arith.constant 0 : index
    %c0_16 = arith.constant 0 : index
    %56 = vector.load %arg4[%c0_15, %c0_16] : memref<1152x128xbf16, #tpu.memory_space<vmem>>, vector<384x128xbf16>
    %cst_17 = arith.constant dense<0.000000e+00> : vector<256x128xf32>
    %57 = tpu.matmul %55, %56, %cst_17 {dimension_numbers = #tpu.dot_dimension_numbers<[1], [0], [0], [1], [0, 0, 1, 1], [], []>} : vector<256x384xbf16>, vector<384x128xbf16>, vector<256x128xf32> -> vector<256x128xf32>
    %58 = arith.addf %44, %57 : vector<256x128xf32>
    %c1_i32_18 = arith.constant 1 : i32
    %59 = tpu.dynamic_rotate %10 by %c1_i32_18 dim 0 : vector<256x128xf32>, i32 -> vector<256x128xf32>
    %60 = vector.broadcast %31 : vector<256x1xf32> to vector<256x128xf32>
    %61 = arith.mulf %59, %60 : vector<256x128xf32>
    %c255_i32_19 = arith.constant 255 : i32
    %62 = tpu.dynamic_rotate %10 by %c255_i32_19 dim 0 : vector<256x128xf32>, i32 -> vector<256x128xf32>
    %63 = vector.broadcast %35 : vector<256x1xf32> to vector<256x128xf32>
    %64 = arith.mulf %62, %63 : vector<256x128xf32>
    %65 = tpu.concatenate %61, %10, %64 in 1 : vector<256x128xf32>, vector<256x128xf32>, vector<256x128xf32> -> vector<256x384xf32>
    %66 = arith.truncf %65 : vector<256x384xf32> to vector<256x384xbf16>
    %c384 = arith.constant 384 : index
    %c0_20 = arith.constant 0 : index
    %67 = vector.load %arg4[%c384, %c0_20] : memref<1152x128xbf16, #tpu.memory_space<vmem>>, vector<384x128xbf16>
    %cst_21 = arith.constant dense<0.000000e+00> : vector<256x128xf32>
    %68 = tpu.matmul %66, %67, %cst_21 {dimension_numbers = #tpu.dot_dimension_numbers<[1], [0], [0], [1], [0, 0, 1, 1], [], []>} : vector<256x384xbf16>, vector<384x128xbf16>, vector<256x128xf32> -> vector<256x128xf32>
    %69 = arith.addf %58, %68 : vector<256x128xf32>
    %c240_i32_22 = arith.constant 240 : i32
    %70 = tpu.dynamic_rotate %10 by %c240_i32_22 dim 0 : vector<256x128xf32>, i32 -> vector<256x128xf32>
    %71 = vector.broadcast %43 : vector<256x1xf32> to vector<256x128xf32>
    %72 = arith.mulf %70, %71 : vector<256x128xf32>
    %c1_i32_23 = arith.constant 1 : i32
    %73 = tpu.dynamic_rotate %72 by %c1_i32_23 dim 0 : vector<256x128xf32>, i32 -> vector<256x128xf32>
    %74 = vector.broadcast %31 : vector<256x1xf32> to vector<256x128xf32>
    %75 = arith.mulf %73, %74 : vector<256x128xf32>
    %c255_i32_24 = arith.constant 255 : i32
    %76 = tpu.dynamic_rotate %72 by %c255_i32_24 dim 0 : vector<256x128xf32>, i32 -> vector<256x128xf32>
    %77 = vector.broadcast %35 : vector<256x1xf32> to vector<256x128xf32>
    %78 = arith.mulf %76, %77 : vector<256x128xf32>
    %79 = tpu.concatenate %75, %72, %78 in 1 : vector<256x128xf32>, vector<256x128xf32>, vector<256x128xf32> -> vector<256x384xf32>
    %80 = arith.truncf %79 : vector<256x384xf32> to vector<256x384xbf16>
    %c768 = arith.constant 768 : index
    %c0_25 = arith.constant 0 : index
    %81 = vector.load %arg4[%c768, %c0_25] : memref<1152x128xbf16, #tpu.memory_space<vmem>>, vector<384x128xbf16>
    %cst_26 = arith.constant dense<0.000000e+00> : vector<256x128xf32>
    %82 = tpu.matmul %80, %81, %cst_26 {dimension_numbers = #tpu.dot_dimension_numbers<[1], [0], [0], [1], [0, 0, 1, 1], [], []>} : vector<256x384xbf16>, vector<384x128xbf16>, vector<256x128xf32> -> vector<256x128xf32>
    %83 = arith.addf %69, %82 : vector<256x128xf32>
    %84 = arith.truncf %83 : vector<256x128xf32> to vector<256x128xbf16>
    %c0_27 = arith.constant 0 : index
    %c0_28 = arith.constant 0 : index
    %85 = vector.load %arg5[%c0_27, %c0_28] : memref<256x128xbf16, #tpu.memory_space<vmem>>, vector<256x128xbf16>
    tpu.vector_store %arg5[%c0_27, %c0_28], %84 {strides = array<i32>} : memref<256x128xbf16, #tpu.memory_space<vmem>>, vector<256x128xbf16>,
    %cst_29 = arith.constant dense<0.000000e+00> : vector<128xf32>
    %86 = vector.multi_reduction <add>, %83, %cst_29 [0] : vector<256x128xf32> to vector<128xf32>
    %87 = vector.shape_cast %86 : vector<128xf32> to vector<1x128xf32>
    %88 = arith.mulf %83, %83 : vector<256x128xf32>
    %cst_30 = arith.constant dense<0.000000e+00> : vector<128xf32>
    %89 = vector.multi_reduction <add>, %88, %cst_30 [0] : vector<256x128xf32> to vector<128xf32>
    %90 = vector.shape_cast %89 : vector<128xf32> to vector<1x128xf32>
    %91 = tpu.concatenate %87, %90 in 0 : vector<1x128xf32>, vector<1x128xf32> -> vector<2x128xf32>
    %c0_31 = arith.constant 0 : index
    %c0_32 = arith.constant 0 : index
    %c0_33 = arith.constant 0 : index
    %92 = vector.load %arg6[%c0_31, %c0_32, %c0_33] : memref<1x2x128xf32, #tpu.memory_space<vmem>>, vector<1x2x128xf32>
    %93 = vector.shape_cast %92 : vector<1x2x128xf32> to vector<2x128xf32>
    %94 = vector.shape_cast %91 : vector<2x128xf32> to vector<1x2x128xf32>
    tpu.vector_store %arg6[%c0_31, %c0_32, %c0_33], %94 {strides = array<i32>} : memref<1x2x128xf32, #tpu.memory_space<vmem>>, vector<1x2x128xf32>,
    return
  }
  func.func @transform_0(%arg0: i32) -> (i32, i32) {
    %c0_i32 = arith.constant 0 : i32
    %c0_i32_0 = arith.constant 0 : i32
    return %arg0, %c0_i32 : i32, i32
  }
  func.func @transform_1(%arg0: i32) -> (i32, i32) {
    %c0_i32 = arith.constant 0 : i32
    %c0_i32_0 = arith.constant 0 : i32
    %c0_i32_1 = arith.constant 0 : i32
    return %c0_i32, %c0_i32_0 : i32, i32
  }
  func.func @transform_2(%arg0: i32) -> (i32, i32) {
    %c0_i32 = arith.constant 0 : i32
    %c0_i32_0 = arith.constant 0 : i32
    %c0_i32_1 = arith.constant 0 : i32
    return %c0_i32, %c0_i32_0 : i32, i32
  }
  func.func @transform_3(%arg0: i32) -> (i32, i32) {
    %c0_i32 = arith.constant 0 : i32
    %c0_i32_0 = arith.constant 0 : i32
    %c0_i32_1 = arith.constant 0 : i32
    return %c0_i32, %c0_i32_0 : i32, i32
  }
  func.func @transform_4(%arg0: i32) -> (i32, i32) {
    %c0_i32 = arith.constant 0 : i32
    %c0_i32_0 = arith.constant 0 : i32
    return %arg0, %c0_i32 : i32, i32
  }
  func.func @transform_5(%arg0: i32) -> (i32, i32, i32) {
    %c0_i32 = arith.constant 0 : i32
    %c0_i32_0 = arith.constant 0 : i32
    %c0_i32_1 = arith.constant 0 : i32
    return %arg0, %c0_i32, %c0_i32_0 : i32, i32, i32
  }
}

module attributes {stable_mosaic.version = 11 : i64} {
  func.func @kernel(%arg0: i32, %arg1: memref<256x128xbf16, #tpu.memory_space<vmem>>, %arg2: memref<2x128xf32, #tpu.memory_space<vmem>>, %arg3: memref<128x128xbf16, #tpu.memory_space<vmem>>, %arg4: memref<2x128xf32, #tpu.memory_space<vmem>>, %arg5: memref<256x32xf32, #tpu.memory_space<vmem>>, %arg6: memref<256x32xf32, #tpu.memory_space<vmem>>) attributes {dimension_semantics = [#tpu.dimension_semantics<parallel>], iteration_bounds = array<i64: 2>, scalar_prefetch = 0 : i64, scratch_operands = 0 : i64, tpu.core_type = #tpu.core_type<tc>, window_params = [{transform_indices = @transform_0, window_bounds = array<i64: 256, 128>}, {pipeline_mode = #tpu.pipeline_mode<synchronous>, transform_indices = @transform_1, window_bounds = array<i64: 2, 128>}, {pipeline_mode = #tpu.pipeline_mode<synchronous>, transform_indices = @transform_2, window_bounds = array<i64: 128, 128>}, {pipeline_mode = #tpu.pipeline_mode<synchronous>, transform_indices = @transform_3, window_bounds = array<i64: 2, 128>}, {transform_indices = @transform_4, window_bounds = array<i64: 256, 32>}, {transform_indices = @transform_5, window_bounds = array<i64: 256, 32>}]} {
    %c0 = arith.constant 0 : index
    %c0_0 = arith.constant 0 : index
    %0 = vector.load %arg1[%c0, %c0_0] : memref<256x128xbf16, #tpu.memory_space<vmem>>, vector<256x128xbf16>
    %1 = arith.extf %0 : vector<256x128xbf16> to vector<256x128xf32>
    %c0_1 = arith.constant 0 : index
    %c0_2 = arith.constant 0 : index
    %2 = vector.load %arg2[%c0_1, %c0_2] : memref<2x128xf32, #tpu.memory_space<vmem>>, vector<1x128xf32>
    %3 = vector.broadcast %2 : vector<1x128xf32> to vector<256x128xf32>
    %4 = arith.mulf %1, %3 : vector<256x128xf32>
    %c1 = arith.constant 1 : index
    %c0_3 = arith.constant 0 : index
    %5 = vector.load %arg2[%c1, %c0_3] : memref<2x128xf32, #tpu.memory_space<vmem>>, vector<1x128xf32>
    %6 = vector.broadcast %5 : vector<1x128xf32> to vector<256x128xf32>
    %7 = arith.addf %4, %6 : vector<256x128xf32>
    %cst = arith.constant 0.000000e+00 : f32
    %8 = vector.broadcast %cst : f32 to vector<256x128xf32>
    %9 = arith.maximumf %7, %8 : vector<256x128xf32>
    %10 = arith.truncf %9 : vector<256x128xf32> to vector<256x128xbf16>
    %c0_4 = arith.constant 0 : index
    %c0_5 = arith.constant 0 : index
    %11 = vector.load %arg3[%c0_4, %c0_5] : memref<128x128xbf16, #tpu.memory_space<vmem>>, vector<128x128xbf16>
    %cst_6 = arith.constant dense<0.000000e+00> : vector<256x128xf32>
    %12 = tpu.matmul %10, %11, %cst_6 {dimension_numbers = #tpu.dot_dimension_numbers<[1], [0], [0], [1], [0, 0, 1, 1], [], []>} : vector<256x128xbf16>, vector<128x128xbf16>, vector<256x128xf32> -> vector<256x128xf32>
    %13 = vector.extract_strided_slice %12 {offsets = [0, 0], sizes = [256, 32], strides = [1, 1]} : vector<256x128xf32> to vector<256x32xf32>
    %c0_7 = arith.constant 0 : index
    %c0_8 = arith.constant 0 : index
    %14 = vector.load %arg4[%c0_7, %c0_8] : memref<2x128xf32, #tpu.memory_space<vmem>>, vector<1x32xf32>
    %15 = vector.broadcast %14 : vector<1x32xf32> to vector<256x32xf32>
    %16 = arith.mulf %13, %15 : vector<256x32xf32>
    %c1_9 = arith.constant 1 : index
    %c0_10 = arith.constant 0 : index
    %17 = vector.load %arg4[%c1_9, %c0_10] : memref<2x128xf32, #tpu.memory_space<vmem>>, vector<1x32xf32>
    %18 = vector.broadcast %17 : vector<1x32xf32> to vector<256x32xf32>
    %19 = arith.addf %16, %18 : vector<256x32xf32>
    %c0_11 = arith.constant 0 : index
    %c0_12 = arith.constant 0 : index
    %20 = vector.load %arg5[%c0_11, %c0_12] : memref<256x32xf32, #tpu.memory_space<vmem>>, vector<256x32xf32>
    %21 = arith.addf %19, %20 : vector<256x32xf32>
    %cst_13 = arith.constant 0.000000e+00 : f32
    %22 = vector.broadcast %cst_13 : f32 to vector<256x32xf32>
    %23 = arith.maximumf %21, %22 : vector<256x32xf32>
    %c0_14 = arith.constant 0 : index
    %c0_15 = arith.constant 0 : index
    %24 = vector.load %arg6[%c0_14, %c0_15] : memref<256x32xf32, #tpu.memory_space<vmem>>, vector<256x32xf32>
    tpu.vector_store %arg6[%c0_14, %c0_15], %23 {strides = array<i32>} : memref<256x32xf32, #tpu.memory_space<vmem>>, vector<256x32xf32>,
    return
  }
  func.func @transform_0(%arg0: i32) -> (i32, i32) {
    %c0_i32 = arith.constant 0 : i32
    %c0_i32_0 = arith.constant 0 : i32
    return %arg0, %c0_i32 : i32, i32
  }
  func.func @transform_1(%arg0: i32) -> (i32, i32) {
    %c0_i32 = arith.constant 0 : i32
    %c0_i32_0 = arith.constant 0 : i32
    %c0_i32_1 = arith.constant 0 : i32
    return %c0_i32, %c0_i32_0 : i32, i32
  }
  func.func @transform_2(%arg0: i32) -> (i32, i32) {
    %c0_i32 = arith.constant 0 : i32
    %c0_i32_0 = arith.constant 0 : i32
    %c0_i32_1 = arith.constant 0 : i32
    return %c0_i32, %c0_i32_0 : i32, i32
  }
  func.func @transform_3(%arg0: i32) -> (i32, i32) {
    %c0_i32 = arith.constant 0 : i32
    %c0_i32_0 = arith.constant 0 : i32
    %c0_i32_1 = arith.constant 0 : i32
    return %c0_i32, %c0_i32_0 : i32, i32
  }
  func.func @transform_4(%arg0: i32) -> (i32, i32) {
    %c0_i32 = arith.constant 0 : i32
    %c0_i32_0 = arith.constant 0 : i32
    return %arg0, %c0_i32 : i32, i32
  }
  func.func @transform_5(%arg0: i32) -> (i32, i32) {
    %c0_i32 = arith.constant 0 : i32
    %c0_i32_0 = arith.constant 0 : i32
    return %arg0, %c0_i32 : i32, i32
  }
}

</mosaic_0001>

<bundles_post_ra>
// kernel: bottleneck_forward.4
= control target key start
LH: loop header
LB: loop body
LE: loop exit
PB: predicated region body
PF: predicated region fallthrough
CT: control target
= control target key end

     0   :  { %s772_s9 = smov 0   ;;  %s871_s0 = inlined_call_operand.vmem [shape: bf16[512,128], index: 0, kind: input, shape index: {}]   ;;  %s872_s1 = inlined_call_operand.vmem [shape: bf16[128,128], index: 1, kind: input, shape index: {}]   ;;  %s873_s2 = inlined_call_operand.vmem [shape: f32[2,2,128], index: 2, kind: output, shape index: {}]  }
   0x1 LB: > { %s778_s10 = sadd.s32 4294967295, %s755_s9   ;;  %p591_p0 = scmp.ge.s32.totalorder %s755_s9, 1  ;;  %s755_s9 = sphi %s772_s9, %s12_s9  }
   0x2   : > { %p113_p1 = scmp.lt.s32.totalorder %s755_s9, 3 }
   0x4   : > { %p114_p2 = pnand %p591_p0, %p113_p1 }
   0x5   : > { %s592_s19 = sshll.u32 (!%p114_p2), %s778_s10, 5  ;;  %p140_p4 = scmp.lt.s32.totalorder (!%p114_p2), %s778_s10, 1 }
   0x6   : > { %117 = sbr.rel (%p114_p2) target bundleno = 291 (0x123), region = 28  ;;  %p135_p3 = scmp.lt.s32.totalorder (!%p114_p2), %s592_s19, 63 }
   0xb   : > { %v716_v0 = vld [vmem:[%s872_s1 + $0x38] sm:$0xff]  ;;  %v715_v1 = vld [vmem:[%s872_s1 + $0x30] sm:$0xff]  ;;  %v714_v2 = vld [vmem:[%s872_s1 + $0x28] sm:$0xff]  ;;  %s875_s19 = smov (!%p135_p3, %s592_s19), 63  ;;  %s877_s10 = smov (!%p140_p4, %s778_s10), 1  ;;  %vm531_vm0 = vcmask 1040384  }
   0xc   : > { %336 = vmatpush.bf16.msra.mxu0 %v716_v0  ;;  %717 = vmatpush.bf16.msra.mxu1 %v716_v0  ;;  %v713_v3 = vld [vmem:[%s872_s1 + $0x20] sm:$0xff]  ;;  %v712_v4 = vld [vmem:[%s872_s1 + $0x18] sm:$0xff]  ;;  %v711_v5 = vld [vmem:[%s872_s1 + $0x10] sm:$0xff]  ;;  %s593_s26 = sshll.u32 %s875_s19, 2  ;;  %s594_s4 = sshll.u32 %s877_s10, 1 }
   0xd   : > { %718 = vmatpush.bf16.msra.mxu2 %v716_v0  ;;  %719 = vmatpush.bf16.msra.mxu3 %v716_v0  ;;  %v710_v6 = vld [vmem:[%s872_s1 + $0x8] sm:$0xff]  ;;  %v709_v7 = vld [vmem:[%s872_s1] sm:$0xff]  ;;  %s810_s3 = scalar_lea.vmem %s871_s0, %s593_s26  ;;  %s143_s7 = scalar_lea.vmem %s873_s2, %s594_s4 }
   0xe   : > { %v693_v8 = vld [vmem:[%s810_s3] sm:$0xff]  ;;  %v694_v12 = vld [vmem:[%s810_s3 + $0x8] sm:$0xff]  ;;  %v695_v16 = vld [vmem:[%s810_s3 + $0x10] sm:$0xff] }
   0xf   : > { %v697_v9 = vld [vmem:[%s810_s3 + $0x20] sm:$0xff]  ;;  %v698_v13 = vld [vmem:[%s810_s3 + $0x28] sm:$0xff]  ;;  %v699_v17 = vld [vmem:[%s810_s3 + $0x30] sm:$0xff] }
  0x10   : > { %337 = vmatpush.bf16.msra.mxu0 %v715_v1  ;;  %720 = vmatpush.bf16.msra.mxu1 %v715_v1  ;;  %v701_v10 = vld [vmem:[%s810_s3 + $0x40] sm:$0xff]  ;;  %v702_v14 = vld [vmem:[%s810_s3 + $0x48] sm:$0xff]  ;;  %v703_v18 = vld [vmem:[%s810_s3 + $0x50] sm:$0xff] }
  0x11   : > { %721 = vmatpush.bf16.msra.mxu2 %v715_v1  ;;  %722 = vmatpush.bf16.msra.mxu3 %v715_v1  ;;  %v705_v11 = vld [vmem:[%s810_s3 + $0x60] sm:$0xff]  ;;  %v706_v15 = vld [vmem:[%s810_s3 + $0x68] sm:$0xff]  ;;  %v707_v19 = vld [vmem:[%s810_s3 + $0x70] sm:$0xff] }
  0x12   : > { %v696_v20 = vld [vmem:[%s810_s3 + $0x18] sm:$0xff] }
  0x13   : > { %v700_v21 = vld [vmem:[%s810_s3 + $0x38] sm:$0xff] }
  0x14   : > { %338 = vmatpush.bf16.msra.mxu0 %v714_v2  ;;  %723 = vmatpush.bf16.msra.mxu1 %v714_v2  ;;  %v704_v22 = vld [vmem:[%s810_s3 + $0x58] sm:$0xff] }
  0x15   : > { %724 = vmatpush.bf16.msra.mxu2 %v714_v2  ;;  %725 = vmatpush.bf16.msra.mxu3 %v714_v2  ;;  %v708_v23 = vld [vmem:[%s810_s3 + $0x78] sm:$0xff] }
  0x18   : > { %339 = vmatpush.bf16.msra.mxu0 %v713_v3  ;;  %726 = vmatpush.bf16.msra.mxu1 %v713_v3 }
  0x19   : > { %727 = vmatpush.bf16.msra.mxu2 %v713_v3  ;;  %728 = vmatpush.bf16.msra.mxu3 %v713_v3 }
  0x1c   : > { %340 = vmatpush.bf16.msra.mxu0 %v712_v4  ;;  %729 = vmatpush.bf16.msra.mxu1 %v712_v4 }
  0x1d   : > { %730 = vmatpush.bf16.msra.mxu2 %v712_v4  ;;  %731 = vmatpush.bf16.msra.mxu3 %v712_v4 }
  0x20   : > { %341 = vmatpush.bf16.msra.mxu0 %v711_v5  ;;  %732 = vmatpush.bf16.msra.mxu1 %v711_v5 }
  0x21   : > { %733 = vmatpush.bf16.msra.mxu2 %v711_v5  ;;  %734 = vmatpush.bf16.msra.mxu3 %v711_v5 }
  0x24   : > { %342 = vmatpush.bf16.msra.mxu0 %v710_v6  ;;  %735 = vmatpush.bf16.msra.mxu1 %v710_v6 }
  0x25   : > { %736 = vmatpush.bf16.msra.mxu2 %v710_v6  ;;  %737 = vmatpush.bf16.msra.mxu3 %v710_v6 }
  0x28   : > { %343 = vmatpush.bf16.msra.mxu0 %v709_v7  ;;  %738 = vmatpush.bf16.msra.mxu1 %v709_v7 }
  0x29   : > { %739 = vmatpush.bf16.msra.mxu2 %v709_v7  ;;  %740 = vmatpush.bf16.msra.mxu3 %v709_v7 }
  0x2b   : > { %344 = vmatmul.bf16.vlgmr.msra.gmra.mxu0 %v693_v8  ;;  %364 = vmatmul.bf16.vlgmr.msra.gmra.mxu1 %v697_v9 }
  0x2c   : > { %384 = vmatmul.bf16.vlgmr.msra.gmra.mxu2 %v701_v10  ;;  %404 = vmatmul.bf16.vlgmr.msra.gmra.mxu3 %v705_v11 }
  0x3b   : > { %349 = vmatmul.bf16.gmra.mxu0 %v694_v12  ;;  %369 = vmatmul.bf16.gmra.mxu1 %v698_v13 }
  0x3c   : > { %389 = vmatmul.bf16.gmra.mxu2 %v702_v14  ;;  %409 = vmatmul.bf16.gmra.mxu3 %v706_v15 }
  0x4b   : > { %354 = vmatmul.bf16.gmra.mxu0 %v695_v16  ;;  %374 = vmatmul.bf16.gmra.mxu1 %v699_v17 }
  0x4c   : > { %394 = vmatmul.bf16.gmra.mxu2 %v703_v18  ;;  %414 = vmatmul.bf16.gmra.mxu3 %v707_v19 }
  0x5b   : > { %359 = vmatmul.bf16.gmra.mxu0 %v696_v20  ;;  %379 = vmatmul.bf16.gmra.mxu1 %v700_v21 }
  0x5c   : > { %399 = vmatmul.bf16.gmra.mxu2 %v704_v22  ;;  %419 = vmatmul.bf16.gmra.mxu3 %v708_v23 }
  0xa8   : > { %v345_v24 = vpop.f32.mrf.mxu0  ;;  %v365_v25 = vpop.f32.mrf.mxu1 }
  0xa9   : > { %v462_v41 = vmul.f32 %v345_v24, %v345_v24  ;;  %v470_v3 = vmul.f32 %v365_v25, %v365_v25 }
  0xaf   : > { %v828_v29 = vpop.f32.mrf.mxu2  ;;  %v832_v35 = vpop.f32.mrf.mxu3 }
  0xb0   : > { %v347_v26 = vpop.f32.mrf.mxu0  ;;  %v367_v27 = vpop.f32.mrf.mxu1 }
  0xb1   : > { %v463_v40 = vmul.f32 %v347_v26, %v347_v26  ;;  %v425_v42 = vadd.f32 %v347_v26, %v345_v24  ;;  %v471_v7 = vmul.f32 %v367_v27, %v367_v27 }
  0xb3   : > { %v494_v45 = vadd.f32 %v463_v40, %v462_v41 }
  0xb7   : > { %v830_v32 = vpop.f32.mrf.mxu2  ;;  %v836_v39 = vpop.f32.mrf.mxu3 }
  0xb8   : > { %v350_v28 = vpop.f32.mrf.mxu0  ;;  %v370_v30 = vpop.f32.mrf.mxu1 }
  0xb9   : > { %v464_v43 = vmul.f32 %v350_v28, %v350_v28  ;;  %v426_v46 = vadd.f32 %v425_v42, %v350_v28  ;;  %v472_v11 = vmul.f32 %v370_v30, %v370_v30 }
  0xbb   : > { %v495_v49 = vadd.f32 %v494_v45, %v464_v43 }
  0xbf   : > { %v834_v36 = vpop.f32.mrf.mxu2  ;;  %v840_v56 = vpop.f32.mrf.mxu3 }
  0xc0   : > { %v352_v31 = vpop.f32.mrf.mxu0  ;;  %v372_v33 = vpop.f32.mrf.mxu1  ;;  %v480_v45 = vmul.f32 %v834_v36, %v834_v36 }
  0xc1   : > { %v465_v47 = vmul.f32 %v352_v31, %v352_v31  ;;  %v427_v50 = vadd.f32 %v426_v46, %v352_v31  ;;  %v473_v14 = vmul.f32 %v372_v33, %v372_v33 }
  0xc3   : > { %v496_v53 = vadd.f32 %v495_v49, %v465_v47 }
  0xc7   : > { %v838_v44 = vpop.f32.mrf.mxu2  ;;  %v412_v10 = vpop.f32.mrf.mxu3 }
  0xc8   : > { %v355_v34 = vpop.f32.mrf.mxu0  ;;  %v375_v38 = vpop.f32.mrf.mxu1 }
  0xc9   : > { %v466_v51 = vmul.f32 %v355_v34, %v355_v34  ;;  %v428_v54 = vadd.f32 %v427_v50, %v355_v34  ;;  %v474_v18 = vmul.f32 %v375_v38, %v375_v38 }
  0xcb   : > { %v497_v57 = vadd.f32 %v496_v53, %v466_v51 }
  0xcf   : > { %v395_v63 = vpop.f32.mrf.mxu2 }
  0xd0   : > { %v357_v37 = vpop.f32.mrf.mxu0  ;;  %v377_v52 = vpop.f32.mrf.mxu1  ;;  %v482_v51 = vmul.f32 %v395_v63, %v395_v63 }
  0xd1   : > { %v467_v55 = vmul.f32 %v357_v37, %v357_v37  ;;  %v429_v58 = vadd.f32 %v428_v54, %v357_v37  ;;  %v475_v21 = vmul.f32 %v377_v52, %v377_v52 }
  0xd3   : > { %v498_v60 = vadd.f32 %v497_v57, %v467_v55 }
  0xd7   : > { %v397_v17 = vpop.f32.mrf.mxu2 }
  0xd8   : > { %v360_v48 = vpop.f32.mrf.mxu0  ;;  %v380_v6 = vpop.f32.mrf.mxu1  ;;  %v483_v55 = vmul.f32 %v397_v17, %v397_v17 }
  0xd9   : > { %v468_v59 = vmul.f32 %v360_v48, %v360_v48  ;;  %v430_v61 = vadd.f32 %v429_v58, %v360_v48  ;;  %v476_v26 = vmul.f32 %v380_v6, %v380_v6  ;;  %v481_v48 = vmul.f32 %v838_v44, %v838_v44 }
  0xdb   : > { %v499_v0 = vadd.f32 %v498_v60, %v468_v59 }
  0xdf   : > { %v400_v41 = vpop.f32.mrf.mxu2 }
  0xe0   : > { %v362_v62 = vpop.f32.mrf.mxu0  ;;  %v382_v24 = vpop.f32.mrf.mxu1  ;;  %v484_v60 = vmul.f32 %v400_v41, %v400_v41 }
  0xe1   : > { %v431_v1 = vadd.f32 %v430_v61, %v362_v62  ;;  %v469_v2 = vmul.f32 %v362_v62, %v362_v62  ;;  %v477_v37 = vmul.f32 %v382_v24, %v382_v24 }
  0xe3   : > { %v432_v4 = vadd.f32 %v431_v1, %v365_v25  ;;  %v500_v5 = vadd.f32 %v499_v0, %v469_v2  ;;  %v486_v0 = vmul.f32 %v832_v35, %v832_v35 }
  0xe5   : > { %v433_v8 = vadd.f32 %v432_v4, %v367_v27  ;;  %v501_v9 = vadd.f32 %v500_v5, %v470_v3  ;;  %v415_v27 = vpop.f32.mrf.mxu3  ;;  %v488_v5 = vmul.f32 %v840_v56, %v840_v56 }
  0xe7   : > { %v434_v12 = vadd.f32 %v433_v8, %v370_v30  ;;  %v502_v13 = vadd.f32 %v501_v9, %v471_v7  ;;  %v478_v30 = vmul.f32 %v828_v29, %v828_v29  ;;  %v402_v57 = vpop.f32.mrf.mxu2  ;;  %v489_v8 = vmul.f32 %v412_v10, %v412_v10 }
  0xe8   : > { %v485_v62 = vmul.f32 %v402_v57, %v402_v57 }
  0xe9   : > { %v503_v15 = vadd.f32 %v502_v13, %v472_v11  ;;  %v435_v16 = vadd.f32 %v434_v12, %v372_v33  ;;  %v490_v12 = vmul.f32 %v415_v27, %v415_v27 }
  0xeb   : > { %v436_v19 = vadd.f32 %v435_v16, %v375_v38  ;;  %v504_v20 = vadd.f32 %v503_v15, %v473_v14  ;;  %v479_v38 = vmul.f32 %v830_v32, %v830_v32 }
  0xed   : > { %v437_v22 = vadd.f32 %v436_v19, %v377_v52  ;;  %v505_v23 = vadd.f32 %v504_v20, %v474_v18  ;;  %v417_v50 = vpop.f32.mrf.mxu3 }
  0xee   : > { %v491_v15 = vmul.f32 %v417_v50, %v417_v50 }
  0xef   : > { %v438_v25 = vadd.f32 %v437_v22, %v380_v6  ;;  %v506_v28 = vadd.f32 %v505_v23, %v475_v21 }
  0xf1   : > { %v507_v31 = vadd.f32 %v506_v28, %v476_v26  ;;  %v439_v34 = vadd.f32 %v438_v25, %v382_v24 }
  0xf3   : > { %v440_v33 = vadd.f32 %v439_v34, %v828_v29  ;;  %v508_v40 = vadd.f32 %v507_v31, %v477_v37 }
  0xf5   : > { %v441_v42 = vadd.f32 %v440_v33, %v830_v32  ;;  %v509_v43 = vadd.f32 %v508_v40, %v478_v30  ;;  %v420_v2 = vpop.f32.mrf.mxu3 }
  0xf6   : > { %v492_v19 = vmul.f32 %v420_v2, %v420_v2 }
  0xf7   : > { %v442_v46 = vadd.f32 %v441_v42, %v834_v36  ;;  %v510_v47 = vadd.f32 %v509_v43, %v479_v38 }
  0xf9   : > { %v511_v49 = vadd.f32 %v510_v47, %v480_v45  ;;  %v443_v29 = vadd.f32 %v442_v46, %v838_v44 }
  0xfb   : > { %v444_v52 = vadd.f32 %v443_v29, %v395_v63  ;;  %v512_v53 = vadd.f32 %v511_v49, %v481_v48  ;;  %v487_v63 = vmul.f32 %v836_v39, %v836_v39 }
  0xfd   : > { %v445_v54 = vadd.f32 %v444_v52, %v397_v17  ;;  %v513_v32 = vadd.f32 %v512_v53, %v482_v51  ;;  %v422_v17 = vpop.f32.mrf.mxu3 }
  0xfe   : > { %v493_v22 = vmul.f32 %v422_v17, %v422_v17 }
  0xff   : > { %v514_v58 = vadd.f32 %v513_v32, %v483_v55  ;;  %v446_v59 = vadd.f32 %v445_v54, %v400_v41 }
 0x101   : > { %v515_v61 = vadd.f32 %v514_v58, %v484_v60  ;;  %v447_v36 = vadd.f32 %v446_v59, %v402_v57 }
 0x103   : > { %v448_v1 = vadd.f32 %v447_v36, %v832_v35  ;;  %v516_v44 = vadd.f32 %v515_v61, %v485_v62 }
 0x105   : > { %v449_v3 = vadd.f32 %v448_v1, %v836_v39  ;;  %v517_v4 = vadd.f32 %v516_v44, %v486_v0 }
 0x107   : > { %v450_v6 = vadd.f32 %v449_v3, %v840_v56  ;;  %v518_v7 = vadd.f32 %v517_v4, %v487_v63 }
 0x109   : > { %v519_v9 = vadd.f32 %v518_v7, %v488_v5  ;;  %v451_v11 = vadd.f32 %v450_v6, %v412_v10 }
 0x10b   : > { %v452_v35 = vadd.f32 %v451_v11, %v415_v27  ;;  %v520_v13 = vadd.f32 %v519_v9, %v489_v8 }
 0x10d   : > { %v453_v14 = vadd.f32 %v452_v35, %v417_v50  ;;  %v521_v16 = vadd.f32 %v520_v13, %v490_v12 }
 0x10f   : > { %v522_v39 = vadd.f32 %v521_v16, %v491_v15  ;;  %v454_v18 = vadd.f32 %v453_v14, %v420_v2 }
 0x111   : > { %v523_v20 = vadd.f32 %v522_v39, %v492_v19  ;;  %v455_v21 = vadd.f32 %v454_v18, %v422_v17 }
 0x113   : > { %v456_v56 = vrot.slane %v455_v21, 4  ;;  %v524_v23 = vadd.f32 %v523_v20, %v493_v22 }
 0x115   : > { %v457_v24 = vadd.f32 %v456_v56, %v455_v21  ;;  %v525_v10 = vrot.slane %v524_v23, 4 }
 0x117   : > { %v458_v25 = vrot.slane %v457_v24, 2  ;;  %v526_v26 = vadd.f32 %v525_v10, %v524_v23 }
 0x119   : > { %v459_v28 = vadd.f32 %v458_v25, %v457_v24  ;;  %v527_v27 = vrot.slane %v526_v26, 2 }
 0x11b   : > { %v460_v31 = vrot.slane %v459_v28, 1  ;;  %v528_v34 = vadd.f32 %v527_v27, %v526_v26 }
 0x11d   : > { %v529_v37 = vrot.slane %v528_v34, 1  ;;  %v461_v30 = vadd.f32 %v460_v31, %v459_v28 }
 0x11f   : > { %v530_v33 = vadd.f32 %v529_v37, %v528_v34 }
 0x121   : > { %v532_v40 = vsel %vm531_vm0, %v461_v30, %v530_v33 }
 0x122   : > { %533 = vst [vmem:[%s143_s7] sm:$0x3] %v532_v40 }
 0x123 PF: > { %s12_s9 = sadd.s32 1, %s755_s9  }
 0x124   : > { %p9_p5 = scmp.ge.s32.totalorder %s12_s9, 4  }
 0x126   :  { %11 = sbr.rel (!%p9_p5) target bundleno = 1 (0x1), region = 58 }

// kernel: bottleneck_forward.6
= control target key start
LH: loop header
LB: loop body
LE: loop exit
PB: predicated region body
PF: predicated region fallthrough
CT: control target
= control target key end

     0   :  { %s857_s12 = smov 0   ;;  %s1030_s0 = inlined_call_operand.vmem [shape: bf16[512,128], index: 0, kind: input, shape index: {}]   ;;  %s1031_s1 = inlined_call_operand.vmem [shape: f32[2,128], index: 1, kind: input, shape index: {}]   ;;  %s1032_s2 = inlined_call_operand.vmem [shape: bf16[128,128], index: 2, kind: input, shape index: {}]   ;;  %s1033_s3 = inlined_call_operand.vmem [shape: f32[2,2,128], index: 3, kind: output, shape index: {}]  }
   0x1 LB: > { %s863_s13 = sadd.s32 4294967295, %s835_s12   ;;  %p670_p0 = scmp.ge.s32.totalorder %s835_s12, 1  ;;  %s835_s12 = sphi %s857_s12, %s13_s12  }
   0x2   : > { %p138_p1 = scmp.lt.s32.totalorder %s835_s12, 3 }
   0x4   : > { %p139_p2 = pnand %p670_p0, %p138_p1 }
   0x5   : > { %s671_s16 = sshll.u32 (!%p139_p2), %s863_s13, 5  ;;  %p167_p4 = scmp.lt.s32.totalorder (!%p139_p2), %s863_s13, 1 }
   0x6   : > { %142 = sbr.rel (%p139_p2) target bundleno = 291 (0x123), region = 32  ;;  %p162_p3 = scmp.lt.s32.totalorder (!%p139_p2), %s671_s16, 63 }
   0xb   : > { %v715_v0 = vld [vmem:[%s1032_s2 + $0x38] sm:$0xff]  ;;  %v714_v1 = vld [vmem:[%s1032_s2 + $0x30] sm:$0xff]  ;;  %s1035_s16 = smov (!%p162_p3, %s671_s16), 63  ;;  %v713_v2 = vld [vmem:[%s1032_s2 + $0x28] sm:$0xff]  ;;  %s1037_s13 = smov (!%p167_p4, %s863_s13), 1  ;;  %vm610_vm0 = vcmask 1040384  }
   0xc   : > { %415 = vmatpush.bf16.msra.mxu0 %v715_v0  ;;  %795 = vmatpush.bf16.msra.mxu1 %v715_v0  ;;  %s672_s19 = sshll.u32 %s1035_s16, 2  ;;  %v712_v4 = vld [vmem:[%s1032_s2 + $0x20] sm:$0xff]  ;;  %v711_v12 = vld [vmem:[%s1032_s2 + $0x18] sm:$0xff]  ;;  %v710_v20 = vld [vmem:[%s1032_s2 + $0x10] sm:$0xff]  ;;  %s673_s14 = sshll.u32 %s1037_s13, 1 }
   0xd   : > { %796 = vmatpush.bf16.msra.mxu2 %v715_v0  ;;  %797 = vmatpush.bf16.msra.mxu3 %v715_v0  ;;  %s880_s24 = scalar_lea.vmem %s1030_s0, %s672_s19  ;;  %v891_v9 = vld [vmem:[%s1031_s1] ss:$0 sm:$0xff]  ;;  %v901_v17 = vld [vmem:[%s1031_s1 + $0x1] ss:$0 sm:$0xff]  ;;  %v709_v27 = vld [vmem:[%s1032_s2 + $0x8] sm:$0xff]  ;;  %s170_s17 = scalar_lea.vmem %s1033_s3, %s673_s14 }
   0xe   : > { %v717_v3 = vld [vmem:[%s880_s24] sm:$0xff]   ;;  %v780_v32 = vld [vmem:[%s880_s24 + $0x8] sm:$0xff]  }
   0xf   : > { %v783_v5 = vld [vmem:[%s880_s24 + $0x20] sm:$0xff]   ;;  %v718_v7 = vunpack.c.l.bf16 %v717_v3  ;;  %v719_v8 = vunpack.c.h.bf16 %v717_v3  ;;  %v784_v36 = vld [vmem:[%s880_s24 + $0x28] sm:$0xff]   ;;  %v722_v42 = vunpack.c.l.bf16 %v780_v32  ;;  %v723_v45 = vunpack.c.h.bf16 %v780_v32 }
  0x10   : > { %416 = vmatpush.bf16.msra.mxu0 %v714_v1  ;;  %798 = vmatpush.bf16.msra.mxu1 %v714_v1  ;;  %v787_v6 = vld [vmem:[%s880_s24 + $0x40] sm:$0xff]   ;;  %v734_v10 = vunpack.c.l.bf16 %v783_v5  ;;  %v735_v11 = vunpack.c.h.bf16 %v783_v5  ;;  %v788_v43 = vld [vmem:[%s880_s24 + $0x48] sm:$0xff]   ;;  %v738_v46 = vunpack.c.l.bf16 %v784_v36  ;;  %v739_v47 = vunpack.c.h.bf16 %v784_v36 }
  0x11   : > { %799 = vmatpush.bf16.msra.mxu2 %v714_v1  ;;  %800 = vmatpush.bf16.msra.mxu3 %v714_v1  ;;  %v750_v13 = vunpack.c.l.bf16 %v787_v6  ;;  %v751_v14 = vunpack.c.h.bf16 %v787_v6  ;;  %v237_v15 = vmul.f32 %v891_v9, %v718_v7  ;;  %v238_v16 = vmul.f32 %v891_v9, %v719_v8  ;;  %v791_v33 = vld [vmem:[%s880_s24 + $0x60] sm:$0xff]  }
  0x12   : > { %v245_v18 = vmul.f32 %v891_v9, %v734_v10  ;;  %v246_v19 = vmul.f32 %v891_v9, %v735_v11  ;;  %v766_v37 = vunpack.c.l.bf16 %v791_v33  ;;  %v767_v38 = vunpack.c.h.bf16 %v791_v33  ;;  %v708_v39 = vld [vmem:[%s1032_s2] sm:$0xff] }
  0x13   : > { %v253_v21 = vmul.f32 %v891_v9, %v750_v13  ;;  %v254_v22 = vmul.f32 %v891_v9, %v751_v14  ;;  %v271_v23 = vadd.f32 %v901_v17, %v237_v15  ;;  %v272_v24 = vadd.f32 %v901_v17, %v238_v16  ;;  %v781_v13 = vld [vmem:[%s880_s24 + $0x10] sm:$0xff]  }
  0x14   : > { %417 = vmatpush.bf16.msra.mxu0 %v713_v2  ;;  %801 = vmatpush.bf16.msra.mxu1 %v713_v2  ;;  %v279_v25 = vadd.f32 %v901_v17, %v245_v18  ;;  %v280_v26 = vadd.f32 %v901_v17, %v246_v19  ;;  %v261_v44 = vmul.f32 %v891_v9, %v766_v37  ;;  %v754_v53 = vunpack.c.l.bf16 %v788_v43  ;;  %v785_v19 = vld [vmem:[%s880_s24 + $0x30] sm:$0xff]  }
  0x15   : > { %802 = vmatpush.bf16.msra.mxu2 %v713_v2  ;;  %803 = vmatpush.bf16.msra.mxu3 %v713_v2  ;;  %v287_v28 = vadd.f32 %v901_v17, %v253_v21  ;;  %v288_v29 = vadd.f32 %v901_v17, %v254_v22  ;;  %v303_v30 = vmax.f32 %v271_v23, 0.0  ;;  %v304_v31 = vmax.f32 %v272_v24, 0.0 }
  0x16   : > { %v311_v34 = vmax.f32 %v279_v25, 0.0  ;;  %v312_v35 = vmax.f32 %v280_v26, 0.0  ;;  %v262_v48 = vmul.f32 %v891_v9, %v767_v38  ;;  %v295_v51 = vadd.f32 %v901_v17, %v261_v44 }
  0x17   : > { %v319_v40 = vmax.f32 %v287_v28, 0.0  ;;  %v320_v41 = vmax.f32 %v288_v29, 0.0  ;;  %v335_v49 = vpack.c.bf16 %v304_v31, %v303_v30  ;;  %v755_v54 = vunpack.c.h.bf16 %v788_v43  ;;  %v793_v43 = vld [vmem:[%s880_s24 + $0x70] sm:$0xff]  }
  0x18   : > { %418 = vmatpush.bf16.msra.mxu0 %v712_v4  ;;  %804 = vmatpush.bf16.msra.mxu1 %v712_v4  ;;  %v339_v50 = vpack.c.bf16 %v312_v35, %v311_v34  ;;  %v296_v55 = vadd.f32 %v901_v17, %v262_v48  ;;  %v239_v56 = vmul.f32 %v891_v9, %v722_v42  ;;  %v327_v57 = vmax.f32 %v295_v51, 0.0 }
  0x19   : > { %805 = vmatpush.bf16.msra.mxu2 %v712_v4  ;;  %806 = vmatpush.bf16.msra.mxu3 %v712_v4  ;;  %v343_v52 = vpack.c.bf16 %v320_v41, %v319_v40  ;;  %v240_v58 = vmul.f32 %v891_v9, %v723_v45  ;;  %v247_v59 = vmul.f32 %v891_v9, %v738_v46  ;;  %v726_v25 = vunpack.c.l.bf16 %v781_v13 }
  0x1a   : > { %v248_v60 = vmul.f32 %v891_v9, %v739_v47  ;;  %v328_v61 = vmax.f32 %v296_v55, 0.0  ;;  %v255_v62 = vmul.f32 %v891_v9, %v754_v53  ;;  %v256_v63 = vmul.f32 %v891_v9, %v755_v54 }
  0x1b   : > { %v273_v1 = vadd.f32 %v901_v17, %v239_v56  ;;  %v274_v2 = vadd.f32 %v901_v17, %v240_v58  ;;  %v281_v3 = vadd.f32 %v901_v17, %v247_v59  ;;  %v727_v26 = vunpack.c.h.bf16 %v781_v13 }
  0x1c   : > { %419 = vmatpush.bf16.msra.mxu0 %v711_v12  ;;  %807 = vmatpush.bf16.msra.mxu1 %v711_v12  ;;  %v347_v0 = vpack.c.bf16 %v328_v61, %v327_v57  ;;  %v282_v4 = vadd.f32 %v901_v17, %v248_v60  ;;  %v289_v5 = vadd.f32 %v901_v17, %v255_v62  ;;  %v743_v28 = vunpack.c.h.bf16 %v785_v19  ;;  %v782_v60 = vld [vmem:[%s880_s24 + $0x18] sm:$0xff]  }
  0x1d   : > { %808 = vmatpush.bf16.msra.mxu2 %v711_v12  ;;  %809 = vmatpush.bf16.msra.mxu3 %v711_v12  ;;  %v290_v6 = vadd.f32 %v901_v17, %v256_v63  ;;  %v305_v7 = vmax.f32 %v273_v1, 0.0  ;;  %v306_v8 = vmax.f32 %v274_v2, 0.0  ;;  %v313_v10 = vmax.f32 %v281_v3, 0.0  ;;  %v792_v12 = vld [vmem:[%s880_s24 + $0x68] sm:$0xff]   ;;  %v786_v63 = vld [vmem:[%s880_s24 + $0x38] sm:$0xff]  }
  0x1e   : > { %v314_v11 = vmax.f32 %v282_v4, 0.0  ;;  %v770_v14 = vunpack.c.l.bf16 %v792_v12  ;;  %v771_v15 = vunpack.c.h.bf16 %v792_v12  ;;  %v321_v16 = vmax.f32 %v289_v5, 0.0 }
  0x1f   : > { %v322_v18 = vmax.f32 %v290_v6, 0.0  ;;  %v336_v23 = vpack.c.bf16 %v306_v8, %v305_v7  ;;  %v241_v36 = vmul.f32 %v891_v9, %v726_v25  ;;  %v242_v37 = vmul.f32 %v891_v9, %v727_v26 }
  0x20   : > { %420 = vmatpush.bf16.msra.mxu0 %v710_v20  ;;  %810 = vmatpush.bf16.msra.mxu1 %v710_v20  ;;  %v263_v21 = vmul.f32 %v891_v9, %v770_v14  ;;  %v264_v22 = vmul.f32 %v891_v9, %v771_v15  ;;  %v340_v24 = vpack.c.bf16 %v314_v11, %v313_v10  ;;  %v774_v44 = vunpack.c.l.bf16 %v793_v43  ;;  %v794_v10 = vld [vmem:[%s880_s24 + $0x78] sm:$0xff]  }
  0x21   : > { %811 = vmatpush.bf16.msra.mxu2 %v710_v20  ;;  %812 = vmatpush.bf16.msra.mxu3 %v710_v20  ;;  %v789_v20 = vld [vmem:[%s880_s24 + $0x50] sm:$0xff]   ;;  %v344_v31 = vpack.c.bf16 %v322_v18, %v321_v16  ;;  %v775_v45 = vunpack.c.h.bf16 %v793_v43  ;;  %v275_v46 = vadd.f32 %v901_v17, %v241_v36  ;;  %v276_v47 = vadd.f32 %v901_v17, %v242_v37 }
  0x22   : > { %v297_v29 = vadd.f32 %v901_v17, %v263_v21  ;;  %v298_v30 = vadd.f32 %v901_v17, %v264_v22  ;;  %v758_v32 = vunpack.c.l.bf16 %v789_v20  ;;  %v759_v33 = vunpack.c.h.bf16 %v789_v20 }
  0x23   : > { %v266_v51 = vmul.f32 %v891_v9, %v775_v45  ;;  %v307_v54 = vmax.f32 %v275_v46, 0.0  ;;  %v308_v55 = vmax.f32 %v276_v47, 0.0  ;;  %v730_v2 = vunpack.c.l.bf16 %v782_v60 }
  0x24   : > { %421 = vmatpush.bf16.msra.mxu0 %v709_v27  ;;  %813 = vmatpush.bf16.msra.mxu1 %v709_v27  ;;  %v329_v34 = vmax.f32 %v297_v29, 0.0  ;;  %v330_v35 = vmax.f32 %v298_v30, 0.0  ;;  %v257_v41 = vmul.f32 %v891_v9, %v758_v32  ;;  %v258_v42 = vmul.f32 %v891_v9, %v759_v33 }
  0x25   : > { %814 = vmatpush.bf16.msra.mxu2 %v709_v27  ;;  %815 = vmatpush.bf16.msra.mxu3 %v709_v27  ;;  %v742_v27 = vunpack.c.l.bf16 %v785_v19  ;;  %v300_v57 = vadd.f32 %v901_v17, %v266_v51  ;;  %v337_v1 = vpack.c.bf16 %v308_v55, %v307_v54  ;;  %v731_v6 = vunpack.c.h.bf16 %v782_v60 }
  0x26   : > { %v348_v40 = vpack.c.bf16 %v330_v35, %v329_v34  ;;  %v292_v53 = vadd.f32 %v901_v17, %v258_v42  ;;  %v746_v7 = vunpack.c.l.bf16 %v786_v63  ;;  %v747_v8 = vunpack.c.h.bf16 %v786_v63 }
  0x27   : > { %v249_v38 = vmul.f32 %v891_v9, %v742_v27  ;;  %v332_v4 = vmax.f32 %v300_v57, 0.0  ;;  %v243_v14 = vmul.f32 %v891_v9, %v730_v2  ;;  %v778_v16 = vunpack.c.l.bf16 %v794_v10 }
  0x28   : > { %422 = vmatpush.bf16.msra.mxu0 %v708_v39  ;;  %816 = vmatpush.bf16.msra.mxu1 %v708_v39  ;;  %v324_v62 = vmax.f32 %v292_v53, 0.0  ;;  %v779_v18 = vunpack.c.h.bf16 %v794_v10  ;;  %v244_v19 = vmul.f32 %v891_v9, %v731_v6  ;;  %v251_v20 = vmul.f32 %v891_v9, %v746_v7 }
  0x29   : > { %817 = vmatpush.bf16.msra.mxu2 %v708_v39  ;;  %818 = vmatpush.bf16.msra.mxu3 %v708_v39  ;;  %v250_v39 = vmul.f32 %v891_v9, %v743_v28  ;;  %v283_v48 = vadd.f32 %v901_v17, %v249_v38  ;;  %v252_v21 = vmul.f32 %v891_v9, %v747_v8 }
  0x2a   : > { %v268_v25 = vmul.f32 %v891_v9, %v779_v18  ;;  %v277_v26 = vadd.f32 %v901_v17, %v243_v14  ;;  %v278_v27 = vadd.f32 %v901_v17, %v244_v19  ;;  %v285_v28 = vadd.f32 %v901_v17, %v251_v20 }
  0x2b   : > { %423 = vmatmul.bf16.vlgmr.msra.gmra.mxu0 %v335_v49  ;;  %443 = vmatmul.bf16.vlgmr.msra.gmra.mxu1 %v339_v50  ;;  %v284_v49 = vadd.f32 %v901_v17, %v250_v39  ;;  %v265_v50 = vmul.f32 %v891_v9, %v774_v44  ;;  %v315_v58 = vmax.f32 %v283_v48, 0.0  ;;  %v286_v29 = vadd.f32 %v901_v17, %v252_v21 }
  0x2c   : > { %463 = vmatmul.bf16.vlgmr.msra.gmra.mxu2 %v343_v52  ;;  %483 = vmatmul.bf16.vlgmr.msra.gmra.mxu3 %v347_v0  ;;  %v291_v52 = vadd.f32 %v901_v17, %v257_v41  ;;  %v790_v0 = vld [vmem:[%s880_s24 + $0x58] sm:$0xff]   ;;  %v302_v33 = vadd.f32 %v901_v17, %v268_v25  ;;  %v309_v34 = vmax.f32 %v277_v26, 0.0  ;;  %v310_v35 = vmax.f32 %v278_v27, 0.0 }
  0x2d   : > { %v299_v56 = vadd.f32 %v901_v17, %v265_v50  ;;  %v316_v59 = vmax.f32 %v284_v49, 0.0  ;;  %v762_v12 = vunpack.c.l.bf16 %v790_v0  ;;  %v763_v13 = vunpack.c.h.bf16 %v790_v0 }
  0x2e   : > { %v323_v61 = vmax.f32 %v291_v52, 0.0  ;;  %v317_v36 = vmax.f32 %v285_v28, 0.0  ;;  %v338_v41 = vpack.c.bf16 %v310_v35, %v309_v34 }
  0x2f   : > { %v331_v3 = vmax.f32 %v299_v56, 0.0  ;;  %v341_v5 = vpack.c.bf16 %v316_v59, %v315_v58  ;;  %v259_v22 = vmul.f32 %v891_v9, %v762_v12 }
  0x30   : > { %v345_v11 = vpack.c.bf16 %v324_v62, %v323_v61 }
  0x31   : > { %v349_v15 = vpack.c.bf16 %v332_v4, %v331_v3  ;;  %v293_v30 = vadd.f32 %v901_v17, %v259_v22 }
  0x33   : > { %v325_v37 = vmax.f32 %v293_v30, 0.0 }
  0x3b   : > { %428 = vmatmul.bf16.gmra.mxu0 %v336_v23  ;;  %448 = vmatmul.bf16.gmra.mxu1 %v340_v24  ;;  %v260_v23 = vmul.f32 %v891_v9, %v763_v13  ;;  %v267_v24 = vmul.f32 %v891_v9, %v778_v16  ;;  %v318_v9 = vmax.f32 %v286_v29, 0.0 }
  0x3c   : > { %468 = vmatmul.bf16.gmra.mxu2 %v344_v31  ;;  %488 = vmatmul.bf16.gmra.mxu3 %v348_v40  ;;  %v334_v40 = vmax.f32 %v302_v33, 0.0 }
  0x3d   : > { %v294_v31 = vadd.f32 %v901_v17, %v260_v23  ;;  %v301_v32 = vadd.f32 %v901_v17, %v267_v24  ;;  %v342_v42 = vpack.c.bf16 %v318_v9, %v317_v36 }
  0x3f   : > { %v326_v38 = vmax.f32 %v294_v31, 0.0  ;;  %v333_v39 = vmax.f32 %v301_v32, 0.0 }
  0x41   : > { %v346_v43 = vpack.c.bf16 %v326_v38, %v325_v37  ;;  %v350_v44 = vpack.c.bf16 %v334_v40, %v333_v39 }
  0x4b   : > { %433 = vmatmul.bf16.gmra.mxu0 %v337_v1  ;;  %453 = vmatmul.bf16.gmra.mxu1 %v341_v5 }
  0x4c   : > { %473 = vmatmul.bf16.gmra.mxu2 %v345_v11  ;;  %493 = vmatmul.bf16.gmra.mxu3 %v349_v15 }
  0x5b   : > { %438 = vmatmul.bf16.gmra.mxu0 %v338_v41  ;;  %458 = vmatmul.bf16.gmra.mxu1 %v342_v42 }
  0x5c   : > { %478 = vmatmul.bf16.gmra.mxu2 %v346_v43  ;;  %498 = vmatmul.bf16.gmra.mxu3 %v350_v44 }
  0xa8   : > { %v424_v45 = vpop.f32.mrf.mxu0  ;;  %v444_v46 = vpop.f32.mrf.mxu1 }
  0xa9   : > { %v541_v61 = vmul.f32 %v424_v45, %v424_v45  ;;  %v549_v25 = vmul.f32 %v444_v46, %v444_v46 }
  0xaf   : > { %v987_v49 = vpop.f32.mrf.mxu2  ;;  %v991_v55 = vpop.f32.mrf.mxu3 }
  0xb0   : > { %v426_v47 = vpop.f32.mrf.mxu0  ;;  %v446_v17 = vpop.f32.mrf.mxu1 }
  0xb1   : > { %v542_v60 = vmul.f32 %v426_v47, %v426_v47  ;;  %v504_v62 = vadd.f32 %v426_v47, %v424_v45  ;;  %v550_v29 = vmul.f32 %v446_v17, %v446_v17 }
  0xb3   : > { %v573_v1 = vadd.f32 %v542_v60, %v541_v61 }
  0xb7   : > { %v989_v52 = vpop.f32.mrf.mxu2  ;;  %v995_v59 = vpop.f32.mrf.mxu3 }
  0xb8   : > { %v429_v48 = vpop.f32.mrf.mxu0  ;;  %v449_v50 = vpop.f32.mrf.mxu1 }
  0xb9   : > { %v543_v63 = vmul.f32 %v429_v48, %v429_v48  ;;  %v505_v2 = vadd.f32 %v504_v62, %v429_v48  ;;  %v551_v33 = vmul.f32 %v449_v50, %v449_v50 }
  0xbb   : > { %v574_v5 = vadd.f32 %v573_v1, %v543_v63 }
  0xbf   : > { %v993_v56 = vpop.f32.mrf.mxu2  ;;  %v999_v13 = vpop.f32.mrf.mxu3 }
  0xc0   : > { %v431_v51 = vpop.f32.mrf.mxu0  ;;  %v451_v53 = vpop.f32.mrf.mxu1  ;;  %v559_v1 = vmul.f32 %v993_v56, %v993_v56 }
  0xc1   : > { %v544_v3 = vmul.f32 %v431_v51, %v431_v51  ;;  %v506_v6 = vadd.f32 %v505_v2, %v431_v51  ;;  %v552_v36 = vmul.f32 %v451_v53, %v451_v53 }
  0xc3   : > { %v575_v10 = vadd.f32 %v574_v5, %v544_v3 }
  0xc7   : > { %v997_v0 = vpop.f32.mrf.mxu2  ;;  %v491_v32 = vpop.f32.mrf.mxu3 }
  0xc8   : > { %v434_v54 = vpop.f32.mrf.mxu0  ;;  %v454_v58 = vpop.f32.mrf.mxu1 }
  0xc9   : > { %v545_v7 = vmul.f32 %v434_v54, %v434_v54  ;;  %v507_v11 = vadd.f32 %v506_v6, %v434_v54  ;;  %v553_v39 = vmul.f32 %v454_v58, %v454_v58 }
  0xcb   : > { %v576_v14 = vadd.f32 %v575_v10, %v545_v7 }
  0xcf   : > { %v474_v21 = vpop.f32.mrf.mxu2 }
  0xd0   : > { %v436_v57 = vpop.f32.mrf.mxu0  ;;  %v456_v8 = vpop.f32.mrf.mxu1  ;;  %v561_v7 = vmul.f32 %v474_v21, %v474_v21 }
  0xd1   : > { %v546_v12 = vmul.f32 %v436_v57, %v436_v57  ;;  %v508_v15 = vadd.f32 %v507_v11, %v436_v57  ;;  %v554_v42 = vmul.f32 %v456_v8, %v456_v8 }
  0xd3   : > { %v577_v18 = vadd.f32 %v576_v14, %v546_v12 }
  0xd7   : > { %v476_v38 = vpop.f32.mrf.mxu2 }
  0xd8   : > { %v439_v4 = vpop.f32.mrf.mxu0  ;;  %v459_v28 = vpop.f32.mrf.mxu1  ;;  %v562_v12 = vmul.f32 %v476_v38, %v476_v38 }
  0xd9   : > { %v547_v16 = vmul.f32 %v439_v4, %v439_v4  ;;  %v509_v19 = vadd.f32 %v508_v15, %v439_v4  ;;  %v555_v47 = vmul.f32 %v459_v28, %v459_v28  ;;  %v560_v4 = vmul.f32 %v997_v0, %v997_v0 }
  0xdb   : > { %v578_v22 = vadd.f32 %v577_v18, %v547_v16 }
  0xdf   : > { %v479_v61 = vpop.f32.mrf.mxu2 }
  0xe0   : > { %v441_v20 = vpop.f32.mrf.mxu0  ;;  %v461_v45 = vpop.f32.mrf.mxu1  ;;  %v563_v18 = vmul.f32 %v479_v61, %v479_v61 }
  0xe1   : > { %v510_v23 = vadd.f32 %v509_v19, %v441_v20  ;;  %v548_v24 = vmul.f32 %v441_v20, %v441_v20  ;;  %v556_v57 = vmul.f32 %v461_v45, %v461_v45 }
  0xe3   : > { %v511_v26 = vadd.f32 %v510_v23, %v444_v46  ;;  %v579_v27 = vadd.f32 %v578_v22, %v548_v24  ;;  %v565_v22 = vmul.f32 %v991_v55, %v991_v55 }
  0xe5   : > { %v512_v30 = vadd.f32 %v511_v26, %v446_v17  ;;  %v580_v31 = vadd.f32 %v579_v27, %v549_v25  ;;  %v494_v17 = vpop.f32.mrf.mxu3  ;;  %v567_v27 = vmul.f32 %v999_v13, %v999_v13 }
  0xe7   : > { %v513_v34 = vadd.f32 %v512_v30, %v449_v50  ;;  %v581_v35 = vadd.f32 %v580_v31, %v550_v29  ;;  %v557_v50 = vmul.f32 %v987_v49, %v987_v49  ;;  %v481_v14 = vpop.f32.mrf.mxu2  ;;  %v568_v30 = vmul.f32 %v491_v32, %v491_v32 }
  0xe8   : > { %v564_v20 = vmul.f32 %v481_v14, %v481_v14 }
  0xe9   : > { %v582_v9 = vadd.f32 %v581_v35, %v551_v33  ;;  %v514_v37 = vadd.f32 %v513_v34, %v451_v53  ;;  %v569_v34 = vmul.f32 %v494_v17, %v494_v17 }
  0xeb   : > { %v515_v40 = vadd.f32 %v514_v37, %v454_v58  ;;  %v583_v41 = vadd.f32 %v582_v9, %v552_v36  ;;  %v558_v58 = vmul.f32 %v989_v52, %v989_v52 }
  0xed   : > { %v516_v43 = vadd.f32 %v515_v40, %v456_v8  ;;  %v584_v44 = vadd.f32 %v583_v41, %v553_v39  ;;  %v496_v6 = vpop.f32.mrf.mxu3 }
  0xee   : > { %v570_v9 = vmul.f32 %v496_v6, %v496_v6 }
  0xef   : > { %v517_v46 = vadd.f32 %v516_v43, %v459_v28  ;;  %v585_v48 = vadd.f32 %v584_v44, %v554_v42 }
  0xf1   : > { %v586_v51 = vadd.f32 %v585_v48, %v555_v47  ;;  %v518_v54 = vadd.f32 %v517_v46, %v461_v45 }
  0xf3   : > { %v519_v53 = vadd.f32 %v518_v54, %v987_v49  ;;  %v587_v60 = vadd.f32 %v586_v51, %v556_v57 }
  0xf5   : > { %v520_v62 = vadd.f32 %v519_v53, %v989_v52  ;;  %v588_v63 = vadd.f32 %v587_v60, %v557_v50  ;;  %v499_v24 = vpop.f32.mrf.mxu3 }
  0xf6   : > { %v571_v40 = vmul.f32 %v499_v24, %v499_v24 }
  0xf7   : > { %v521_v2 = vadd.f32 %v520_v62, %v993_v56  ;;  %v589_v3 = vadd.f32 %v588_v63, %v558_v58 }
  0xf9   : > { %v590_v5 = vadd.f32 %v589_v3, %v559_v1  ;;  %v522_v49 = vadd.f32 %v521_v2, %v997_v0 }
  0xfb   : > { %v523_v8 = vadd.f32 %v522_v49, %v474_v21  ;;  %v591_v10 = vadd.f32 %v590_v5, %v560_v4  ;;  %v566_v21 = vmul.f32 %v995_v59, %v995_v59 }
  0xfd   : > { %v524_v11 = vadd.f32 %v523_v8, %v476_v38  ;;  %v592_v52 = vadd.f32 %v591_v10, %v561_v7  ;;  %v501_v38 = vpop.f32.mrf.mxu3 }
  0xfe   : > { %v572_v43 = vmul.f32 %v501_v38, %v501_v38 }
  0xff   : > { %v593_v15 = vadd.f32 %v592_v52, %v562_v12  ;;  %v525_v16 = vadd.f32 %v524_v11, %v479_v61 }
 0x101   : > { %v594_v19 = vadd.f32 %v593_v15, %v563_v18  ;;  %v526_v56 = vadd.f32 %v525_v16, %v481_v14 }
 0x103   : > { %v527_v23 = vadd.f32 %v526_v56, %v991_v55  ;;  %v595_v0 = vadd.f32 %v594_v19, %v564_v20 }
 0x105   : > { %v528_v25 = vadd.f32 %v527_v23, %v995_v59  ;;  %v596_v26 = vadd.f32 %v595_v0, %v565_v22 }
 0x107   : > { %v529_v28 = vadd.f32 %v528_v25, %v999_v13  ;;  %v597_v29 = vadd.f32 %v596_v26, %v566_v21 }
 0x109   : > { %v598_v31 = vadd.f32 %v597_v29, %v567_v27  ;;  %v530_v33 = vadd.f32 %v529_v28, %v491_v32 }
 0x10b   : > { %v531_v55 = vadd.f32 %v530_v33, %v494_v17  ;;  %v599_v35 = vadd.f32 %v598_v31, %v568_v30 }
 0x10d   : > { %v532_v36 = vadd.f32 %v531_v55, %v496_v6  ;;  %v600_v37 = vadd.f32 %v599_v35, %v569_v34 }
 0x10f   : > { %v601_v59 = vadd.f32 %v600_v37, %v570_v9  ;;  %v533_v39 = vadd.f32 %v532_v36, %v499_v24 }
 0x111   : > { %v602_v41 = vadd.f32 %v601_v59, %v571_v40  ;;  %v534_v42 = vadd.f32 %v533_v39, %v501_v38 }
 0x113   : > { %v535_v13 = vrot.slane %v534_v42, 4  ;;  %v603_v44 = vadd.f32 %v602_v41, %v572_v43 }
 0x115   : > { %v536_v45 = vadd.f32 %v535_v13, %v534_v42  ;;  %v604_v32 = vrot.slane %v603_v44, 4 }
 0x117   : > { %v537_v46 = vrot.slane %v536_v45, 2  ;;  %v605_v47 = vadd.f32 %v604_v32, %v603_v44 }
 0x119   : > { %v538_v48 = vadd.f32 %v537_v46, %v536_v45  ;;  %v606_v17 = vrot.slane %v605_v47, 2 }
 0x11b   : > { %v539_v51 = vrot.slane %v538_v48, 1  ;;  %v607_v54 = vadd.f32 %v606_v17, %v605_v47 }
 0x11d   : > { %v608_v57 = vrot.slane %v607_v54, 1  ;;  %v540_v50 = vadd.f32 %v539_v51, %v538_v48 }
 0x11f   : > { %v609_v53 = vadd.f32 %v608_v57, %v607_v54 }
 0x121   : > { %v611_v60 = vsel %vm610_vm0, %v540_v50, %v609_v53 }
 0x122   : > { %612 = vst [vmem:[%s170_s17] sm:$0x3] %v611_v60 }
 0x123 PF: > { %s13_s12 = sadd.s32 1, %s835_s12  }
 0x124   : > { %p10_p5 = scmp.ge.s32.totalorder %s13_s12, 4  }
 0x126   :  { %12 = sbr.rel (!%p10_p5) target bundleno = 1 (0x1), region = 62 }

// kernel: bottleneck_forward.7
= control target key start
LH: loop header
LB: loop body
LE: loop exit
PB: predicated region body
PF: predicated region fallthrough
CT: control target
= control target key end

     0   :  { %10 = vsyncpa [#allocation3], 0  ;;  %s1553_s0 = inlined_call_operand.vmem [shape: bf16[512,128], index: 0, kind: input, shape index: {}]   ;;  %s1554_s1 = inlined_call_operand.vmem [shape: f32[2,128], index: 1, kind: input, shape index: {}]   ;;  %s1555_s2 = inlined_call_operand.vmem [shape: bf16[128,128], index: 2, kind: input, shape index: {}]   ;;  %s1556_s3 = inlined_call_operand.vmem [shape: f32[2,128], index: 3, kind: input, shape index: {}]   ;;  %s1557_s4 = inlined_call_operand.vmem [shape: f32[512,32], index: 4, kind: input, shape index: {}]   ;;  %s1558_s5 = inlined_call_operand.hbm [shape: f32[512,32], index: 5, kind: output, shape index: {}]  }
   0x1   :  { %12 = vsyncpa [#allocation3 + $0x1], 0  ;;  %s1167_s18 = smov 0   ;;  %s1169_s19 = smov 0  }
   0x2   :  { %s1171_s20 = smov 0   ;;  %s1173_s21 = smov 0  }
   0x3 LB: > { %s1188_s22 = sadd.s32 4294967295, %s1133_s21   ;;  %s868_s23 = sadd.s32 4294967294, %s1133_s21   ;;  %s1133_s21 = sphi %s1173_s21, %s1564_s21   ;;  %s1129_s20 = sphi %s1171_s20, %s1563_s20   ;;  %s1125_s19 = sphi %s1169_s19, %s1562_s19   ;;  %s1121_s18 = sphi %s1167_s18, %s1561_s18  }
   0x4   : > { %s1192_s24 = sadd.s32 1, %s1133_s21   ;;  %s140_s25 = sadd.s32 1, %s1129_s20 }
   0x5   : > { %s137_s26 = ssub.s32 %s1133_s21, %s1192_s24  ;;  %p150_p0 = scmp.ne.s32.totalorder %s1129_s20, %s1125_s19 }
   0x6   : > { %p138_p1 = scmp.eq.s32.totalorder %s137_s26, 0  ;;  %p151_p2 = scmp.eq.s32.totalorder %s1188_s22, 1 }
   0x7   : > { %p156_p3 = scmp.ne.s32.totalorder %s1125_s19, %s1121_s18  ;;  %p157_p4 = scmp.eq.s32.totalorder %s868_s23, 1 }
   0x8   : > { %s1203_s27 = scalar_select %p138_p1, %s1129_s20, %s140_s25  }
   0x9   : > { %p1205_p5 = por %p151_p2, %p150_p0  ;;  %p1209_p6 = por %p157_p4, %p156_p3 }
   0xa   : > { %p871_p7 = scmp.ge.s32.totalorder %s1133_s21, 1  ;;  %p202_p8 = scmp.lt.s32.totalorder %s1133_s21, 3 }
   0xc   : > { %p203_p9 = pnand %p871_p7, %p202_p8 }
   0xd   : > { %s873_s7 = sshll.u32 (!%p203_p9), %s1188_s22, 5  ;;  %s232_s8 = sand.u32 (!%p203_p9), 1, %s1125_s19  }
   0xe   : > { %206 = sbr.rel (%p203_p9) target bundleno = 253 (0xfd), region = 40  ;;  %p236_p10 = scmp.lt.s32.totalorder (!%p203_p9), %s873_s7, 63 }
  0x13   : > { %v921_v0 = vld [vmem:[%s1555_s2 + $0x38] sm:$0xff]  ;;  %v920_v1 = vld [vmem:[%s1555_s2 + $0x30] sm:$0xff]  ;;  %s1566_s7 = smov (!%p236_p10, %s873_s7), 63  ;;  %v919_v2 = vld [vmem:[%s1555_s2 + $0x28] sm:$0xff]  ;;  %vm745_vm0 = vcmask 261120  }
  0x14   : > { %492 = vmatpush.bf16.msra.mxu0 %v921_v0  ;;  %1002 = vmatpush.bf16.msra.mxu1 %v921_v0  ;;  %s874_s10 = sshll.u32 %s1566_s7, 2  ;;  %v918_v5 = vld [vmem:[%s1555_s2 + $0x20] sm:$0xff]  ;;  %v917_v15 = vld [vmem:[%s1555_s2 + $0x18] sm:$0xff]  ;;  %v916_v25 = vld [vmem:[%s1555_s2 + $0x10] sm:$0xff] }
  0x15   : > { %1003 = vmatpush.bf16.msra.mxu2 %v921_v0  ;;  %1004 = vmatpush.bf16.msra.mxu3 %v921_v0  ;;  %s1231_s15 = scalar_lea.vmem %s1553_s0, %s874_s10  ;;  %v1243_v10 = vld [vmem:[%s1554_s1] ss:$0 sm:$0xff]  ;;  %v1253_v20 = vld [vmem:[%s1554_s1 + $0x1] ss:$0 sm:$0xff]  ;;  %v915_v34 = vld [vmem:[%s1555_s2 + $0x8] sm:$0xff]  ;;  %s922_s10 = sshll.u32 %s1188_s22, 8 }
  0x16   : > { %v924_v3 = vld [vmem:[%s1231_s15] sm:$0xff]   ;;  %v987_v43 = vld [vmem:[%s1231_s15 + $0x8] sm:$0xff]   ;;  %s790_s13 = scalar_lea.hbm %s1558_s5, %s922_s10 }
  0x17   : > { %v990_v4 = vld [vmem:[%s1231_s15 + $0x20] sm:$0xff]   ;;  %v925_v8 = vunpack.c.l.bf16 %v924_v3  ;;  %v926_v9 = vunpack.c.h.bf16 %v924_v3  ;;  %v991_v47 = vld [vmem:[%s1231_s15 + $0x28] sm:$0xff]   ;;  %v929_v52 = vunpack.c.l.bf16 %v987_v43  ;;  %v930_v53 = vunpack.c.h.bf16 %v987_v43  ;;  %s793_s14 = sshll.u32 %s790_s13, 4  ;;  %s794_s14 = int_to_ptr.hbm [resolvable:$true] %s793_s14 }
  0x18   : > { %493 = vmatpush.bf16.msra.mxu0 %v920_v1  ;;  %1005 = vmatpush.bf16.msra.mxu1 %v920_v1  ;;  %v994_v6 = vld [vmem:[%s1231_s15 + $0x40] sm:$0xff]   ;;  %v941_v11 = vunpack.c.l.bf16 %v990_v4  ;;  %v942_v12 = vunpack.c.h.bf16 %v990_v4  ;;  %v995_v48 = vld [vmem:[%s1231_s15 + $0x48] sm:$0xff]   ;;  %v945_v55 = vunpack.c.l.bf16 %v991_v47  ;;  %v946_v56 = vunpack.c.h.bf16 %v991_v47  ;;  %s1085_s16 = sshra.s32 %s794_s14, 4  ;;  %s1086_s16 = int_to_ptr.hbm [resolvable:$true] %s1085_s16 }
  0x19   : > { %1006 = vmatpush.bf16.msra.mxu2 %v920_v1  ;;  %1007 = vmatpush.bf16.msra.mxu3 %v920_v1  ;;  %v998_v7 = vld [vmem:[%s1231_s15 + $0x60] sm:$0xff]   ;;  %v957_v13 = vunpack.c.l.bf16 %v994_v6  ;;  %v958_v14 = vunpack.c.h.bf16 %v994_v6  ;;  %v314_v18 = vmul.f32 %v1243_v10, %v925_v8  ;;  %v315_v19 = vmul.f32 %v1243_v10, %v926_v9  ;;  %v999_v49 = vld [vmem:[%s1231_s15 + $0x68] sm:$0xff]   ;;  %s1087_s17 = scalar_lea.hbm %s1086_s16, 256  ;;  %p1092_p0 = scmp.lt.s32.totalorder %s1086_s16, %s1558_s5 }
  0x1a   : > { %v973_v16 = vunpack.c.l.bf16 %v998_v7  ;;  %v974_v17 = vunpack.c.h.bf16 %v998_v7  ;;  %v322_v21 = vmul.f32 %v1243_v10, %v941_v11  ;;  %v323_v22 = vmul.f32 %v1243_v10, %v942_v12  ;;  %v914_v44 = vld [vmem:[%s1555_s2] sm:$0xff]  ;;  %p1088_p11 = scmp.ne.s32.totalorder %s1086_s16, %s1087_s17 }
  0x1b   : > { %v330_v23 = vmul.f32 %v1243_v10, %v957_v13  ;;  %v331_v24 = vmul.f32 %v1243_v10, %v958_v14  ;;  %v348_v28 = vadd.f32 %v1253_v20, %v314_v18  ;;  %v349_v29 = vadd.f32 %v1253_v20, %v315_v19  ;;  %v988_v19 = vld [vmem:[%s1231_s15 + $0x10] sm:$0xff]  }
  0x1c   : > { %494 = vmatpush.bf16.msra.mxu0 %v919_v2  ;;  %1008 = vmatpush.bf16.msra.mxu1 %v919_v2  ;;  %v338_v26 = vmul.f32 %v1243_v10, %v973_v16  ;;  %v339_v27 = vmul.f32 %v1243_v10, %v974_v17  ;;  %v356_v30 = vadd.f32 %v1253_v20, %v322_v21  ;;  %v961_v57 = vunpack.c.l.bf16 %v995_v48  ;;  %v992_v21 = vld [vmem:[%s1231_s15 + $0x30] sm:$0xff]   ;;  %p1089_p12 = pnand %p1088_p11, %p1205_p5 }
  0x1d   : > { %1009 = vmatpush.bf16.msra.mxu2 %v919_v2  ;;  %1010 = vmatpush.bf16.msra.mxu3 %v919_v2  ;;  %v357_v31 = vadd.f32 %v1253_v20, %v323_v22  ;;  %v364_v32 = vadd.f32 %v1253_v20, %v330_v23  ;;  %v365_v33 = vadd.f32 %v1253_v20, %v331_v24  ;;  %v380_v37 = vmax.f32 %v348_v28, 0.0 }
  0x1e   : > { %v372_v35 = vadd.f32 %v1253_v20, %v338_v26  ;;  %v373_v36 = vadd.f32 %v1253_v20, %v339_v27  ;;  %v381_v38 = vmax.f32 %v349_v29, 0.0  ;;  %v388_v39 = vmax.f32 %v356_v30, 0.0  ;;  %v996_v26 = vld [vmem:[%s1231_s15 + $0x50] sm:$0xff]   ;;  %p1090_p13 = pneg %p1089_p12 }
  0x1f   : > { %v389_v40 = vmax.f32 %v357_v31, 0.0  ;;  %v396_v41 = vmax.f32 %v364_v32, 0.0  ;;  %v397_v42 = vmax.f32 %v365_v33, 0.0  ;;  %v962_v59 = vunpack.c.h.bf16 %v995_v48  ;;  %v1000_v27 = vld [vmem:[%s1231_s15 + $0x70] sm:$0xff]  }
  0x20   : > { %495 = vmatpush.bf16.msra.mxu0 %v918_v5  ;;  %1011 = vmatpush.bf16.msra.mxu1 %v918_v5  ;;  %v404_v45 = vmax.f32 %v372_v35, 0.0  ;;  %v405_v46 = vmax.f32 %v373_v36, 0.0  ;;  %v412_v50 = vpack.c.bf16 %v381_v38, %v380_v37  ;;  %v977_v60 = vunpack.c.l.bf16 %v999_v49 }
  0x21   : > { %1012 = vmatpush.bf16.msra.mxu2 %v918_v5  ;;  %1013 = vmatpush.bf16.msra.mxu3 %v918_v5  ;;  %v416_v51 = vpack.c.bf16 %v389_v40, %v388_v39  ;;  %v420_v54 = vpack.c.bf16 %v397_v42, %v396_v41  ;;  %v978_v61 = vunpack.c.h.bf16 %v999_v49  ;;  %v316_v62 = vmul.f32 %v1243_v10, %v929_v52 }
  0x22   : > { %v424_v58 = vpack.c.bf16 %v405_v46, %v404_v45  ;;  %v317_v63 = vmul.f32 %v1243_v10, %v930_v53  ;;  %v324_v0 = vmul.f32 %v1243_v10, %v945_v55  ;;  %v325_v1 = vmul.f32 %v1243_v10, %v946_v56 }
  0x23   : > { %v332_v2 = vmul.f32 %v1243_v10, %v961_v57  ;;  %v333_v3 = vmul.f32 %v1243_v10, %v962_v59  ;;  %v340_v4 = vmul.f32 %v1243_v10, %v977_v60  ;;  %v341_v5 = vmul.f32 %v1243_v10, %v978_v61 }
  0x24   : > { %496 = vmatpush.bf16.msra.mxu0 %v917_v15  ;;  %1014 = vmatpush.bf16.msra.mxu1 %v917_v15  ;;  %v350_v6 = vadd.f32 %v1253_v20, %v316_v62  ;;  %v351_v7 = vadd.f32 %v1253_v20, %v317_v63  ;;  %v358_v8 = vadd.f32 %v1253_v20, %v324_v0  ;;  %v933_v28 = vunpack.c.l.bf16 %v988_v19  ;;  %v989_v62 = vld [vmem:[%s1231_s15 + $0x18] sm:$0xff]  }
  0x25   : > { %1015 = vmatpush.bf16.msra.mxu2 %v917_v15  ;;  %1016 = vmatpush.bf16.msra.mxu3 %v917_v15  ;;  %v359_v9 = vadd.f32 %v1253_v20, %v325_v1  ;;  %v366_v11 = vadd.f32 %v1253_v20, %v332_v2  ;;  %v367_v12 = vadd.f32 %v1253_v20, %v333_v3  ;;  %v934_v29 = vunpack.c.h.bf16 %v988_v19  ;;  %v993_v1 = vld [vmem:[%s1231_s15 + $0x38] sm:$0xff]  }
  0x26   : > { %v374_v13 = vadd.f32 %v1253_v20, %v340_v4  ;;  %v375_v14 = vadd.f32 %v1253_v20, %v341_v5  ;;  %v382_v15 = vmax.f32 %v350_v6, 0.0  ;;  %v383_v16 = vmax.f32 %v351_v7, 0.0  ;;  %v997_v2 = vld [vmem:[%s1231_s15 + $0x58] sm:$0xff]  }
  0x27   : > { %v390_v17 = vmax.f32 %v358_v8, 0.0  ;;  %v391_v18 = vmax.f32 %v359_v9, 0.0  ;;  %v398_v22 = vmax.f32 %v366_v11, 0.0  ;;  %v399_v23 = vmax.f32 %v367_v12, 0.0  ;;  %v1001_v3 = vld [vmem:[%s1231_s15 + $0x78] sm:$0xff]   ;;  %s876_s15 = sshll.u32 %s1566_s7, 3 }
  0x28   : > { %497 = vmatpush.bf16.msra.mxu0 %v916_v25  ;;  %1017 = vmatpush.bf16.msra.mxu1 %v916_v25  ;;  %v406_v24 = vmax.f32 %v374_v13, 0.0  ;;  %v949_v30 = vunpack.c.l.bf16 %v992_v21  ;;  %v950_v31 = vunpack.c.h.bf16 %v992_v21  ;;  %v413_v32 = vpack.c.bf16 %v383_v16, %v382_v15  ;;  %s1347_s26 = scalar_lea.vmem %s1557_s4, %s876_s15  ;;  %s872_s7 = sshll.u32 %s232_s8, 8 }
  0x29   : > { %1018 = vmatpush.bf16.msra.mxu2 %v916_v25  ;;  %1019 = vmatpush.bf16.msra.mxu3 %v916_v25  ;;  %v407_v25 = vmax.f32 %v375_v14, 0.0  ;;  %v417_v33 = vpack.c.bf16 %v391_v18, %v390_v17  ;;  %v966_v35 = vunpack.c.h.bf16 %v996_v26  ;;  %v421_v36 = vpack.c.bf16 %v399_v23, %v398_v22  ;;  %s1365_s9 = scalar_lea.vmem [#allocation2], %s872_s7  ;;  %s779_s15 = scalar_lea.sflag [#allocation3], %s232_s8 }
  0x2a   : > { %v981_v38 = vunpack.c.l.bf16 %v1000_v27  ;;  %v982_v39 = vunpack.c.h.bf16 %v1000_v27  ;;  %v318_v40 = vmul.f32 %v1243_v10, %v933_v28  ;;  %v319_v41 = vmul.f32 %v1243_v10, %v934_v29  ;;  %s791_s22 = sshll.u32 %s1365_s9, 4  ;;  %s792_s22 = int_to_ptr.vmem [resolvable:$true] %s791_s22 }
  0x2b   : > { %v425_v37 = vpack.c.bf16 %v407_v25, %v406_v24  ;;  %v326_v42 = vmul.f32 %v1243_v10, %v949_v30  ;;  %v327_v43 = vmul.f32 %v1243_v10, %v950_v31  ;;  %v335_v45 = vmul.f32 %v1243_v10, %v966_v35 }
  0x2c   : > { %498 = vmatpush.bf16.msra.mxu0 %v915_v34  ;;  %1020 = vmatpush.bf16.msra.mxu1 %v915_v34  ;;  %v342_v46 = vmul.f32 %v1243_v10, %v981_v38  ;;  %v343_v47 = vmul.f32 %v1243_v10, %v982_v39  ;;  %v352_v48 = vadd.f32 %v1253_v20, %v318_v40  ;;  %v937_v6 = vunpack.c.l.bf16 %v989_v62 }
  0x2d   : > { %1021 = vmatpush.bf16.msra.mxu2 %v915_v34  ;;  %1022 = vmatpush.bf16.msra.mxu3 %v915_v34  ;;  %v965_v34 = vunpack.c.l.bf16 %v996_v26  ;;  %v353_v49 = vadd.f32 %v1253_v20, %v319_v41  ;;  %v369_v53 = vadd.f32 %v1253_v20, %v335_v45  ;;  %v938_v7 = vunpack.c.h.bf16 %v989_v62  ;;  %v1352_v45 = vld [vmem:[%s1556_s3 + $0x1] ss:$0 sm:$0xff] }
  0x2e   : > { %v377_v55 = vadd.f32 %v1253_v20, %v343_v47  ;;  %v384_v56 = vmax.f32 %v352_v48, 0.0  ;;  %v953_v9 = vunpack.c.l.bf16 %v993_v1  ;;  %v954_v11 = vunpack.c.h.bf16 %v993_v1  ;;  %v673_v1 = vld [vmem:[%s1347_s26 + $0xc0] sm:$0xff] }
  0x2f   : > { %v385_v57 = vmax.f32 %v353_v49, 0.0  ;;  %v401_v61 = vmax.f32 %v369_v53, 0.0  ;;  %v969_v12 = vunpack.c.l.bf16 %v997_v2  ;;  %v970_v14 = vunpack.c.h.bf16 %v997_v2 }
  0x30   : > { %499 = vmatpush.bf16.msra.mxu0 %v914_v44  ;;  %1023 = vmatpush.bf16.msra.mxu1 %v914_v44  ;;  %v409_v0 = vmax.f32 %v377_v55, 0.0  ;;  %v985_v15 = vunpack.c.l.bf16 %v1001_v3  ;;  %v986_v16 = vunpack.c.h.bf16 %v1001_v3  ;;  %v320_v17 = vmul.f32 %v1243_v10, %v937_v6  ;;  %v650_v6 = vld [vmem:[%s1347_s26 + $0x8] sm:$0xff] }
  0x31   : > { %1024 = vmatpush.bf16.msra.mxu2 %v914_v44  ;;  %1025 = vmatpush.bf16.msra.mxu3 %v914_v44  ;;  %v334_v44 = vmul.f32 %v1243_v10, %v965_v34  ;;  %v414_v4 = vpack.c.bf16 %v385_v57, %v384_v56  ;;  %v321_v18 = vmul.f32 %v1243_v10, %v938_v7  ;;  %v658_v7 = vld [vmem:[%s1347_s26 + $0x48] sm:$0xff] }
  0x32   : > { %v328_v19 = vmul.f32 %v1243_v10, %v953_v9  ;;  %v329_v21 = vmul.f32 %v1243_v10, %v954_v11  ;;  %v336_v22 = vmul.f32 %v1243_v10, %v969_v12  ;;  %v337_v23 = vmul.f32 %v1243_v10, %v970_v14 }
  0x33   : > { %500 = vmatmul.bf16.vlgmr.msra.gmra.mxu0 %v412_v50  ;;  %520 = vmatmul.bf16.vlgmr.msra.gmra.mxu1 %v416_v51  ;;  %v360_v50 = vadd.f32 %v1253_v20, %v326_v42  ;;  %v361_v51 = vadd.f32 %v1253_v20, %v327_v43  ;;  %v368_v52 = vadd.f32 %v1253_v20, %v334_v44 }
  0x34   : > { %540 = vmatmul.bf16.vlgmr.msra.gmra.mxu2 %v420_v54  ;;  %560 = vmatmul.bf16.vlgmr.msra.gmra.mxu3 %v424_v58  ;;  %v376_v54 = vadd.f32 %v1253_v20, %v342_v46  ;;  %v344_v24 = vmul.f32 %v1243_v10, %v985_v15  ;;  %v345_v25 = vmul.f32 %v1243_v10, %v986_v16 }
  0x35   : > { %v392_v58 = vmax.f32 %v360_v50, 0.0  ;;  %v393_v59 = vmax.f32 %v361_v51, 0.0  ;;  %v400_v60 = vmax.f32 %v368_v52, 0.0  ;;  %v354_v26 = vadd.f32 %v1253_v20, %v320_v17  ;;  %v649_v50 = vld [vmem:[%s1347_s26] sm:$0xff] }
  0x36   : > { %v408_v63 = vmax.f32 %v376_v54, 0.0  ;;  %v355_v27 = vadd.f32 %v1253_v20, %v321_v18  ;;  %v362_v28 = vadd.f32 %v1253_v20, %v328_v19  ;;  %v363_v29 = vadd.f32 %v1253_v20, %v329_v21  ;;  %v657_v51 = vld [vmem:[%s1347_s26 + $0x40] sm:$0xff] }
  0x37   : > { %v418_v5 = vpack.c.bf16 %v393_v59, %v392_v58  ;;  %v422_v8 = vpack.c.bf16 %v401_v61, %v400_v60  ;;  %v370_v30 = vadd.f32 %v1253_v20, %v336_v22  ;;  %v371_v31 = vadd.f32 %v1253_v20, %v337_v23 }
  0x38   : > { %v426_v13 = vpack.c.bf16 %v409_v0, %v408_v63  ;;  %v386_v34 = vmax.f32 %v354_v26, 0.0  ;;  %v387_v35 = vmax.f32 %v355_v27, 0.0  ;;  %v394_v10 = vmax.f32 %v362_v28, 0.0  ;;  %v665_v0 = vld [vmem:[%s1347_s26 + $0x80] sm:$0xff]  ;;  %v666_v26 = vld [vmem:[%s1347_s26 + $0x88] sm:$0xff] }
  0x39   : > { %v403_v38 = vmax.f32 %v371_v31, 0.0  ;;  %v674_v27 = vld [vmem:[%s1347_s26 + $0xc8] sm:$0xff] }
  0x3a   : > { %v415_v41 = vpack.c.bf16 %v387_v35, %v386_v34 }
  0x43   : > { %505 = vmatmul.bf16.gmra.mxu0 %v413_v32  ;;  %525 = vmatmul.bf16.gmra.mxu1 %v417_v33  ;;  %v378_v32 = vadd.f32 %v1253_v20, %v344_v24  ;;  %v379_v33 = vadd.f32 %v1253_v20, %v345_v25  ;;  %v1342_v20 = vld [vmem:[%s1556_s3] ss:$0 sm:$0xff] }
  0x44   : > { %545 = vmatmul.bf16.gmra.mxu2 %v421_v36  ;;  %565 = vmatmul.bf16.gmra.mxu3 %v425_v37  ;;  %v395_v36 = vmax.f32 %v363_v29, 0.0  ;;  %v402_v37 = vmax.f32 %v370_v30, 0.0 }
  0x45   : > { %v410_v39 = vmax.f32 %v378_v32, 0.0  ;;  %v411_v40 = vmax.f32 %v379_v33, 0.0  ;;  %v651_v32 = vld [vmem:[%s1347_s26 + $0x10] sm:$0xff] }
  0x46   : > { %v419_v42 = vpack.c.bf16 %v395_v36, %v394_v10  ;;  %v423_v43 = vpack.c.bf16 %v403_v38, %v402_v37  ;;  %v659_v33 = vld [vmem:[%s1347_s26 + $0x50] sm:$0xff] }
  0x47   : > { %v427_v44 = vpack.c.bf16 %v411_v40, %v410_v39 }
  0x53   : > { %510 = vmatmul.bf16.gmra.mxu0 %v414_v4  ;;  %530 = vmatmul.bf16.gmra.mxu1 %v418_v5 }
  0x54   : > { %550 = vmatmul.bf16.gmra.mxu2 %v422_v8  ;;  %570 = vmatmul.bf16.gmra.mxu3 %v426_v13 }
  0x63   : > { %515 = vmatmul.bf16.gmra.mxu0 %v415_v41  ;;  %535 = vmatmul.bf16.gmra.mxu1 %v419_v42 }
  0x64   : > { %555 = vmatmul.bf16.gmra.mxu2 %v423_v43  ;;  %575 = vmatmul.bf16.gmra.mxu3 %v427_v44 }
  0xb0   : > { %v501_v46 = vpop.f32.mrf.mxu0  ;;  %v521_v47 = vpop.f32.mrf.mxu1 }
  0xb1   : > { %v583_v48 = vmul.f32 %v1342_v20, %v501_v46  ;;  %v591_v49 = vmul.f32 %v1342_v20, %v521_v47 }
  0xb3   : > { %v617_v52 = vadd.f32 %v1352_v45, %v583_v48  ;;  %v625_v53 = vadd.f32 %v1352_v45, %v591_v49 }
  0xb5   : > { %v681_v54 = vadd.f32 %v649_v50, %v617_v52  ;;  %v689_v55 = vadd.f32 %v657_v51, %v625_v53  ;;  %v667_v50 = vld [vmem:[%s1347_s26 + $0x90] sm:$0xff] }
  0xb6   : > { %v675_v51 = vld [vmem:[%s1347_s26 + $0xd0] sm:$0xff] }
  0xb7   : > { %v713_v56 = vmax.f32 %v681_v54, 0.0  ;;  %v721_v57 = vmax.f32 %v689_v55, 0.0  ;;  %v541_v58 = vpop.f32.mrf.mxu2  ;;  %v561_v59 = vpop.f32.mrf.mxu3 }
  0xb8   : > { %v599_v60 = vmul.f32 %v1342_v20, %v541_v58  ;;  %v607_v61 = vmul.f32 %v1342_v20, %v561_v59  ;;  %v503_v62 = vpop.f32.mrf.mxu0  ;;  %v523_v63 = vpop.f32.mrf.mxu1 }
  0xb9   : > { %746 = vst.msk [vmem:[%s1365_s9] sm:$0xff] %vm745_vm0, %v713_v56  ;;  %v584_v2 = vmul.f32 %v1342_v20, %v503_v62  ;;  %v592_v3 = vmul.f32 %v1342_v20, %v523_v63  ;;  %v652_v56 = vld [vmem:[%s1347_s26 + $0x18] sm:$0xff] }
  0xba   : > { %754 = vst.msk [vmem:[%s1365_s9 + $0x40] sm:$0xff] %vm745_vm0, %v721_v57  ;;  %v633_v4 = vadd.f32 %v1352_v45, %v599_v60  ;;  %v641_v5 = vadd.f32 %v1352_v45, %v607_v61  ;;  %v660_v57 = vld [vmem:[%s1347_s26 + $0x58] sm:$0xff] }
  0xbb   : > { %v618_v8 = vadd.f32 %v1352_v45, %v584_v2  ;;  %v626_v9 = vadd.f32 %v1352_v45, %v592_v3 }
  0xbc   : > { %v697_v11 = vadd.f32 %v665_v0, %v633_v4  ;;  %v705_v12 = vadd.f32 %v673_v1, %v641_v5 }
  0xbd   : > { %v682_v13 = vadd.f32 %v650_v6, %v618_v8  ;;  %v690_v14 = vadd.f32 %v658_v7, %v626_v9 }
  0xbe   : > { %v729_v15 = vmax.f32 %v697_v11, 0.0  ;;  %v737_v16 = vmax.f32 %v705_v12, 0.0  ;;  %v668_v11 = vld [vmem:[%s1347_s26 + $0x98] sm:$0xff] }
  0xbf   : > { %v714_v17 = vmax.f32 %v682_v13, 0.0  ;;  %v722_v18 = vmax.f32 %v690_v14, 0.0  ;;  %v543_v19 = vpop.f32.mrf.mxu2  ;;  %v563_v21 = vpop.f32.mrf.mxu3  ;;  %v676_v12 = vld [vmem:[%s1347_s26 + $0xd8] sm:$0xff] }
  0xc0   : > { %762 = vst.msk [vmem:[%s1365_s9 + $0x80] sm:$0xff] %vm745_vm0, %v729_v15  ;;  %v600_v22 = vmul.f32 %v1342_v20, %v543_v19  ;;  %v608_v23 = vmul.f32 %v1342_v20, %v563_v21  ;;  %v506_v24 = vpop.f32.mrf.mxu0  ;;  %v526_v25 = vpop.f32.mrf.mxu1 }
  0xc1   : > { %770 = vst.msk [vmem:[%s1365_s9 + $0xc0] sm:$0xff] %vm745_vm0, %v737_v16  ;;  %v585_v28 = vmul.f32 %v1342_v20, %v506_v24  ;;  %v593_v29 = vmul.f32 %v1342_v20, %v526_v25 }
  0xc2   : > { %747 = vst.msk [vmem:[%s1365_s9 + $0x8] sm:$0xff] %vm745_vm0, %v714_v17  ;;  %v634_v30 = vadd.f32 %v1352_v45, %v600_v22  ;;  %v642_v31 = vadd.f32 %v1352_v45, %v608_v23  ;;  %v653_v17 = vld [vmem:[%s1347_s26 + $0x20] sm:$0xff] }
  0xc3   : > { %755 = vst.msk [vmem:[%s1365_s9 + $0x48] sm:$0xff] %vm745_vm0, %v722_v18  ;;  %v619_v34 = vadd.f32 %v1352_v45, %v585_v28  ;;  %v627_v35 = vadd.f32 %v1352_v45, %v593_v29  ;;  %v661_v18 = vld [vmem:[%s1347_s26 + $0x60] sm:$0xff] }
  0xc4   : > { %v698_v10 = vadd.f32 %v666_v26, %v634_v30  ;;  %v706_v36 = vadd.f32 %v674_v27, %v642_v31 }
  0xc5   : > { %v683_v37 = vadd.f32 %v651_v32, %v619_v34  ;;  %v691_v38 = vadd.f32 %v659_v33, %v627_v35 }
  0xc6   : > { %v730_v39 = vmax.f32 %v698_v10, 0.0  ;;  %v738_v40 = vmax.f32 %v706_v36, 0.0  ;;  %v669_v10 = vld [vmem:[%s1347_s26 + $0xa0] sm:$0xff] }
  0xc7   : > { %v715_v41 = vmax.f32 %v683_v37, 0.0  ;;  %v723_v42 = vmax.f32 %v691_v38, 0.0  ;;  %v546_v43 = vpop.f32.mrf.mxu2  ;;  %v566_v44 = vpop.f32.mrf.mxu3  ;;  %v677_v36 = vld [vmem:[%s1347_s26 + $0xe0] sm:$0xff] }
  0xc8   : > { %763 = vst.msk [vmem:[%s1365_s9 + $0x88] sm:$0xff] %vm745_vm0, %v730_v39  ;;  %v601_v46 = vmul.f32 %v1342_v20, %v546_v43  ;;  %v609_v47 = vmul.f32 %v1342_v20, %v566_v44  ;;  %v508_v48 = vpop.f32.mrf.mxu0  ;;  %v528_v49 = vpop.f32.mrf.mxu1 }
  0xc9   : > { %771 = vst.msk [vmem:[%s1365_s9 + $0xc8] sm:$0xff] %vm745_vm0, %v738_v40  ;;  %v586_v52 = vmul.f32 %v1342_v20, %v508_v48  ;;  %v594_v53 = vmul.f32 %v1342_v20, %v528_v49 }
  0xca   : > { %748 = vst.msk [vmem:[%s1365_s9 + $0x10] sm:$0xff] %vm745_vm0, %v715_v41  ;;  %v635_v54 = vadd.f32 %v1352_v45, %v601_v46  ;;  %v643_v55 = vadd.f32 %v1352_v45, %v609_v47  ;;  %v654_v41 = vld [vmem:[%s1347_s26 + $0x28] sm:$0xff] }
  0xcb   : > { %756 = vst.msk [vmem:[%s1365_s9 + $0x50] sm:$0xff] %vm745_vm0, %v723_v42  ;;  %v620_v58 = vadd.f32 %v1352_v45, %v586_v52  ;;  %v628_v59 = vadd.f32 %v1352_v45, %v594_v53  ;;  %v662_v42 = vld [vmem:[%s1347_s26 + $0x68] sm:$0xff] }
  0xcc   : > { %v699_v60 = vadd.f32 %v667_v50, %v635_v54  ;;  %v707_v61 = vadd.f32 %v675_v51, %v643_v55 }
  0xcd   : > { %v684_v62 = vadd.f32 %v652_v56, %v620_v58  ;;  %v692_v63 = vadd.f32 %v660_v57, %v628_v59 }
  0xce   : > { %v731_v0 = vmax.f32 %v699_v60, 0.0  ;;  %v739_v1 = vmax.f32 %v707_v61, 0.0  ;;  %v670_v60 = vld [vmem:[%s1347_s26 + $0xa8] sm:$0xff] }
  0xcf   : > { %v716_v2 = vmax.f32 %v684_v62, 0.0  ;;  %v724_v3 = vmax.f32 %v692_v63, 0.0  ;;  %v548_v4 = vpop.f32.mrf.mxu2  ;;  %v568_v5 = vpop.f32.mrf.mxu3  ;;  %v678_v61 = vld [vmem:[%s1347_s26 + $0xe8] sm:$0xff] }
  0xd0   : > { %764 = vst.msk [vmem:[%s1365_s9 + $0x90] sm:$0xff] %vm745_vm0, %v731_v0  ;;  %v602_v6 = vmul.f32 %v1342_v20, %v548_v4  ;;  %v610_v7 = vmul.f32 %v1342_v20, %v568_v5  ;;  %v511_v8 = vpop.f32.mrf.mxu0  ;;  %v531_v9 = vpop.f32.mrf.mxu1 }
  0xd1   : > { %772 = vst.msk [vmem:[%s1365_s9 + $0xd0] sm:$0xff] %vm745_vm0, %v739_v1  ;;  %v587_v13 = vmul.f32 %v1342_v20, %v511_v8  ;;  %v595_v14 = vmul.f32 %v1342_v20, %v531_v9 }
  0xd2   : > { %749 = vst.msk [vmem:[%s1365_s9 + $0x18] sm:$0xff] %vm745_vm0, %v716_v2  ;;  %v636_v15 = vadd.f32 %v1352_v45, %v602_v6  ;;  %v644_v16 = vadd.f32 %v1352_v45, %v610_v7  ;;  %v655_v2 = vld [vmem:[%s1347_s26 + $0x30] sm:$0xff] }
  0xd3   : > { %757 = vst.msk [vmem:[%s1365_s9 + $0x58] sm:$0xff] %vm745_vm0, %v724_v3  ;;  %v621_v19 = vadd.f32 %v1352_v45, %v587_v13  ;;  %v629_v21 = vadd.f32 %v1352_v45, %v595_v14  ;;  %v663_v3 = vld [vmem:[%s1347_s26 + $0x70] sm:$0xff] }
  0xd4   : > { %v700_v22 = vadd.f32 %v668_v11, %v636_v15  ;;  %v708_v23 = vadd.f32 %v676_v12, %v644_v16 }
  0xd5   : > { %v685_v24 = vadd.f32 %v653_v17, %v621_v19  ;;  %v693_v25 = vadd.f32 %v661_v18, %v629_v21 }
  0xd6   : > { %v732_v26 = vmax.f32 %v700_v22, 0.0  ;;  %v740_v27 = vmax.f32 %v708_v23, 0.0  ;;  %v671_v22 = vld [vmem:[%s1347_s26 + $0xb0] sm:$0xff] }
  0xd7   : > { %v717_v28 = vmax.f32 %v685_v24, 0.0  ;;  %v725_v29 = vmax.f32 %v693_v25, 0.0  ;;  %v551_v30 = vpop.f32.mrf.mxu2  ;;  %v571_v31 = vpop.f32.mrf.mxu3  ;;  %v679_v23 = vld [vmem:[%s1347_s26 + $0xf0] sm:$0xff] }
  0xd8   : > { %765 = vst.msk [vmem:[%s1365_s9 + $0x98] sm:$0xff] %vm745_vm0, %v732_v26  ;;  %v603_v32 = vmul.f32 %v1342_v20, %v551_v30  ;;  %v611_v33 = vmul.f32 %v1342_v20, %v571_v31  ;;  %v513_v34 = vpop.f32.mrf.mxu0  ;;  %v533_v35 = vpop.f32.mrf.mxu1 }
  0xd9   : > { %773 = vst.msk [vmem:[%s1365_s9 + $0xd8] sm:$0xff] %vm745_vm0, %v740_v27  ;;  %v588_v37 = vmul.f32 %v1342_v20, %v513_v34  ;;  %v596_v38 = vmul.f32 %v1342_v20, %v533_v35 }
  0xda   : > { %750 = vst.msk [vmem:[%s1365_s9 + $0x20] sm:$0xff] %vm745_vm0, %v717_v28  ;;  %v637_v39 = vadd.f32 %v1352_v45, %v603_v32  ;;  %v645_v40 = vadd.f32 %v1352_v45, %v611_v33  ;;  %v656_v28 = vld [vmem:[%s1347_s26 + $0x38] sm:$0xff] }
  0xdb   : > { %758 = vst.msk [vmem:[%s1365_s9 + $0x60] sm:$0xff] %vm745_vm0, %v725_v29  ;;  %v622_v43 = vadd.f32 %v1352_v45, %v588_v37  ;;  %v630_v44 = vadd.f32 %v1352_v45, %v596_v38  ;;  %v664_v29 = vld [vmem:[%s1347_s26 + $0x78] sm:$0xff] }
  0xdc   : > { %v701_v46 = vadd.f32 %v669_v10, %v637_v39  ;;  %v709_v47 = vadd.f32 %v677_v36, %v645_v40 }
  0xdd   : > { %v686_v48 = vadd.f32 %v654_v41, %v622_v43  ;;  %v694_v49 = vadd.f32 %v662_v42, %v630_v44  ;;  %v672_v43 = vld [vmem:[%s1347_s26 + $0xb8] sm:$0xff] }
  0xde   : > { %v733_v50 = vmax.f32 %v701_v46, 0.0  ;;  %v741_v51 = vmax.f32 %v709_v47, 0.0  ;;  %v680_v44 = vld [vmem:[%s1347_s26 + $0xf8] sm:$0xff]  ;;  %s1091_s26 = scalar_lea.hbm %s1558_s5, 512 }
  0xdf   : > { %v718_v52 = vmax.f32 %v686_v48, 0.0  ;;  %v726_v53 = vmax.f32 %v694_v49, 0.0  ;;  %v553_v54 = vpop.f32.mrf.mxu2  ;;  %v573_v55 = vpop.f32.mrf.mxu3  ;;  %p1093_p1 = scmp.lt.s32.totalorder %s1091_s26, %s1087_s17 }
  0xe0   : > { %766 = vst.msk [vmem:[%s1365_s9 + $0xa0] sm:$0xff] %vm745_vm0, %v733_v50  ;;  %v604_v56 = vmul.f32 %v1342_v20, %v553_v54  ;;  %v612_v57 = vmul.f32 %v1342_v20, %v573_v55  ;;  %v516_v58 = vpop.f32.mrf.mxu0  ;;  %v536_v59 = vpop.f32.mrf.mxu1 }
  0xe1   : > { %774 = vst.msk [vmem:[%s1365_s9 + $0xe0] sm:$0xff] %vm745_vm0, %v741_v51  ;;  %v589_v62 = vmul.f32 %v1342_v20, %v516_v58  ;;  %v597_v63 = vmul.f32 %v1342_v20, %v536_v59  ;;  %p1094_p2 = por %p1093_p1, %p1092_p0 }
  0xe2   : > { %751 = vst.msk [vmem:[%s1365_s9 + $0x28] sm:$0xff] %vm745_vm0, %v718_v52  ;;  %v638_v0 = vadd.f32 %v1352_v45, %v604_v56  ;;  %v646_v1 = vadd.f32 %v1352_v45, %v612_v57 }
  0xe3   : > { %759 = vst.msk [vmem:[%s1365_s9 + $0x68] sm:$0xff] %vm745_vm0, %v726_v53  ;;  %v623_v4 = vadd.f32 %v1352_v45, %v589_v62  ;;  %v631_v5 = vadd.f32 %v1352_v45, %v597_v63  ;;  %p1095_p3 = pnand %p1094_p2, %p1090_p13 }
  0xe4   : > { %v702_v6 = vadd.f32 %v670_v60, %v638_v0  ;;  %v710_v7 = vadd.f32 %v678_v61, %v646_v1 }
  0xe5   : > { %v687_v8 = vadd.f32 %v655_v2, %v623_v4  ;;  %v695_v9 = vadd.f32 %v663_v3, %v631_v5 }
  0xe6   : > { %v734_v11 = vmax.f32 %v702_v6, 0.0  ;;  %v742_v12 = vmax.f32 %v710_v7, 0.0 }
  0xe7   : > { %v719_v13 = vmax.f32 %v687_v8, 0.0  ;;  %v727_v14 = vmax.f32 %v695_v9, 0.0  ;;  %v556_v15 = vpop.f32.mrf.mxu2  ;;  %v576_v16 = vpop.f32.mrf.mxu3 }
  0xe8   : > { %767 = vst.msk [vmem:[%s1365_s9 + $0xa8] sm:$0xff] %vm745_vm0, %v734_v11  ;;  %v605_v17 = vmul.f32 %v1342_v20, %v556_v15  ;;  %v613_v18 = vmul.f32 %v1342_v20, %v576_v16  ;;  %v518_v19 = vpop.f32.mrf.mxu0  ;;  %v538_v21 = vpop.f32.mrf.mxu1 }
  0xe9   : > { %775 = vst.msk [vmem:[%s1365_s9 + $0xe8] sm:$0xff] %vm745_vm0, %v742_v12  ;;  %v590_v24 = vmul.f32 %v1342_v20, %v518_v19  ;;  %v598_v25 = vmul.f32 %v1342_v20, %v538_v21 }
  0xea   : > { %752 = vst.msk [vmem:[%s1365_s9 + $0x30] sm:$0xff] %vm745_vm0, %v719_v13  ;;  %v639_v26 = vadd.f32 %v1352_v45, %v605_v17  ;;  %v647_v27 = vadd.f32 %v1352_v45, %v613_v18 }
  0xeb   : > { %760 = vst.msk [vmem:[%s1365_s9 + $0x70] sm:$0xff] %vm745_vm0, %v727_v14  ;;  %v624_v30 = vadd.f32 %v1352_v45, %v590_v24  ;;  %v632_v31 = vadd.f32 %v1352_v45, %v598_v25 }
  0xec   : > { %v703_v32 = vadd.f32 %v671_v22, %v639_v26  ;;  %v711_v33 = vadd.f32 %v679_v23, %v647_v27 }
  0xed   : > { %v688_v34 = vadd.f32 %v656_v28, %v624_v30  ;;  %v696_v35 = vadd.f32 %v664_v29, %v632_v31 }
  0xee   : > { %v735_v10 = vmax.f32 %v703_v32, 0.0  ;;  %v743_v36 = vmax.f32 %v711_v33, 0.0 }
  0xef   : > { %v720_v37 = vmax.f32 %v688_v34, 0.0  ;;  %v728_v38 = vmax.f32 %v696_v35, 0.0  ;;  %v558_v39 = vpop.f32.mrf.mxu2  ;;  %v578_v40 = vpop.f32.mrf.mxu3 }
  0xf0   : > { %768 = vst.msk [vmem:[%s1365_s9 + $0xb0] sm:$0xff] %vm745_vm0, %v735_v10  ;;  %v606_v41 = vmul.f32 %v1342_v20, %v558_v39  ;;  %v614_v42 = vmul.f32 %v1342_v20, %v578_v40 }
  0xf1   : > { %776 = vst.msk [vmem:[%s1365_s9 + $0xf0] sm:$0xff] %vm745_vm0, %v743_v36 }
  0xf2   : > { %753 = vst.msk [vmem:[%s1365_s9 + $0x38] sm:$0xff] %vm745_vm0, %v720_v37  ;;  %v640_v46 = vadd.f32 %v1352_v45, %v606_v41  ;;  %v648_v47 = vadd.f32 %v1352_v45, %v614_v42 }
  0xf3   : > { %761 = vst.msk [vmem:[%s1365_s9 + $0x78] sm:$0xff] %vm745_vm0, %v728_v38 }
  0xf4   : > { %v704_v20 = vadd.f32 %v672_v43, %v640_v46  ;;  %v712_v48 = vadd.f32 %v680_v44, %v648_v47 }
  0xf6   : > { %v736_v49 = vmax.f32 %v704_v20, 0.0  ;;  %v744_v50 = vmax.f32 %v712_v48, 0.0 }
  0xf8   : > { %769 = vst.msk [vmem:[%s1365_s9 + $0xb8] sm:$0xff] %vm745_vm0, %v736_v49 }
  0xf9   : > { %777 = vst.msk [vmem:[%s1365_s9 + $0xf8] sm:$0xff] %vm745_vm0, %v744_v50 }
  0xfa   : > { %1098 = shalt.err (!%p1095_p3)
}
  0xfb   : > { %s1135_s8 = smov 128   ;;  %s1136_s7 = smov 8  }
  0xfc   : > { %1026 = dma.vmem_to_hbm [thread:$0]  (%p1205_p5), %s792_s22, 4096, %s794_s14, %s779_s15, %s1135_s8, %s1135_s8, %s1136_s7  }
  0xfd PF: > { %p1032_p4 = scmp.ge.s32.totalorder %s1133_s21, 2  ;;  %s808_s9 = sand.u32 1, %s1121_s18  }
  0xfe   : > { %s809_s10 = scalar_lea.sflag [#allocation3], %s808_s9 }
  0xff   : > { %p1029_p7 = pnand %p1032_p4, %p1209_p6 }
 0x101   : > { %p1030_p8 = pneg %p1029_p7 }
 0x103   : > { %1116 = dma.done.wait (%p1030_p8), %s809_s10, 4096  }
 0x104   : > { %1118 = vsyncadd (%p1030_p8), %s809_s10, 4294963200  ;;  %p15_p9 = scmp.ge.s32.totalorder %s1192_s24, 4   ;;  %s1561_s18 = smov %s1125_s19 }
 0x105   : > { %s1562_s19 = smov %s1129_s20  ;;  %s1563_s20 = smov %s1203_s27 }
 0x106   : > { %s1564_s21 = smov %s1192_s24  ;;  %17 = sbr.rel (!%p15_p9) target bundleno = 3 (0x3), region = 78 }
 0x10b   :  { %815 = vsyncpa [#allocation3], 1 }
 0x10c   :  { %817 = vsyncpa [#allocation3 + $0x1], 1 }

// kernel: bottleneck_forward.5
= control target key start
LH: loop header
LB: loop body
LE: loop exit
PB: predicated region body
PF: predicated region fallthrough
CT: control target
= control target key end

     0   :  { %s4563_s18 = smov 0   ;;  %s6959_s0 = inlined_call_operand.vmem [shape: bf16[512,128], index: 0, kind: input, shape index: {}]   ;;  %s6960_s1 = inlined_call_operand.vmem [shape: bf16[128,128], index: 1, kind: input, shape index: {}]   ;;  %s6961_s2 = inlined_call_operand.vmem [shape: f32[2,128], index: 2, kind: input, shape index: {}]   ;;  %s6962_s3 = inlined_call_operand.vmem [shape: bf16[1152,128], index: 3, kind: input, shape index: {}]   ;;  %s6963_s4 = inlined_call_operand.vmem [shape: bf16[512,128], index: 4, kind: output, shape index: {0}]   ;;  %s6964_s5 = inlined_call_operand.vmem [shape: f32[2,2,128], index: 5, kind: output, shape index: {1}]  }
   0x1 LB: > { %s4569_s19 = sadd.s32 4294967295, %s4530_s18   ;;  %p3880_p0 = scmp.ge.s32.totalorder %s4530_s18, 1  ;;  %s4530_s18 = sphi %s4563_s18, %s16_s18  }
   0x2   : > { %p191_p1 = scmp.lt.s32.totalorder %s4530_s18, 3 }
   0x4   : > { %p192_p2 = pnand %p3880_p0, %p191_p1 }
   0x6   : > { %195 = sbr.rel (%p192_p2) target bundleno = 1101 (0x44d), region = 36 }
   0xb   : > { %v4327_v0 = vld [vmem:[%s6960_s1 + $0x38] sm:$0xff]  ;;  %v4326_v1 = vld [vmem:[%s6960_s1 + $0x30] sm:$0xff]  ;;  %v4325_v2 = vld [vmem:[%s6960_s1 + $0x28] sm:$0xff]  ;;  %s3881_s28 = sshll.u32 %s4569_s19, 5  ;;  %v620_v37 = vlaneseq  ;;  %p235_p4 = scmp.lt.s32.totalorder %s4569_s19, 1 }
   0xc   : > { %431 = vmatpush.bf16.msra.mxu0 %v4327_v0  ;;  %4495 = vmatpush.bf16.msra.mxu2 %v4327_v0  ;;  %v4324_v3 = vld [vmem:[%s6960_s1 + $0x20] sm:$0xff]  ;;  %v4323_v4 = vld [vmem:[%s6960_s1 + $0x18] sm:$0xff]  ;;  %p224_p3 = scmp.lt.s32.totalorder %s3881_s28, 63  ;;  %v4322_v5 = vld [vmem:[%s6960_s1 + $0x10] sm:$0xff] }
   0xd   : > { %v4321_v6 = vld [vmem:[%s6960_s1 + $0x8] sm:$0xff]  ;;  %v4320_v7 = vld [vmem:[%s6960_s1] sm:$0xff]  ;;  %v4367_v18 = vld [vmem:[%s6962_s3 + $0x138] sm:$0xff]  ;;  %v4662_v42 = vshrl.u32 %v620_v37, 7  ;;  %s7722_s19 = smov (!%p235_p4, %s4569_s19), 1 }
   0xe   : > { %s7720_s28 = smov (!%p224_p3, %s3881_s28), 63  ;;  %v4366_v21 = vld [vmem:[%s6962_s3 + $0x130] sm:$0xff]  ;;  %v4365_v22 = vld [vmem:[%s6962_s3 + $0x128] sm:$0xff]  ;;  %v4364_v23 = vld [vmem:[%s6962_s3 + $0x120] sm:$0xff] }
   0xf   : > { %s3882_s10 = sshll.u32 %s7720_s28, 2  ;;  %v4363_v26 = vld [vmem:[%s6962_s3 + $0x118] sm:$0xff]  ;;  %v4362_v27 = vld [vmem:[%s6962_s3 + $0x110] sm:$0xff]  ;;  %v4361_v28 = vld [vmem:[%s6962_s3 + $0x108] sm:$0xff]  ;;  %7173 = vst [vmem:[#allocation2_spill] sm:$0xff] %v4662_v42  ;;  %vm1485_vm0 = vcmp.lt.s32.totalorder %v4662_v42, 1 }
  0x10   : > { %432 = vmatpush.bf16.msra.mxu0 %v4326_v1  ;;  %4496 = vmatpush.bf16.msra.mxu2 %v4326_v1  ;;  %s4606_s15 = scalar_lea.vmem %s6959_s0, %s3882_s10  ;;  %v4360_v29 = vld [vmem:[%s6962_s3 + $0x100] sm:$0xff]  ;;  %v623_v48 = vadd.s32 16, %v4662_v42  ;;  %v625_v54 = vadd.s32 32, %v4662_v42  ;;  %v657_v57 = vand.u32 15, %v4662_v42  ;;  %v622_v0 = vadd.s32 8, %v4662_v42  ;;  %s6791_s25 = scalar_lea.vmem %s6963_s4, %s3882_s10 }
  0x11   : > { %v4304_v8 = vld [vmem:[%s4606_s15] sm:$0xff]  ;;  %v4305_v10 = vld [vmem:[%s4606_s15 + $0x8] sm:$0xff]  ;;  %v4306_v12 = vld [vmem:[%s4606_s15 + $0x10] sm:$0xff]  ;;  %vm1582_vm1 = vcmp.lt.s32.totalorder %v4662_v42, 7  ;;  %v624_v1 = vadd.s32 24, %v4662_v42  ;;  %s3885_s28 = sshll.u32 %s7722_s19, 1 }
  0x12   : > { %v4312_v9 = vld [vmem:[%s4606_s15 + $0x40] sm:$0xff]  ;;  %v4313_v11 = vld [vmem:[%s4606_s15 + $0x48] sm:$0xff]  ;;  %v4314_v13 = vld [vmem:[%s4606_s15 + $0x50] sm:$0xff]  ;;  %v671_v62 = vand.u32 15, %v623_v48  ;;  %v685_v63 = vand.u32 15, %v625_v54  ;;  %vm1037_vm2 = vcmp.gt.s32.totalorder %v657_v57, 0  ;;  %s238_s27 = scalar_lea.vmem %s6964_s5, %s3885_s28 }
  0x13   : > { %v4307_v14 = vld [vmem:[%s4606_s15 + $0x18] sm:$0xff]  ;;  %v4308_v16 = vld [vmem:[%s4606_s15 + $0x20] sm:$0xff]  ;;  %v4309_v19 = vld [vmem:[%s4606_s15 + $0x28] sm:$0xff] }
  0x14   : > { %433 = vmatpush.bf16.msra.mxu0 %v4325_v2  ;;  %4497 = vmatpush.bf16.msra.mxu2 %v4325_v2  ;;  %v4315_v15 = vld [vmem:[%s4606_s15 + $0x58] sm:$0xff]  ;;  %v4316_v17 = vld [vmem:[%s4606_s15 + $0x60] sm:$0xff]  ;;  %v4317_v20 = vld [vmem:[%s4606_s15 + $0x68] sm:$0xff]  ;;  %vm1039_vm3 = vcmp.gt.s32.totalorder %v671_v62, 0  ;;  %vm1041_vm4 = vcmp.gt.s32.totalorder %v685_v63, 0  ;;  %v643_v63 = vadd.s32 176, %v4662_v42 }
  0x15   : > { %v4310_v24 = vld [vmem:[%s4606_s15 + $0x30] sm:$0xff]  ;;  %v4311_v30 = vld [vmem:[%s4606_s15 + $0x38] sm:$0xff]  ;;  %v4651_v32 = vld [vmem:[%s6961_s2] ss:$0 sm:$0xff] }
  0x16   : > { %v4318_v25 = vld [vmem:[%s4606_s15 + $0x70] sm:$0xff]  ;;  %v4319_v31 = vld [vmem:[%s4606_s15 + $0x78] sm:$0xff]  ;;  %v4657_v35 = vld [vmem:[%s6961_s2 + $0x1] ss:$0 sm:$0xff] }
  0x18   : > { %434 = vmatpush.bf16.msra.mxu0 %v4324_v3  ;;  %4498 = vmatpush.bf16.msra.mxu2 %v4324_v3 }
  0x1c   : > { %435 = vmatpush.bf16.msra.mxu0 %v4323_v4  ;;  %4499 = vmatpush.bf16.msra.mxu2 %v4323_v4 }
  0x20   : > { %436 = vmatpush.bf16.msra.mxu0 %v4322_v5  ;;  %4500 = vmatpush.bf16.msra.mxu2 %v4322_v5 }
  0x24   : > { %437 = vmatpush.bf16.msra.mxu0 %v4321_v6  ;;  %4501 = vmatpush.bf16.msra.mxu2 %v4321_v6  ;;  %v639_v6 = vadd.s32 144, %v4662_v42 }
  0x28   : > { %438 = vmatpush.bf16.msra.mxu0 %v4320_v7  ;;  %4502 = vmatpush.bf16.msra.mxu2 %v4320_v7  ;;  %v636_v7 = vadd.s32 120, %v4662_v42 }
  0x2b   : > { %439 = vmatmul.bf16.vlgmr.msra.gmra.mxu0 %v4304_v8  ;;  %479 = vmatmul.bf16.vlgmr.msra.gmra.mxu2 %v4312_v9  ;;  %v640_v8 = vadd.s32 152, %v4662_v42 }
  0x2c   : > { %2264 = vmatpush.bf16.msrb.mxu2 %v4367_v18 }
  0x30   : > { %2265 = vmatpush.bf16.msrb.mxu2 %v4366_v21  ;;  %v783_v21 = vand.u32 15, %v639_v6 }
  0x32   : > { %vm4758_vm7 = vcmp.gt.s32.totalorder %v783_v21, 0 }
  0x34   : > { %2266 = vmatpush.bf16.msrb.mxu2 %v4365_v22 }
  0x38   : > { %2267 = vmatpush.bf16.msrb.mxu2 %v4364_v23  ;;  %v762_v23 = vand.u32 15, %v636_v7 }
  0x3a   : > { %vm4762_vm8 = vcmp.lt.s32.totalorder %v762_v23, 15 }
  0x3b   : > { %444 = vmatmul.bf16.gmra.mxu0 %v4305_v10  ;;  %484 = vmatmul.bf16.gmra.mxu2 %v4313_v11 }
  0x3c   : > { %2268 = vmatpush.bf16.msrb.mxu2 %v4363_v26 }
  0x40   : > { %2269 = vmatpush.bf16.msrb.mxu2 %v4362_v27 }
  0x44   : > { %2270 = vmatpush.bf16.msrb.mxu2 %v4361_v28  ;;  %v627_v28 = vadd.s32 48, %v4662_v42 }
  0x48   : > { %2271 = vmatpush.bf16.msrb.mxu2 %v4360_v29 }
  0x4b   : > { %449 = vmatmul.bf16.gmra.mxu0 %v4306_v12  ;;  %489 = vmatmul.bf16.gmra.mxu2 %v4314_v13  ;;  %v6967_v13 = vmov 0.0  }
  0x4c   : > { %v4727_v22 = vsel %vm1039_vm3, 1.0, %v6967_v13  ;;  %v4732_v27 = vsel %vm1041_vm4, 1.0, %v6967_v13  ;;  %v4833_v21 = vsel %vm4762_vm8, 1.0, %v6967_v13 }
  0x4d   : > { %7184 = vst [vmem:[#allocation13_spill] sm:$0xff] %v4727_v22 }
  0x5b   : > { %454 = vmatmul.bf16.gmra.mxu0 %v4307_v14  ;;  %494 = vmatmul.bf16.gmra.mxu2 %v4315_v15  ;;  %v4712_v14 = vsel %vm1037_vm2, 1.0, %v6967_v13  ;;  %v664_v15 = vand.u32 15, %v622_v0 }
  0x5c   : > { %7182 = vst [vmem:[#allocation11_spill] sm:$0xff] %v4712_v14 }
  0x5d   : > { %vm4743_vm5 = vcmp.lt.s32.totalorder %v664_v15, 15  ;;  %v4814_v15 = vsel %vm4758_vm7, 1.0, %v6967_v13 }
  0x6b   : > { %459 = vmatmul.bf16.gmra.mxu0 %v4308_v16  ;;  %499 = vmatmul.bf16.gmra.mxu2 %v4316_v17 }
  0x7b   : > { %464 = vmatmul.bf16.gmra.mxu0 %v4309_v19  ;;  %504 = vmatmul.bf16.gmra.mxu2 %v4317_v20  ;;  %v678_v20 = vand.u32 15, %v624_v1 }
  0x7d   : > { %vm4753_vm6 = vcmp.lt.s32.totalorder %v678_v20, 15 }
  0x8b   : > { %469 = vmatmul.bf16.gmra.mxu0 %v4310_v24  ;;  %509 = vmatmul.bf16.gmra.mxu2 %v4318_v25  ;;  %v790_v24 = vand.u32 15, %v640_v8 }
  0x8d   : > { %vm4769_vm9 = vcmp.lt.s32.totalorder %v790_v24, 15 }
  0x8e   : > { %v4838_v23 = vsel %vm4769_vm9, 1.0, %v6967_v13 }
  0x8f   : > { %7204 = vst [vmem:[#allocation23_spill] sm:$0xff] %v4838_v23 }
  0x9b   : > { %474 = vmatmul.bf16.gmra.mxu0 %v4311_v30  ;;  %514 = vmatmul.bf16.gmra.mxu2 %v4319_v31  ;;  %v4738_v30 = vadd.s32 128, %v4662_v42  ;;  %v4741_v31 = vadd.s32 160, %v4662_v42 }
  0xa8   : > { %v440_v33 = vpop.f32.mrf.mxu0 }
  0xa9   : > { %v522_v34 = vmul.f32 %v4651_v32, %v440_v33 }
  0xab   : > { %v556_v38 = vadd.f32 %v4657_v35, %v522_v34 }
  0xad   : > { %v4664_v43 = vmax.f32 %v556_v38, 0.0  ;;  %v626_v38 = vadd.s32 40, %v4662_v42 }
  0xae   : > { %v480_v36 = vpop.f32.mrf.mxu2 }
  0xaf   : > { %v538_v41 = vmul.f32 %v4651_v32, %v480_v36  ;;  %7174 = vst [vmem:[#allocation3_spill] sm:$0xff] %v4664_v43  ;;  %v4678_v51 = vrot.slane %v4664_v43, 7  ;;  %v692_v0 = vand.u32 15, %v626_v38 }
  0xb0   : > { %v442_v39 = vpop.f32.mrf.mxu0 }
  0xb1   : > { %v523_v40 = vmul.f32 %v4651_v32, %v442_v39  ;;  %v572_v46 = vadd.f32 %v4657_v35, %v538_v41  ;;  %7177 = vst [vmem:[#allocation6_spill] sm:$0xff] %v4678_v51  ;;  %vm1138_vm10 = vcmp.lt.s32.totalorder %v692_v0, 15 }
  0xb3   : > { %v557_v44 = vadd.f32 %v4657_v35, %v523_v40  ;;  %v4691_v59 = vmax.f32 %v572_v46, 0.0  ;;  %v4853_v46 = vsel %vm1138_vm10, 1.0, %v6967_v13 }
  0xb5   : > { %v4667_v45 = vmax.f32 %v557_v44, 0.0  ;;  %7179 = vst [vmem:[#allocation8_spill] sm:$0xff] %v4691_v59  ;;  %v6966_v4 = vrot.slane %v4691_v59, 1  ;;  %v4767_v44 = vadd.s32 136, %v4662_v42 }
  0xb6   : > { %v482_v47 = vpop.f32.mrf.mxu2 }
  0xb7   : > { %7175 = vst [vmem:[#allocation4_spill] sm:$0xff] %v4667_v45  ;;  %v539_v49 = vmul.f32 %v4651_v32, %v482_v47  ;;  %v4675_v50 = vpack.c.bf16 %v4667_v45, %v4664_v43  ;;  %v1456_v52 = vrot.slane %v4667_v45, 7  ;;  %v4707_v9 = vmul.f32 0.0, %v4667_v45 }
  0xb8   : > { %v445_v53 = vpop.f32.mrf.mxu0 }
  0xb9   : > { %7176 = vst [vmem:[#allocation5_spill] sm:$0xff] %v4675_v50  ;;  %v573_v55 = vadd.f32 %v4657_v35, %v539_v49  ;;  %v524_v56 = vmul.f32 %v4651_v32, %v445_v53  ;;  %2272 = vmatmul.bf16.vlgmr.msrb.gmra.mxu2 %v4675_v50  ;;  %v4689_v58 = vsel %vm1485_vm0, %v4678_v51, %v1456_v52  ;;  %v6965_v26 = vrot.slane %v4707_v9, 7 }
  0xba   : > { %7178 = vst [vmem:[#allocation7_spill] sm:$0xff] %v4689_v58 }
  0xbb   : > { %v4693_v60 = vmax.f32 %v573_v55, 0.0  ;;  %v558_v61 = vadd.f32 %v4657_v35, %v524_v56  ;;  %7181 = vst [vmem:[#allocation10_spill] sm:$0xff] %v4707_v9 }
  0xbd   : > { %7180 = vst [vmem:[#allocation9_spill] sm:$0xff] %v4693_v60  ;;  %v1569_v2 = vrot.slane %v4693_v60, 1  ;;  %v4700_v3 = vmax.f32 %v558_v61, 0.0 }
  0xbe   : > { %v485_v5 = vpop.f32.mrf.mxu2 }
  0xbf   : > { %v1457_v10 = vrot.slane %v4700_v3, 7  ;;  %v540_v11 = vmul.f32 %v4651_v32, %v485_v5  ;;  %v4720_v16 = vsel %vm1582_vm1, %v6966_v4, %v1569_v2  ;;  %v4850_v40 = vrot.slane %v4700_v3, 1 }
  0xc0   : > { %v447_v12 = vpop.f32.mrf.mxu0  ;;  %7183 = vst [vmem:[#allocation12_spill] sm:$0xff] %v4720_v16 }
  0xc1   : > { %v574_v17 = vadd.f32 %v4657_v35, %v540_v11  ;;  %v525_v18 = vmul.f32 %v4651_v32, %v447_v12  ;;  %v1513_v19 = vsel %vm1485_vm0, %v1456_v52, %v1457_v10  ;;  %v2948_v36 = vsel %vm1485_vm0, %v6965_v26, %v1457_v10  ;;  %7208 = vst [vmem:[#allocation25_spill] sm:$0xff] %v4850_v40 }
  0xc2   : > { %v699_v52 = vand.u32 15, %v627_v28  ;;  %v4781_v55 = vmul.f32 %v4727_v22, %v1513_v19  ;;  %v4784_v56 = vmul.f32 %v4712_v14, %v2948_v36  ;;  %v4787_v57 = vmul.f32 %v4732_v27, %v1513_v19 }
  0xc3   : > { %v559_v25 = vadd.f32 %v4657_v35, %v525_v18  ;;  %v4735_v29 = vmax.f32 %v574_v17, 0.0  ;;  %v4809_v12 = vsel %vm4743_vm5, 1.0, %v6967_v13  ;;  %v4819_v17 = vsel %vm4753_vm6, 1.0, %v6967_v13 }
  0xc4   : > { %7197 = vst [vmem:[#allocation16_spill] sm:$0xff] %v4781_v55  ;;  %v811_v28 = vand.u32 15, %v643_v63  ;;  %vm4842_vm11 = vcmp.gt.s32.totalorder %v699_v52, 0  ;;  %v642_v52 = vadd.s32 168, %v4662_v42  ;;  %v4335_v55 = vld [vmem:[%s6962_s3 + $0x38] sm:$0xff] }
  0xc5   : > { %7185 = vst [vmem:[#allocation14_spill] sm:$0xff] %v4735_v29  ;;  %v4747_v34 = vmax.f32 %v559_v25, 0.0  ;;  %v1570_v53 = vrot.slane %v4735_v29, 1  ;;  %v4869_v0 = vsel %vm4842_vm11, 1.0, %v6967_v13  ;;  %2586 = vmatpush.bf16.msrb.mxu0 %v4335_v55 }
  0xc6   : > { %v487_v39 = vpop.f32.mrf.mxu2  ;;  %7198 = vst [vmem:[#allocation17_spill] sm:$0xff] %v4784_v56  ;;  %vm1059_vm12 = vcmp.gt.s32.totalorder %v811_v28, 0  ;;  %v7227_v56 = vmov 0.0  }
  0xc7   : > { %v541_v47 = vmul.f32 %v4651_v32, %v487_v39  ;;  %v4776_v48 = vpack.c.bf16 %v4747_v34, %v4700_v3  ;;  %v1458_v49 = vrot.slane %v4747_v34, 7  ;;  %7199 = vst [vmem:[#allocation18_spill] sm:$0xff] %v4787_v57  ;;  %v4828_v19 = vsel %vm1582_vm1, %v1569_v2, %v1570_v53 }
  0xc8   : > { %v450_v54 = vpop.f32.mrf.mxu0  ;;  %7201 = vst [vmem:[#allocation20_spill] sm:$0xff] %v4809_v12  ;;  %v629_v2 = vadd.s32 64, %v4662_v42  ;;  %v1555_v39 = vrot.slane %v4747_v34, 1  ;;  %v4891_v6 = vsel %vm1059_vm12, 1.0, %v6967_v13 }
  0xc9   : > { %7196 = vst [vmem:[#allocation15_spill] sm:$0xff] %v4776_v48  ;;  %v526_v61 = vmul.f32 %v4651_v32, %v450_v54  ;;  %2277 = vmatmul.bf16.gmra.mxu2 %v4776_v48  ;;  %v4793_v62 = vsel %vm1485_vm0, %v1457_v10, %v1458_v49  ;;  %v575_v1 = vadd.f32 %v4657_v35, %v541_v47  ;;  %v628_v47 = vadd.s32 56, %v4662_v42 }
  0xca   : > { %7200 = vst [vmem:[#allocation19_spill] sm:$0xff] %v4793_v62  ;;  %v649_v10 = vadd.s32 224, %v4662_v42 }
  0xcb   : > { %v560_v8 = vadd.f32 %v4657_v35, %v526_v61  ;;  %7202 = vst [vmem:[#allocation21_spill] sm:$0xff] %v4819_v17  ;;  %v4840_v24 = vmax.f32 %v575_v1, 0.0  ;;  %v706_v26 = vand.u32 15, %v628_v47 }
  0xcc   : > { %7203 = vst [vmem:[#allocation22_spill] sm:$0xff] %v4828_v19 }
  0xcd   : > { %v592_v20 = vmax.f32 %v560_v8, 0.0  ;;  %7205 = vst [vmem:[#allocation24_spill] sm:$0xff] %v4840_v24  ;;  %v1571_v34 = vrot.slane %v4840_v24, 1  ;;  %vm4921_vm14 = vcmp.lt.s32.totalorder %v706_v26, 15  ;;  %v6972_v13 = vrot.slane %v4840_v24, 7 }
  0xce   : > { %v490_v25 = vpop.f32.mrf.mxu2  ;;  %7214 = vst [vmem:[#allocation31_spill] sm:$0xff] %v4891_v6  ;;  %v853_v24 = vand.u32 15, %v649_v10 }
  0xcf   : > { %v1459_v36 = vrot.slane %v592_v20, 7  ;;  %v1556_v37 = vrot.slane %v592_v20, 1  ;;  %v542_v38 = vmul.f32 %v4651_v32, %v490_v25  ;;  %v4903_v47 = vsel %vm1582_vm1, %v1570_v53, %v1571_v34 }
  0xd0   : > { %v452_v41 = vpop.f32.mrf.mxu0  ;;  %7215 = vst [vmem:[#allocation32_spill] sm:$0xff] %v4903_v47  ;;  %vm5130_vm9 = vcmp.gt.s32.totalorder %v853_v24, 0 }
  0xd1   : > { %v576_v54 = vadd.f32 %v4657_v35, %v542_v38  ;;  %v527_v61 = vmul.f32 %v4651_v32, %v452_v41  ;;  %v4861_v63 = vsel %vm1485_vm0, %v1458_v49, %v1459_v36  ;;  %v1608_v3 = vsel %vm1582_vm1, %v1555_v39, %v1556_v37 }
  0xd2   : > { %v4872_v1 = vmul.f32 %v4819_v17, %v1608_v3  ;;  %v713_v49 = vand.u32 15, %v629_v2  ;;  %v4880_v38 = vsel %vm1582_vm1, %v4850_v40, %v1555_v39  ;;  %v4885_v33 = vmul.f32 %v4809_v12, %v1608_v3 }
  0xd3   : > { %v4874_v8 = vmax.f32 %v576_v54, 0.0  ;;  %v561_v25 = vadd.f32 %v4657_v35, %v527_v61  ;;  %7211 = vst [vmem:[#allocation28_spill] sm:$0xff] %v4880_v38  ;;  %v4888_v41 = vmul.f32 %v4853_v46, %v1608_v3  ;;  %v645_v2 = vadd.s32 192, %v4662_v42 }
  0xd4   : > { %7209 = vst [vmem:[#allocation26_spill] sm:$0xff] %v4872_v1  ;;  %v804_v61 = vand.u32 15, %v642_v52  ;;  %v4911_v28 = vmul.f32 %v4732_v27, %v4861_v63  ;;  %v4915_v5 = vmul.f32 %v4869_v0, %v4861_v63  ;;  %vm4917_vm13 = vcmp.gt.s32.totalorder %v713_v49, 0 }
  0xd5   : > { %7210 = vst [vmem:[#allocation27_spill] sm:$0xff] %v4874_v8  ;;  %v593_v54 = vmax.f32 %v561_v25, 0.0  ;;  %v1475_v39 = vrot.slane %v4874_v8, 7  ;;  %v1572_v3 = vrot.slane %v4874_v8, 1  ;;  %v825_v26 = vand.u32 15, %v645_v2 }
  0xd6   : > { %7212 = vst [vmem:[#allocation29_spill] sm:$0xff] %v4885_v33  ;;  %v492_v7 = vpop.f32.mrf.mxu2  ;;  %vm1154_vm15 = vcmp.lt.s32.totalorder %v804_v61, 15  ;;  %v631_v33 = vadd.s32 80, %v4662_v42  ;;  %v647_v2 = vadd.s32 208, %v4662_v42  ;;  %v644_v1 = vadd.s32 184, %v4662_v42 }
  0xd7   : > { %7213 = vst [vmem:[#allocation30_spill] sm:$0xff] %v4888_v41  ;;  %v543_v25 = vmul.f32 %v4651_v32, %v492_v7  ;;  %v4907_v52 = vpack.c.bf16 %v593_v54, %v592_v20  ;;  %v1460_v4 = vrot.slane %v593_v54, 7  ;;  %v1557_v53 = vrot.slane %v593_v54, 1 }
  0xd8   : > { %v455_v11 = vpop.f32.mrf.mxu0  ;;  %7217 = vst [vmem:[#allocation34_spill] sm:$0xff] %v4911_v28  ;;  %v4952_v49 = vsel %vm1582_vm1, %v1571_v34, %v1572_v3  ;;  %v4965_v16 = vsel %vm1154_vm15, 1.0, %v7227_v56  ;;  %vm1061_vm2 = vcmp.gt.s32.totalorder %v825_v26, 0  ;;  %v818_v28 = vand.u32 15, %v644_v1 }
  0xd9   : > { %7216 = vst [vmem:[#allocation33_spill] sm:$0xff] %v4907_v52  ;;  %v577_v7 = vadd.f32 %v4657_v35, %v543_v25  ;;  %v528_v20 = vmul.f32 %v4651_v32, %v455_v11  ;;  %2282 = vmatmul.bf16.gmra.mxu2 %v4907_v52  ;;  %v4931_v9 = vsel %vm1485_vm0, %v1459_v36, %v1460_v4  ;;  %v4971_v52 = vsel %vm4921_vm14, 1.0, %v7227_v56 }
  0xda   : > { %7218 = vst [vmem:[#allocation35_spill] sm:$0xff] %v4915_v5  ;;  %v4939_v54 = vsel %vm1582_vm1, %v1556_v37, %v1557_v53  ;;  %v4948_v36 = vsel %vm1485_vm0, %v6972_v13, %v1475_v39  ;;  %v630_v37 = vadd.s32 72, %v4662_v42  ;;  %v4958_v61 = vmul.f32 %v4838_v23, %v4952_v49 }
  0xdb   : > { %7223 = vst [vmem:[#allocation36_spill] sm:$0xff] %v4931_v9  ;;  %v4941_v11 = vmax.f32 %v577_v7, 0.0  ;;  %v562_v25 = vadd.f32 %v4657_v35, %v528_v20  ;;  %v4975_v41 = vmul.f32 %v4891_v6, %v4948_v36  ;;  %vm1156_vm7 = vcmp.lt.s32.totalorder %v818_v28, 15 }
  0xdc   : > { %7224 = vst [vmem:[#allocation37_spill] sm:$0xff] %v4939_v54  ;;  %v720_v40 = vand.u32 15, %v630_v37 }
  0xdd   : > { %7225 = vst [vmem:[#allocation38_spill] sm:$0xff] %v4941_v11  ;;  %v4961_v20 = vmax.f32 %v562_v25, 0.0  ;;  %v7230_v50 = vrot.slane %v4941_v11, 7  ;;  %v7232_v45 = vrot.slane %v4941_v11, 1  ;;  %v7256_v10 = vrot.slane %v4941_v11, 1 }
  0xde   : > { %7226 = vst [vmem:[#allocation39_spill] sm:$0xff] %v4958_v61  ;;  %v495_v34 = vpop.f32.mrf.mxu2  ;;  %vm5038_vm3 = vcmp.lt.s32.totalorder %v720_v40, 15 }
  0xdf   : > { %7228 = vst [vmem:[#allocation40_spill] sm:$0xff] %v4965_v16  ;;  %v1461_v7 = vrot.slane %v4961_v20, 7  ;;  %v1558_v13 = vrot.slane %v4961_v20, 1  ;;  %v544_v48 = vmul.f32 %v4651_v32, %v495_v34  ;;  %v4986_v18 = vsel %vm1485_vm0, %v1475_v39, %v7230_v50 }
  0xe0   : > { %7229 = vst [vmem:[#allocation41_spill] sm:$0xff] %v4975_v41  ;;  %v457_v38 = vpop.f32.mrf.mxu0  ;;  %v4994_v25 = vsel %vm1582_vm1, %v1572_v3, %v7232_v45  ;;  %v4998_v34 = vmul.f32 %v4965_v16, %v4952_v49  ;;  %v633_v45 = vadd.s32 96, %v4662_v42  ;;  %v839_v41 = vand.u32 15, %v647_v2 }
  0xe1   : > { %7231 = vst [vmem:[#allocation42_spill] sm:$0xff] %v4986_v18  ;;  %v578_v61 = vadd.f32 %v4657_v35, %v544_v48  ;;  %v529_v50 = vmul.f32 %v4651_v32, %v457_v38  ;;  %v5004_v39 = vsel %vm1485_vm0, %v1460_v4, %v1461_v7  ;;  %v5008_v37 = vsel %vm1582_vm1, %v1557_v53, %v1558_v13 }
  0xe2   : > { %7233 = vst [vmem:[#allocation43_spill] sm:$0xff] %v4994_v25  ;;  %v5013_v3 = vmul.f32 %v4853_v46, %v5008_v37  ;;  %v5022_v4 = vsel %vm4917_vm13, 1.0, %v7227_v56  ;;  %v727_v53 = vand.u32 15, %v631_v33  ;;  %v5028_v5 = vmul.f32 %v4971_v52, %v5008_v37 }
  0xe3   : > { %7234 = vst [vmem:[#allocation44_spill] sm:$0xff] %v4998_v34  ;;  %v5016_v48 = vmax.f32 %v578_v61, 0.0  ;;  %v563_v38 = vadd.f32 %v4657_v35, %v529_v50  ;;  %v5035_v50 = vsel %vm1061_vm2, 1.0, %v7227_v56  ;;  %vm5070_vm6 = vcmp.gt.s32.totalorder %v839_v41, 0 }
  0xe4   : > { %7235 = vst [vmem:[#allocation45_spill] sm:$0xff] %v5013_v3  ;;  %v741_v3 = vand.u32 15, %v633_v45  ;;  %vm5052_vm4 = vcmp.gt.s32.totalorder %v727_v53, 0  ;;  %v7244_v45 = vand.u32 15, %v4767_v44  ;;  %v632_v44 = vadd.s32 88, %v4662_v42 }
  0xe5   : > { %7236 = vst [vmem:[#allocation46_spill] sm:$0xff] %v5016_v48  ;;  %v5032_v8 = vmax.f32 %v563_v38, 0.0  ;;  %v1477_v2 = vrot.slane %v5016_v48, 7  ;;  %v1574_v38 = vrot.slane %v5016_v48, 1  ;;  %v5128_v33 = vsel %vm1156_vm7, 1.0, %v7227_v56 }
  0xe6   : > { %7237 = vst [vmem:[#allocation47_spill] sm:$0xff] %v5028_v5  ;;  %v497_v26 = vpop.f32.mrf.mxu2  ;;  %vm5058_vm5 = vcmp.lt.s32.totalorder %v7244_v45, 15  ;;  %vm5106_vm8 = vcmp.gt.s32.totalorder %v741_v3, 0  ;;  %v4359_v3 = vld [vmem:[%s6962_s3 + $0xf8] sm:$0xff] }
  0xe7   : > { %7238 = vst [vmem:[#allocation48_spill] sm:$0xff] %v5035_v50  ;;  %v545_v61 = vmul.f32 %v4651_v32, %v497_v26  ;;  %v5049_v34 = vpack.c.bf16 %v5032_v8, %v4961_v20  ;;  %v1462_v40 = vrot.slane %v5032_v8, 7  ;;  %v5064_v26 = vmul.f32 %v4869_v0, %v5004_v39  ;;  %4503 = vmatpush.bf16.msra.mxu3 %v4359_v3 }
  0xe8   : > { %v460_v1 = vpop.f32.mrf.mxu0  ;;  %v5068_v20 = vmul.f32 %v5022_v4, %v5004_v39  ;;  %v1559_v57 = vrot.slane %v5032_v8, 1  ;;  %v5104_v6 = vsel %vm1582_vm1, %v7256_v10, %v1574_v38  ;;  %7260 = vst [vmem:[#allocation57_spill] sm:$0xff] %v5128_v33  ;;  %2175 = vmatpush.bf16.msra.mxu1 %v4359_v3  ;;  %v5208_v62 = vsel %vm5106_vm8, 1.0, %v7227_v56 }
  0xe9   : > { %7241 = vst [vmem:[#allocation49_spill] sm:$0xff] %v5049_v34  ;;  %v579_v45 = vadd.f32 %v4657_v35, %v545_v61  ;;  %v530_v5 = vmul.f32 %v4651_v32, %v460_v1  ;;  %2287 = vmatmul.bf16.gmra.mxu2 %v5049_v34  ;;  %v5081_v48 = vsel %vm1485_vm0, %v1461_v7, %v1462_v40  ;;  %v7254_v34 = vrot.slane %v4941_v11, 7 }
  0xea   : > { %7247 = vst [vmem:[#allocation50_spill] sm:$0xff] %v5064_v26  ;;  %v5089_v8 = vsel %vm1582_vm1, %v1558_v13, %v1559_v57  ;;  %v5117_v28 = vmul.f32 %v4965_v16, %v5104_v6  ;;  %v4357_v13 = vld [vmem:[%s6962_s3 + $0xe8] sm:$0xff]  ;;  %v4356_v16 = vld [vmem:[%s6962_s3 + $0xe0] sm:$0xff] }
  0xeb   : > { %7248 = vst [vmem:[#allocation51_spill] sm:$0xff] %v5068_v20  ;;  %v5091_v61 = vmax.f32 %v579_v45, 0.0  ;;  %v564_v1 = vadd.f32 %v4657_v35, %v530_v5  ;;  %v5098_v7 = vsel %vm1485_vm0, %v7254_v34, %v1477_v2  ;;  %v5113_v5 = vsel %vm5038_vm3, 1.0, %v7227_v56 }
  0xec   : > { %7251 = vst [vmem:[#allocation52_spill] sm:$0xff] %v5081_v48  ;;  %v646_v34 = vadd.s32 200, %v4662_v42  ;;  %v5136_v11 = vmul.f32 %v5035_v50, %v5098_v7 }
  0xed   : > { %7252 = vst [vmem:[#allocation53_spill] sm:$0xff] %v5089_v8  ;;  %v5121_v41 = vmax.f32 %v564_v1, 0.0  ;;  %v734_v1 = vand.u32 15, %v632_v44  ;;  %v7264_v24 = vrot.slane %v5091_v61, 7  ;;  %v7266_v45 = vrot.slane %v5091_v61, 1 }
  0xee   : > { %7253 = vst [vmem:[#allocation54_spill] sm:$0xff] %v5091_v61  ;;  %v500_v20 = vpop.f32.mrf.mxu2  ;;  %v832_v3 = vand.u32 15, %v646_v34  ;;  %v648_v34 = vadd.s32 216, %v4662_v42 }
  0xef   : > { %7255 = vst [vmem:[#allocation55_spill] sm:$0xff] %v5098_v7  ;;  %v1560_v10 = vrot.slane %v5121_v41, 1  ;;  %v546_v12 = vmul.f32 %v4651_v32, %v500_v20  ;;  %v5147_v58 = vsel %vm1485_vm0, %v1477_v2, %v7264_v24  ;;  %v5155_v29 = vsel %vm1582_vm1, %v1574_v38, %v7266_v45  ;;  %v4358_v24 = vld [vmem:[%s6962_s3 + $0xf0] sm:$0xff] }
  0xf0   : > { %7259 = vst [vmem:[#allocation56_spill] sm:$0xff] %v5117_v28  ;;  %v462_v50 = vpop.f32.mrf.mxu0  ;;  %v5159_v20 = vmul.f32 %v5128_v33, %v5104_v6  ;;  %v7269_v44 = vrot.slane %v5121_v41, 7  ;;  %vm5185_vm10 = vcmp.lt.s32.totalorder %v734_v1, 15  ;;  %4504 = vmatpush.bf16.msra.mxu3 %v4358_v24  ;;  %2176 = vmatpush.bf16.msra.mxu1 %v4358_v24  ;;  %v5203_v1 = vsel %vm5070_vm6, 1.0, %v7227_v56 }
  0xf1   : > { %7263 = vst [vmem:[#allocation58_spill] sm:$0xff] %v5136_v11  ;;  %v580_v28 = vadd.f32 %v4657_v35, %v546_v12  ;;  %v531_v2 = vmul.f32 %v4651_v32, %v462_v50  ;;  %v5174_v38 = vsel %vm1582_vm1, %v1559_v57, %v1560_v10  ;;  %v5179_v12 = vsel %vm5052_vm4, 1.0, %v7227_v56 }
  0xf2   : > { %7265 = vst [vmem:[#allocation59_spill] sm:$0xff] %v5147_v58  ;;  %v5170_v11 = vsel %vm1485_vm0, %v1462_v40, %v7269_v44  ;;  %v5183_v50 = vmul.f32 %v4971_v52, %v5174_v38  ;;  %v5192_v40 = vsel %vm5058_vm5, 1.0, %v7227_v56  ;;  %v5231_v26 = vsel %vm5185_vm10, 1.0, %v7227_v56 }
  0xf3   : > { %7267 = vst [vmem:[#allocation60_spill] sm:$0xff] %v5155_v29  ;;  %v5194_v57 = vmax.f32 %v580_v28, 0.0  ;;  %v565_v45 = vadd.f32 %v4657_v35, %v531_v2  ;;  %v5213_v28 = vsel %vm5130_vm9, 1.0, %v7227_v56  ;;  %v5219_v2 = vmul.f32 %v5113_v5, %v5174_v38 }
  0xf4   : > { %7268 = vst [vmem:[#allocation61_spill] sm:$0xff] %v5159_v20  ;;  %vm5233_vm11 = vcmp.lt.s32.totalorder %v832_v3, 15  ;;  %4505 = vmatpush.bf16.msra.mxu3 %v4357_v13  ;;  %2177 = vmatpush.bf16.msra.mxu1 %v4357_v13  ;;  %v5261_v51 = vmul.f32 %v5022_v4, %v5170_v11  ;;  %v846_v44 = vand.u32 15, %v648_v34 }
  0xf5   : > { %7270 = vst [vmem:[#allocation62_spill] sm:$0xff] %v5183_v50  ;;  %v5223_v24 = vmax.f32 %v565_v45, 0.0  ;;  %v5239_v50 = vmul.f32 %v4727_v22, %v4861_v63  ;;  %v1479_v45 = vrot.slane %v5194_v57, 7  ;;  %v1576_v55 = vrot.slane %v5194_v57, 1  ;;  %v4334_v63 = vld [vmem:[%s6962_s3 + $0x30] sm:$0xff] }
  0xf6   : > { %7273 = vst [vmem:[#allocation63_spill] sm:$0xff] %v5192_v40  ;;  %v502_v53 = vpop.f32.mrf.mxu2  ;;  %v634_v22 = vadd.s32 104, %v4662_v42  ;;  %2587 = vmatpush.bf16.msrb.mxu0 %v4334_v63  ;;  %v5283_v58 = vsel %vm5233_vm11, 1.0, %v7227_v56  ;;  %v7286_v63 = vrot.slane %v5121_v41, 7  ;;  %vm5339_vm12 = vcmp.lt.s32.totalorder %v846_v44, 15 }
  0xf7   : > { %7274 = vst [vmem:[#allocation64_spill] sm:$0xff] %v5194_v57  ;;  %v547_v3 = vmul.f32 %v4651_v32, %v502_v53  ;;  %v5250_v14 = vpack.c.bf16 %v5223_v24, %v5121_v41  ;;  %v5256_v57 = vadd.s32 112, %v4662_v42  ;;  %v5265_v53 = vmul.f32 %v5179_v12, %v5170_v11  ;;  %v4333_v41 = vld [vmem:[%s6962_s3 + $0x28] sm:$0xff] }
  0xf8   : > { %7275 = vst [vmem:[#allocation65_spill] sm:$0xff] %v5203_v1  ;;  %v465_v20 = vpop.f32.mrf.mxu0  ;;  %v7283_v43 = vrot.slane %v5223_v24, 1  ;;  %4506 = vmatpush.bf16.msra.mxu3 %v4356_v16  ;;  %2178 = vmatpush.bf16.msra.mxu1 %v4356_v16  ;;  %v748_v34 = vand.u32 15, %v634_v22 }
  0xf9   : > { %7276 = vst [vmem:[#allocation66_spill] sm:$0xff] %v5219_v2  ;;  %v1464_v2 = vrot.slane %v5223_v24, 7  ;;  %v581_v59 = vadd.f32 %v4657_v35, %v547_v3  ;;  %v532_v13 = vmul.f32 %v4651_v32, %v465_v20  ;;  %2292 = vmatmul.bf16.gmra.mxu2 %v5250_v14  ;;  %v7285_v20 = vrot.slane %v5091_v61, 7 }
  0xfa   : > { %7279 = vst [vmem:[#allocation67_spill] sm:$0xff] %v5239_v50  ;;  %v5278_v60 = vsel %vm1582_vm1, %v1560_v10, %v7283_v43  ;;  %v7288_v43 = vrot.slane %v5091_v61, 1  ;;  %2588 = vmatpush.bf16.msrb.mxu0 %v4333_v41  ;;  %v5366_v50 = vmul.f32 %v4819_v17, %v5008_v37  ;;  %vm5401_vm13 = vcmp.lt.s32.totalorder %v748_v34, 15 }
  0xfb   : > { %7280 = vst [vmem:[#allocation68_spill] sm:$0xff] %v5250_v14  ;;  %v5289_v3 = vsel %vm1485_vm0, %v7285_v20, %v1479_v45  ;;  %v5295_v14 = vsel %vm1485_vm0, %v7286_v63, %v1464_v2  ;;  %v5303_v25 = vmax.f32 %v581_v59, 0.0  ;;  %v566_v7 = vadd.f32 %v4657_v35, %v532_v13  ;;  %v4355_v63 = vld [vmem:[%s6962_s3 + $0xd8] sm:$0xff] }
  0xfc   : > { %7281 = vst [vmem:[#allocation69_spill] sm:$0xff] %v5261_v51  ;;  %v5301_v10 = vsel %vm1582_vm1, %v7288_v43, %v1576_v55  ;;  %v5314_v43 = vadd.s32 240, %v4662_v42  ;;  %v5333_v22 = vmul.f32 %v5203_v1, %v5289_v3  ;;  %4507 = vmatpush.bf16.msra.mxu3 %v4355_v63  ;;  %v4332_v51 = vld [vmem:[%s6962_s3 + $0x20] sm:$0xff]  ;;  %2179 = vmatpush.bf16.msra.mxu1 %v4355_v63  ;;  %v650_v34 = vadd.s32 232, %v4662_v42 }
  0xfd   : > { %7282 = vst [vmem:[#allocation70_spill] sm:$0xff] %v5265_v53  ;;  %v5318_v59 = vmul.f32 %v5128_v33, %v5301_v10  ;;  %v5322_v13 = vmul.f32 %v5283_v58, %v5301_v10  ;;  %v5325_v61 = vmax.f32 %v566_v7, 0.0  ;;  %v1480_v20 = vrot.slane %v5303_v25, 7 }
  0xfe   : > { %7284 = vst [vmem:[#allocation71_spill] sm:$0xff] %v5278_v60  ;;  %v505_v53 = vpop.f32.mrf.mxu2  ;;  %v7297_v33 = vrot.slane %v5303_v25, 1  ;;  %2589 = vmatpush.bf16.msrb.mxu0 %v4332_v51  ;;  %v5409_v7 = vmul.f32 %v4732_v27, %v5004_v39  ;;  %v4353_v39 = vld [vmem:[%s6962_s3 + $0xc8] sm:$0xff] }
  0xff   : > { %7287 = vst [vmem:[#allocation72_spill] sm:$0xff] %v5295_v14  ;;  %v548_v1 = vmul.f32 %v4651_v32, %v505_v53  ;;  %v5353_v44 = vsel %vm1485_vm0, %v1479_v45, %v1480_v20  ;;  %v7299_v41 = vrot.slane %v5325_v61, 7 }
 0x100   : > { %7289 = vst [vmem:[#allocation73_spill] sm:$0xff] %v5301_v10  ;;  %v1562_v10 = vrot.slane %v5325_v61, 1  ;;  %v467_v16 = vpop.f32.mrf.mxu0  ;;  %v5362_v53 = vsel %vm1582_vm1, %v1576_v55, %v7297_v33  ;;  %v7300_v33 = vrot.slane %v5223_v24, 1 }
 0x101   : > { %7290 = vst [vmem:[#allocation74_spill] sm:$0xff] %v5303_v25  ;;  %v582_v63 = vadd.f32 %v4657_v35, %v548_v1  ;;  %v533_v45 = vmul.f32 %v4651_v32, %v467_v16  ;;  %v5393_v16 = vsel %vm5339_vm12, 1.0, %v7227_v56 }
 0x102   : > { %7291 = vst [vmem:[#allocation75_spill] sm:$0xff] %v5318_v59  ;;  %v5377_v59 = vsel %vm1485_vm0, %v1464_v2, %v7299_v41  ;;  %v1602_v37 = vsel %vm1582_vm1, %v7300_v33, %v1562_v10  ;;  %v4331_v41 = vld [vmem:[%s6962_s3 + $0x18] sm:$0xff] }
 0x103   : > { %7292 = vst [vmem:[#allocation76_spill] sm:$0xff] %v5322_v13  ;;  %v4354_v13 = vld [vmem:[%s6962_s3 + $0xd0] sm:$0xff]  ;;  %v5385_v55 = vmul.f32 %v5113_v5, %v1602_v37  ;;  %v5388_v51 = vmul.f32 %v5231_v26, %v1602_v37  ;;  %v5395_v2 = vmax.f32 %v582_v63, 0.0  ;;  %v567_v24 = vadd.f32 %v4657_v35, %v533_v45  ;;  %2590 = vmatpush.bf16.msrb.mxu0 %v4331_v41 }
 0x104   : > { %7293 = vst [vmem:[#allocation77_spill] sm:$0xff] %v5333_v22  ;;  %4508 = vmatpush.bf16.msra.mxu3 %v4354_v13  ;;  %2180 = vmatpush.bf16.msra.mxu1 %v4354_v13  ;;  %v5413_v63 = vmul.f32 %v5179_v12, %v5377_v59  ;;  %v5421_v13 = vmul.f32 %v4853_v46, %v5174_v38 }
 0x105   : > { %7296 = vst [vmem:[#allocation78_spill] sm:$0xff] %v5353_v44  ;;  %v1481_v1 = vrot.slane %v5395_v2, 7  ;;  %v5425_v27 = vmax.f32 %v567_v24, 0.0  ;;  %v5437_v38 = vmul.f32 %v4869_v0, %v5170_v11  ;;  %v5440_v24 = vmul.f32 %v4971_v52, %v1602_v37  ;;  %v4330_v11 = vld [vmem:[%s6962_s3 + $0x10] sm:$0xff] }
 0x106   : > { %7298 = vst [vmem:[#allocation79_spill] sm:$0xff] %v5366_v50  ;;  %v507_v22 = vpop.f32.mrf.mxu2  ;;  %v5464_v37 = vmul.f32 %v5208_v62, %v5377_v59 }
 0x107   : > { %7301 = vst [vmem:[#allocation80_spill] sm:$0xff] %v5385_v55  ;;  %v1563_v41 = vrot.slane %v5425_v27, 1  ;;  %v549_v50 = vmul.f32 %v4651_v32, %v507_v22  ;;  %v5446_v45 = vpack.c.bf16 %v5425_v27, %v5325_v61  ;;  %v5456_v0 = vsel %vm1485_vm0, %v1480_v20, %v1481_v1  ;;  %2591 = vmatpush.bf16.msrb.mxu0 %v4330_v11 }
 0x108   : > { %7302 = vst [vmem:[#allocation81_spill] sm:$0xff] %v5388_v51  ;;  %4509 = vmatpush.bf16.msra.mxu3 %v4353_v39  ;;  %2181 = vmatpush.bf16.msra.mxu1 %v4353_v39  ;;  %v470_v52 = vpop.f32.mrf.mxu0  ;;  %v1466_v22 = vrot.slane %v5425_v27, 7  ;;  %v7318_v20 = vrot.slane %v5303_v25, 1 }
 0x109   : > { %7303 = vst [vmem:[#allocation82_spill] sm:$0xff] %v5395_v2  ;;  %v534_v27 = vmul.f32 %v4651_v32, %v470_v52  ;;  %2297 = vmatmul.bf16.gmra.mxu2 %v5446_v45  ;;  %v5483_v51 = vsel %vm1582_vm1, %v1562_v10, %v1563_v41  ;;  %v860_v10 = vand.u32 15, %v650_v34  ;;  %v7325_v34 = vand.u32 15, %v5256_v57 }
 0x10a   : > { %7306 = vst [vmem:[#allocation83_spill] sm:$0xff] %v5409_v7  ;;  %v7312_v7 = vand.u32 15, %v4741_v31  ;;  %v5468_v31 = vmul.f32 %v5213_v28, %v5456_v0  ;;  %v7328_v57 = vand.u32 15, %v5314_v43 }
 0x10b   : > { %7307 = vst [vmem:[#allocation84_spill] sm:$0xff] %v5413_v63  ;;  %v568_v11 = vadd.f32 %v4657_v35, %v534_v27  ;;  %vm5516_vm15 = vcmp.gt.s32.totalorder %v7325_v34, 0  ;;  %v4375_v27 = vld [vmem:[%s6962_s3 + $0x178] sm:$0xff]  ;;  %vm5547_vm3 = vcmp.lt.s32.totalorder %v860_v10, 15 }
 0x10c   : > { %7308 = vst [vmem:[#allocation85_spill] sm:$0xff] %v5421_v13  ;;  %vm5450_vm14 = vcmp.gt.s32.totalorder %v7312_v7, 0  ;;  %v7317_v7 = vrot.slane %v5395_v2, 1  ;;  %v583_v13 = vadd.f32 %v4657_v35, %v549_v50  ;;  %vm5532_vm2 = vcmp.gt.s32.totalorder %v7328_v57, 0 }
 0x10d   : > { %7309 = vst [vmem:[#allocation86_spill] sm:$0xff] %v5437_v38  ;;  %v5527_v38 = vmax.f32 %v568_v11, 0.0  ;;  %v5545_v11 = vsel %vm5401_vm13, 1.0, %v7227_v56  ;;  %v5557_v57 = vmul.f32 %v4833_v21, %v4828_v19 }
 0x10e   : > { %7310 = vst [vmem:[#allocation87_spill] sm:$0xff] %v5440_v24  ;;  %v5476_v39 = vsel %vm1582_vm1, %v7318_v20, %v7317_v7  ;;  %v4352_v7 = vld [vmem:[%s6962_s3 + $0xc0] sm:$0xff]  ;;  %v7321_v20 = vrot.slane %v5325_v61, 7  ;;  %v5504_v8 = vmax.f32 %v583_v13, 0.0  ;;  %v510_v17 = vpop.f32.mrf.mxu2 }
 0x10f   : > { %7311 = vst [vmem:[#allocation88_spill] sm:$0xff] %v5446_v45  ;;  %v5487_v55 = vmul.f32 %v5283_v58, %v5476_v39  ;;  %v5500_v52 = vmul.f32 %v5393_v16, %v5476_v39  ;;  %4510 = vmatpush.bf16.msra.mxu3 %v4352_v7  ;;  %2182 = vmatpush.bf16.msra.mxu1 %v4352_v7  ;;  %v4328_v61 = vld [vmem:[%s6962_s3] sm:$0xff]  ;;  %v1467_v13 = vrot.slane %v5527_v38, 7  ;;  %v1564_v24 = vrot.slane %v5527_v38, 1 }
 0x110   : > { %7315 = vst [vmem:[#allocation89_spill] sm:$0xff] %v5464_v37  ;;  %v5496_v50 = vsel %vm1485_vm0, %v7321_v20, %v1466_v22  ;;  %v4329_v20 = vld [vmem:[%s6962_s3 + $0x8] sm:$0xff]  ;;  %v1579_v54 = vrot.slane %v5504_v8, 1  ;;  %v1482_v7 = vrot.slane %v5504_v8, 7  ;;  %v550_v33 = vmul.f32 %v4651_v32, %v510_v17 }
 0x111   : > { %7316 = vst [vmem:[#allocation90_spill] sm:$0xff] %v5468_v31  ;;  %2592 = vmatpush.bf16.msrb.mxu0 %v4329_v20  ;;  %v5553_v20 = vmul.f32 %v5022_v4, %v5377_v59  ;;  %v7336_v59 = vrot.slane %v5395_v2, 1  ;;  %v5578_v17 = vmul.f32 %v5192_v40, %v4952_v49  ;;  %v1503_v4 = vsel %vm1485_vm0, %v1466_v22, %v1467_v13  ;;  %v4342_v2 = vld [vmem:[%s6962_s3 + $0x70] sm:$0xff] }
 0x112   : > { %7319 = vst [vmem:[#allocation91_spill] sm:$0xff] %v5483_v51  ;;  %v5564_v10 = vsel %vm1485_vm0, %v1481_v1, %v1482_v7  ;;  %v584_v1 = vadd.f32 %v4657_v35, %v550_v33  ;;  %v1600_v19 = vsel %vm1582_vm1, %v1563_v41, %v1564_v24  ;;  %v5594_v49 = vsel %vm5516_vm15, 1.0, %v7227_v56 }
 0x113   : > { %7320 = vst [vmem:[#allocation92_spill] sm:$0xff] %v5487_v55  ;;  %2353 = vmatpush.bf16.msrb.mxu3 %v4375_v27  ;;  %v5597_v33 = vmul.f32 %v5231_v26, %v1600_v19  ;;  %v5614_v45 = vsel %vm5532_vm2, 1.0, %v7227_v56  ;;  %v5619_v55 = vsel %vm5547_vm3, 1.0, %v7227_v56  ;;  %v5637_v60 = vmul.f32 %v5208_v62, %v1503_v4 }
 0x114   : > { %7322 = vst [vmem:[#allocation93_spill] sm:$0xff] %v5496_v50  ;;  %v5602_v22 = vmax.f32 %v584_v1, 0.0  ;;  %v4343_v1 = vld [vmem:[%s6962_s3 + $0x78] sm:$0xff] }
 0x115   : > { %7323 = vst [vmem:[#allocation94_spill] sm:$0xff] %v5500_v52  ;;  %v472_v52 = vpop.f32.mrf.mxu0  ;;  %2593 = vmatpush.bf16.msrb.mxu0 %v4328_v61  ;;  %v7340_v61 = vand.u32 15, %v4738_v30  ;;  %2675 = vmatpush.bf16.msrb.mxu1 %v4343_v1  ;;  %v5640_v30 = vmul.f32 %v5113_v5, %v1600_v19  ;;  %v5656_v1 = vmul.f32 %v5594_v49, %v1503_v4 }
 0x116   : > { %7324 = vst [vmem:[#allocation95_spill] sm:$0xff] %v5504_v8  ;;  %v535_v27 = vmul.f32 %v4651_v32, %v472_v52  ;;  %v5600_v52 = vmul.f32 %v5545_v11, %v1600_v19  ;;  %v1483_v43 = vrot.slane %v5602_v22, 7  ;;  %v512_v37 = vpop.f32.mrf.mxu2  ;;  %v4374_v8 = vld [vmem:[%s6962_s3 + $0x170] sm:$0xff] }
 0x117   : > { %7333 = vst [vmem:[#allocation96_spill] sm:$0xff] %v5553_v20  ;;  %vm5607_vm4 = vcmp.gt.s32.totalorder %v7340_v61, 0  ;;  %v5632_v61 = vmul.f32 %v4814_v15, %v4948_v36  ;;  %v1580_v20 = vrot.slane %v5602_v22, 1  ;;  %2354 = vmatpush.bf16.msrb.mxu3 %v4374_v8 }
 0x118   : > { %7334 = vst [vmem:[#allocation97_spill] sm:$0xff] %v5557_v57  ;;  %v5572_v57 = vsel %vm1582_vm1, %v7336_v59, %v1579_v54  ;;  %v5589_v59 = vsel %vm5450_vm14, 1.0, %v7227_v56  ;;  %v569_v41 = vadd.f32 %v4657_v35, %v535_v27  ;;  %v5643_v27 = vmul.f32 %v5179_v12, %v1503_v4 }
 0x119   : > { %7335 = vst [vmem:[#allocation98_spill] sm:$0xff] %v5564_v10  ;;  %v5660_v5 = vsel %vm1485_vm0, %v1482_v7, %v1483_v43  ;;  %v5664_v34 = vsel %vm1582_vm1, %v1579_v54, %v1580_v20  ;;  %2676 = vmatpush.bf16.msrb.mxu1 %v4342_v2 }
 0x11a   : > { %7337 = vst [vmem:[#allocation99_spill] sm:$0xff] %v5578_v17  ;;  %v601_v31 = vmax.f32 %v569_v41, 0.0  ;;  %v5649_v17 = vmul.f32 %v4838_v23, %v5104_v6  ;;  %v551_v41 = vmul.f32 %v4651_v32, %v512_v37  ;;  %v7352_v6 = vld [vmem:[#allocation55_spill] sm:$0xff]  ;;  %v5687_v7 = vmul.f32 %v5619_v55, %v5664_v34 }
 0x11b   : > { %7338 = vst [vmem:[#allocation100_spill] sm:$0xff] %v5597_v33  ;;  %v5716_v33 = vsel %vm5607_vm4, 1.0, %v7227_v56 }
 0x11c   : > { %7339 = vst [vmem:[#allocation101_spill] sm:$0xff] %v5600_v52  ;;  %v1565_v47 = vrot.slane %v601_v31, 1  ;;  %v5653_v52 = vpack.c.bf16 %v601_v31, %v5527_v38  ;;  %v1468_v12 = vrot.slane %v601_v31, 7  ;;  %v585_v38 = vadd.f32 %v4657_v35, %v551_v41  ;;  %v7366_v41 = vld [vmem:[#allocation9_spill] sm:$0xff] }
 0x11d   : > { %7343 = vst [vmem:[#allocation102_spill] sm:$0xff] %v5614_v45  ;;  %v475_v19 = vpop.f32.mrf.mxu0  ;;  %v5679_v31 = vmul.f32 %v5393_v16, %v5664_v34  ;;  %v7377_v14 = vrot.slane %v7366_v41, 7 }
 0x11e   : > { %7344 = vst [vmem:[#allocation103_spill] sm:$0xff] %v5619_v55  ;;  %v536_v37 = vmul.f32 %v4651_v32, %v475_v19  ;;  %2302 = vmatmul.bf16.gmra.mxu2 %v5653_v52  ;;  %v5675_v4 = vsel %vm1582_vm1, %v1564_v24, %v1565_v47  ;;  %v5683_v54 = vsel %vm1485_vm0, %v1467_v13, %v1468_v12  ;;  %v617_v24 = vmax.f32 %v585_v38, 0.0  ;;  %v515_v19 = vpop.f32.mrf.mxu2  ;;  %v4522_v13 = vld [vmem:[%s6961_s2] ss:$0 sm:$0xff] }
 0x11f   : > { %7345 = vst [vmem:[#allocation104_spill] sm:$0xff] %v5632_v61  ;;  %v5668_v61 = vmul.f32 %v5589_v59, %v7352_v6 }
 0x120   : > { %7346 = vst [vmem:[#allocation105_spill] sm:$0xff] %v5637_v60  ;;  %v570_v23 = vadd.f32 %v4657_v35, %v536_v37  ;;  %v5704_v51 = vrot.slane %v617_v24, 7  ;;  %v5706_v38 = vrot.slane %v617_v24, 1  ;;  %v5711_v37 = vpack.c.bf16 %v617_v24, %v5602_v22 }
 0x121   : > { %7347 = vst [vmem:[#allocation106_spill] sm:$0xff] %v5640_v30  ;;  %v5723_v30 = vmul.f32 %v5213_v28, %v5660_v5 }
 0x122   : > { %7348 = vst [vmem:[#allocation107_spill] sm:$0xff] %v5643_v27  ;;  %v5708_v35 = vmax.f32 %v570_v23, 0.0  ;;  %v5727_v23 = vmul.f32 %v5614_v45, %v5660_v5  ;;  %v5748_v46 = vsel %vm1582_vm1, %v1580_v20, %v5706_v38 }
 0x123   : > { %7349 = vst [vmem:[#allocation108_spill] sm:$0xff] %v5649_v17 }
 0x124   : > { %7350 = vst [vmem:[#allocation109_spill] sm:$0xff] %v5653_v52  ;;  %v1469_v24 = vrot.slane %v5708_v35, 7  ;;  %v552_v52 = vmul.f32 %v4522_v13, %v515_v19  ;;  %v652_v19 = vadd.s32 248, %v4662_v42 }
 0x125   : > { %7351 = vst [vmem:[#allocation110_spill] sm:$0xff] %v5656_v1  ;;  %v477_v17 = vpop.f32.mrf.mxu0 }
 0x126   : > { %7353 = vst [vmem:[#allocation55_spill] sm:$0xff] %v5668_v61  ;;  %v5739_v61 = vsel %vm1485_vm0, %v1483_v43, %v5704_v51  ;;  %v4523_v43 = vld [vmem:[%s6961_s2 + $0x1] ss:$0 sm:$0xff]  ;;  %v1501_v8 = vsel %vm1485_vm0, %v1468_v12, %v1469_v24  ;;  %v7370_v12 = vld [vmem:[#allocation3_spill] sm:$0xff]  ;;  %v517_v25 = vpop.f32.mrf.mxu2 }
 0x127   : > { %7354 = vst [vmem:[#allocation111_spill] sm:$0xff] %v5679_v31  ;;  %v586_v27 = vadd.f32 %v4523_v43, %v552_v52  ;;  %v537_v31 = vmul.f32 %v4522_v13, %v477_v17  ;;  %v5762_v20 = vmul.f32 %v5716_v33, %v1501_v8  ;;  %v5773_v60 = vrot.slane %v7370_v12, 1 }
 0x128   : > { %7355 = vst [vmem:[#allocation112_spill] sm:$0xff] %v5683_v54  ;;  %v7372_v54 = vld [vmem:[#allocation73_spill] sm:$0xff] }
 0x129   : > { %7356 = vst [vmem:[#allocation113_spill] sm:$0xff] %v5687_v7  ;;  %v7365_v7 = vrot.slane %v5708_v35, 1  ;;  %v5770_v17 = vmax.f32 %v586_v27, 0.0  ;;  %v571_v52 = vadd.f32 %v4523_v43, %v537_v31  ;;  %v874_v31 = vand.u32 15, %v652_v19 }
 0x12a   : > { %7359 = vst [vmem:[#allocation114_spill] sm:$0xff] %v5711_v37  ;;  %v5802_v19 = vmul.f32 %v5208_v62, %v1501_v8 }
 0x12b   : > { %7360 = vst [vmem:[#allocation115_spill] sm:$0xff] %v5716_v33  ;;  %v1598_v22 = vsel %vm1582_vm1, %v1565_v47, %v7365_v7  ;;  %v7375_v7 = vld [vmem:[#allocation8_spill] sm:$0xff]  ;;  %v5788_v12 = vmul.f32 0.0, %v5770_v17  ;;  %v7382_v62 = vrot.slane %v5770_v17, 1  ;;  %vm5829_vm5 = vcmp.lt.s32.totalorder %v874_v31, 15 }
 0x12c   : > { %7361 = vst [vmem:[#allocation116_spill] sm:$0xff] %v5723_v30  ;;  %v5765_v1 = vmul.f32 %v5545_v11, %v1598_v22  ;;  %v5768_v37 = vmul.f32 %v4833_v21, %v1598_v22  ;;  %v7373_v30 = vld [vmem:[#allocation40_spill] sm:$0xff]  ;;  %v5799_v63 = vmul.f32 %v5231_v26, %v1598_v22 }
 0x12d   : > { %7362 = vst [vmem:[#allocation117_spill] sm:$0xff] %v5727_v23  ;;  %v5777_v47 = vmul.f32 %v7373_v30, %v7372_v54  ;;  %v1471_v23 = vrot.slane %v7375_v7, 7  ;;  %v603_v30 = vmax.f32 %v571_v52, 0.0  ;;  %v1773_v54 = vrot.slane %v5770_v17, 7 }
 0x12e   : > { %7363 = vst [vmem:[#allocation118_spill] sm:$0xff] %v5739_v61  ;;  %v5821_v2 = vsel %vm1582_vm1, %v5706_v38, %v7382_v62 }
 0x12f   : > { %7364 = vst [vmem:[#allocation119_spill] sm:$0xff] %v5748_v46  ;;  %v5796_v48 = vsel %vm1485_vm0, %v1471_v23, %v7377_v14  ;;  %v1470_v52 = vrot.slane %v603_v30, 7  ;;  %v1567_v50 = vrot.slane %v603_v30, 1  ;;  %v5810_v32 = vpack.c.bf16 %v603_v30, %v5708_v35 }
 0x130   : > { %7367 = vst [vmem:[#allocation9_spill] sm:$0xff] %v5765_v1  ;;  %v5807_v1 = vmul.f32 %v5594_v49, %v1501_v8  ;;  %v1453_v14 = vrot.slane %v5788_v12, 7  ;;  %v1776_v26 = vsel %vm1485_vm0, %v5704_v51, %v1773_v54 }
 0x131   : > { %7368 = vst [vmem:[#allocation120_spill] sm:$0xff] %v5768_v37  ;;  %v553_v37 = vmul.f32 %v4522_v13, %v517_v25  ;;  %v1550_v25 = vrot.slane %v5788_v12, 1  ;;  %v1499_v22 = vsel %vm1485_vm0, %v1470_v52, %v1471_v23  ;;  %v5827_v8 = vmul.f32 %v5213_v28, %v1776_v26  ;;  %2307 = vmatmul.bf16.gmra.mxu2 %v5810_v32 }
 0x132   : > { %7369 = vst [vmem:[#allocation121_spill] sm:$0xff] %v5770_v17  ;;  %v1823_v27 = vmul.f32 %v5716_v33, %v1499_v22  ;;  %v1517_v62 = vsel %vm1485_vm0, %v5704_v51, %v1453_v14  ;;  %v5843_v23 = vmul.f32 %v4814_v15, %v1499_v22  ;;  %v7390_v33 = vrot.slane %v5708_v35, 1  ;;  %v4373_v35 = vld [vmem:[%s6962_s3 + $0x168] sm:$0xff] }
 0x133   : > { %7371 = vst [vmem:[#allocation122_spill] sm:$0xff] %v5773_v60  ;;  %v587_v13 = vadd.f32 %v4523_v43, %v553_v37  ;;  %v5840_v37 = vsel %vm1485_vm0, %v1469_v24, %v1470_v52  ;;  %v5848_v43 = vmul.f32 %v5614_v45, %v1776_v26  ;;  %v7389_v52 = vrot.slane %v7375_v7, 1  ;;  %2355 = vmatpush.bf16.msrb.mxu3 %v4373_v35 }
 0x134   : > { %7374 = vst [vmem:[#allocation73_spill] sm:$0xff] %v5777_v47  ;;  %v1959_v51 = vpack.c.bf16 %v5796_v48, %v1823_v27  ;;  %v5865_v26 = vsel %vm1582_vm1, %v7390_v33, %v1567_v50  ;;  %v7393_v27 = vld [vmem:[#allocation11_spill] sm:$0xff] }
 0x135   : > { %7376 = vst [vmem:[#allocation40_spill] sm:$0xff] %v5788_v12  ;;  %v5845_v28 = vmax.f32 %v587_v13, 0.0  ;;  %v1596_v13 = vsel %vm1582_vm1, %v1567_v50, %v7389_v52  ;;  %v1518_v45 = vmul.f32 %v7393_v27, %v1517_v62  ;;  %v5889_v52 = vmul.f32 %v5619_v55, %v5821_v2 }
 0x136   : > { %7378 = vst [vmem:[#allocation8_spill] sm:$0xff] %v5796_v48  ;;  %2223 = vmatmul.bf16.vlgmr.msra.gmra.mxu3 %v1959_v51  ;;  %v5882_v50 = vmul.f32 %v4833_v21, %v1596_v13  ;;  %v5885_v33 = vmul.f32 %v5192_v40, %v1596_v13  ;;  %v1614_v62 = vsel %vm1582_vm1, %v5706_v38, %v1550_v25 }
 0x137   : > { %7379 = vst [vmem:[#allocation123_spill] sm:$0xff] %v5799_v63  ;;  %v5868_v31 = vmul.f32 0.0, %v5845_v28  ;;  %v5871_v47 = vrot.slane %v5845_v28, 7  ;;  %v5876_v24 = vpack.c.bf16 %v5845_v28, %v5770_v17  ;;  %v7396_v17 = vld [vmem:[#allocation6_spill] sm:$0xff] }
 0x138   : > { %7380 = vst [vmem:[#allocation124_spill] sm:$0xff] %v5802_v19  ;;  %v7466_v19 = vpack.c.bf16 %v5840_v37, %v5807_v1 }
 0x139   : > { %7381 = vst [vmem:[#allocation125_spill] sm:$0xff] %v5810_v32  ;;  %v1806_v51 = vsel %vm1485_vm0, %v5871_v47, %v7396_v17  ;;  %v5902_v21 = vsel %vm1485_vm0, %v1773_v54, %v5871_v47  ;;  %v1551_v29 = vrot.slane %v5868_v31, 1 }
 0x13a   : > { %7383 = vst [vmem:[#allocation126_spill] sm:$0xff] %v5827_v8  ;;  %v1807_v55 = vmul.f32 %v7393_v27, %v1806_v51  ;;  %v7398_v51 = vld [vmem:[#allocation7_spill] sm:$0xff]  ;;  %v7400_v8 = vld [vmem:[#allocation20_spill] sm:$0xff] }
 0x13b   : > { %7386 = vst [vmem:[#allocation127_spill] sm:$0xff] %v5840_v37  ;;  %v1612_v27 = vsel %vm1582_vm1, %v1551_v29, %v5773_v60  ;;  %v5922_v35 = vsel %vm1582_vm1, %v1550_v25, %v1551_v29  ;;  %v5945_v25 = vsel %vm5829_vm5, 1.0, %v7227_v56  ;;  %v5962_v56 = vmul.f32 %v5594_v49, %v1499_v22 }
 0x13c   : > { %7387 = vst [vmem:[#allocation128_spill] sm:$0xff] %v5843_v23  ;;  %v1935_v32 = vpack.c.bf16 %v7398_v51, %v1807_v55  ;;  %v5927_v12 = vmul.f32 %v7400_v8, %v1612_v27  ;;  %v5959_v27 = vmul.f32 %v5545_v11, %v1596_v13  ;;  %v7410_v29 = vrot.slane %v7366_v41, 7  ;;  %v7412_v13 = vld [vmem:[#allocation48_spill] sm:$0xff]  ;;  %v7418_v11 = vld [vmem:[#allocation19_spill] sm:$0xff] }
 0x13d   : > { %7388 = vst [vmem:[#allocation129_spill] sm:$0xff] %v5845_v28  ;;  %v1454_v28 = vrot.slane %v5868_v31, 7  ;;  %v5980_v49 = vmul.f32 %v7412_v13, %v5456_v0  ;;  %v5984_v22 = vpack.c.bf16 %v7366_v41, %v7375_v7  ;;  %v6003_v7 = vpop.f32.mrf.mxu2 }
 0x13e   : > { %7391 = vst [vmem:[#allocation130_spill] sm:$0xff] %v5868_v31  ;;  %2183 = vmatmul.bf16.vlgmr.msra.gmra.mxu1 %v1935_v32  ;;  %v5952_v32 = vmul.f32 %v5945_v25, %v1614_v62 }
 0x13f   : > { %7392 = vst [vmem:[#allocation131_spill] sm:$0xff] %v5871_v47  ;;  %v1516_v23 = vsel %vm1485_vm0, %v1453_v14, %v1454_v28  ;;  %v1515_v54 = vsel %vm1485_vm0, %v1454_v28, %v7396_v17  ;;  %v7399_v47 = vld [vmem:[#allocation13_spill] sm:$0xff]  ;;  %v7401_v14 = vld [vmem:[#allocation14_spill] sm:$0xff] }
 0x140   : > { %7394 = vst [vmem:[#allocation11_spill] sm:$0xff] %v5876_v24  ;;  %v1647_v38 = vpack.c.bf16 %v1516_v23, %v1518_v45  ;;  %v1520_v40 = vmul.f32 %v7399_v47, %v1515_v54  ;;  %v1473_v31 = vrot.slane %v7401_v14, 7  ;;  %v4341_v45 = vld [vmem:[%s6962_s3 + $0x68] sm:$0xff] }
 0x141   : > { %7395 = vst [vmem:[#allocation132_spill] sm:$0xff] %v5889_v52  ;;  %v7403_v23 = vld [vmem:[#allocation31_spill] sm:$0xff]  ;;  %2677 = vmatpush.bf16.msrb.mxu1 %v4341_v45  ;;  %2312 = vmatmul.bf16.gmra.mxu2 %v5984_v22  ;;  %v7519_v52 = vld [vmem:[#allocation77_spill] sm:$0xff] }
 0x142   : > { %7397 = vst [vmem:[#allocation6_spill] sm:$0xff] %v5902_v21  ;;  %2594 = vmatmul.bf16.vlgmr.msrb.gmra.mxu0 %v1647_v38  ;;  %v1650_v55 = vpack.c.bf16 %v7398_v51, %v1520_v40  ;;  %v5949_v54 = vmul.f32 %v7403_v23, %v5289_v3  ;;  %v7408_v51 = vld [vmem:[#allocation57_spill] sm:$0xff]  ;;  %v5974_v40 = vsel %vm1485_vm0, %v7410_v29, %v1473_v31  ;;  %v4372_v29 = vld [vmem:[%s6962_s3 + $0x160] sm:$0xff] }
 0x143   : > { %7402 = vst [vmem:[#allocation7_spill] sm:$0xff] %v5945_v25  ;;  %v5968_v62 = vmul.f32 %v7408_v51, %v5476_v39  ;;  %v7414_v51 = vld [vmem:[#allocation24_spill] sm:$0xff]  ;;  %v1825_v41 = vmul.f32 %v4814_v15, %v5974_v40  ;;  %2356 = vmatpush.bf16.msrb.mxu3 %v4372_v29  ;;  %v7421_v29 = vld [vmem:[#allocation65_spill] sm:$0xff] }
 0x144   : > { %7404 = vst [vmem:[#allocation13_spill] sm:$0xff] %v5949_v54  ;;  %v7415_v30 = vrot.slane %v7414_v51, 7  ;;  %v7419_v39 = vld [vmem:[#allocation16_spill] sm:$0xff]  ;;  %v7488_v25 = vld [vmem:[#allocation45_spill] sm:$0xff] }
 0x145   : > { %7405 = vst [vmem:[#allocation20_spill] sm:$0xff] %v5952_v32  ;;  %v7420_v15 = vpack.c.bf16 %v7418_v11, %v7419_v39  ;;  %v6018_v28 = vpop.f32.mrf.mxu2 }
 0x146   : > { %7406 = vst [vmem:[#allocation14_spill] sm:$0xff] %v5959_v27  ;;  %v5996_v38 = vsel %vm1485_vm0, %v1473_v31, %v7415_v30  ;;  %v6011_v31 = vmul.f32 %v5283_v58, %v5664_v34  ;;  %v6029_v58 = vpack.c.bf16 %v7414_v51, %v7401_v14  ;;  %v6044_v14 = vmul.f32 %v5393_v16, %v5821_v2  ;;  %v7428_v16 = vld [vmem:[#allocation27_spill] sm:$0xff]  ;;  %v7429_v2 = vld [vmem:[#allocation38_spill] sm:$0xff] }
 0x147   : > { %7407 = vst [vmem:[#allocation31_spill] sm:$0xff] %v5962_v56  ;;  %v1962_v45 = vpack.c.bf16 %v5996_v38, %v1825_v41  ;;  %v6025_v41 = vmul.f32 %v7421_v29, %v5660_v5  ;;  %v4371_v5 = vld [vmem:[%s6962_s3 + $0x158] sm:$0xff]  ;;  %v6061_v30 = vpack.c.bf16 %v7429_v2, %v7428_v16  ;;  %v7430_v51 = vld [vmem:[#allocation59_spill] sm:$0xff] }
 0x148   : > { %7409 = vst [vmem:[#allocation57_spill] sm:$0xff] %v5968_v62  ;;  %2357 = vmatpush.bf16.msrb.mxu3 %v4371_v5  ;;  %v4339_v5 = vld [vmem:[%s6962_s3 + $0x58] sm:$0xff]  ;;  %v7434_v2 = vld [vmem:[#allocation35_spill] sm:$0xff] }
 0x149   : > { %7411 = vst [vmem:[#allocation133_spill] sm:$0xff] %v5974_v40  ;;  %2228 = vmatmul.bf16.gmra.mxu3 %v1962_v45  ;;  %v4340_v45 = vld [vmem:[%s6962_s3 + $0x60] sm:$0xff] }
 0x14a   : > { %7413 = vst [vmem:[#allocation48_spill] sm:$0xff] %v5980_v49  ;;  %2678 = vmatpush.bf16.msrb.mxu1 %v4340_v45  ;;  %v7424_v45 = vld [vmem:[#allocation34_spill] sm:$0xff] }
 0x14b   : > { %7416 = vst [vmem:[#allocation24_spill] sm:$0xff] %v5996_v38  ;;  %v4348_v49 = vld [vmem:[%s6962_s3 + $0xa0] sm:$0xff] }
 0x14c   : > { %7417 = vst [vmem:[#allocation134_spill] sm:$0xff] %v6011_v31 }
 0x14d   : > { %7422 = vst [vmem:[#allocation16_spill] sm:$0xff] %v6025_v41  ;;  %v6036_v39 = vpop.f32.mrf.mxu2 }
 0x14e   : > { %2188 = vmatmul.bf16.gmra.mxu1 %v7420_v15  ;;  %7423 = vst [vmem:[#allocation65_spill] sm:$0xff] %v6044_v14  ;;  %v7435_v14 = vpack.c.bf16 %v4931_v9, %v7434_v2  ;;  %v7438_v2 = vld [vmem:[#allocation72_spill] sm:$0xff] }
 0x14f   : > { %2679 = vmatpush.bf16.msrb.mxu1 %v4339_v5  ;;  %v7432_v5 = vld [vmem:[#allocation50_spill] sm:$0xff] }
 0x151   : > { %2317 = vmatmul.bf16.gmra.mxu2 %v6029_v58 }
 0x152   : > { %2599 = vmatmul.bf16.gmra.mxu0 %v1650_v55  ;;  %v1827_v55 = vmul.f32 %v5589_v59, %v4948_v36  ;;  %v7425_v36 = vpack.c.bf16 %v4931_v9, %v7424_v45  ;;  %v1829_v45 = vmul.f32 %v7403_v23, %v7352_v6  ;;  %v4338_v6 = vld [vmem:[%s6962_s3 + $0x50] sm:$0xff]  ;;  %v7437_v23 = vld [vmem:[#allocation54_spill] sm:$0xff] }
 0x153   : > { %2680 = vmatpush.bf16.msrb.mxu1 %v4338_v6  ;;  %v7439_v6 = vld [vmem:[#allocation69_spill] sm:$0xff] }
 0x154   : > { %v1965_v15 = vpack.c.bf16 %v4986_v18, %v1827_v55  ;;  %v7426_v55 = vld [vmem:[#allocation18_spill] sm:$0xff]  ;;  %v1968_v17 = vpack.c.bf16 %v7430_v51, %v1829_v45  ;;  %v7440_v41 = vpack.c.bf16 %v7438_v2, %v7439_v6 }
 0x155   : > { %v6051_v34 = vpop.f32.mrf.mxu2 }
 0x159   : > { %2233 = vmatmul.bf16.gmra.mxu3 %v1965_v15  ;;  %v7427_v15 = vpack.c.bf16 %v7418_v11, %v7426_v55  ;;  %v4370_v55 = vld [vmem:[%s6962_s3 + $0x150] sm:$0xff] }
 0x15a   : > { %2358 = vmatpush.bf16.msrb.mxu3 %v4370_v55  ;;  %v7482_v11 = vld [vmem:[#allocation128_spill] sm:$0xff] }
 0x15b   : > { %v7483_v32 = vpack.c.bf16 %v5796_v48, %v7482_v11  ;;  %v7489_v11 = vld [vmem:[#allocation37_spill] sm:$0xff] }
 0x15e   : > { %2193 = vmatmul.bf16.gmra.mxu1 %v7425_v36  ;;  %v6066_v36 = vpop.f32.mrf.mxu2 }
 0x161   : > { %2322 = vmatmul.bf16.gmra.mxu2 %v6061_v30 }
 0x162   : > { %2604 = vmatmul.bf16.gmra.mxu0 %v7427_v15  ;;  %v7431_v15 = vld [vmem:[#allocation52_spill] sm:$0xff] }
 0x163   : > { %v7433_v47 = vpack.c.bf16 %v7431_v15, %v7432_v5 }
 0x166   : > { %v6075_v16 = vpop.f32.mrf.mxu2 }
 0x169   : > { %2238 = vmatmul.bf16.gmra.mxu3 %v1968_v17  ;;  %v7436_v17 = vld [vmem:[#allocation46_spill] sm:$0xff] }
 0x16a   : > { %v6085_v45 = vpack.c.bf16 %v7437_v23, %v7436_v17  ;;  %v7441_v23 = vld [vmem:[#allocation51_spill] sm:$0xff] }
 0x16b   : > { %v7442_v31 = vpack.c.bf16 %v7431_v15, %v7441_v23  ;;  %v4350_v23 = vld [vmem:[%s6962_s3 + $0xb0] sm:$0xff] }
 0x16e   : > { %2198 = vmatmul.bf16.gmra.mxu1 %v7433_v47  ;;  %v1831_v47 = vmul.f32 %v7412_v13, %v5289_v3  ;;  %v6090_v55 = vpop.f32.mrf.mxu2  ;;  %v4337_v3 = vld [vmem:[%s6962_s3 + $0x48] sm:$0xff]  ;;  %v7443_v13 = vld [vmem:[#allocation64_spill] sm:$0xff] }
 0x16f   : > { %2681 = vmatpush.bf16.msrb.mxu1 %v4337_v3  ;;  %v4368_v3 = vld [vmem:[%s6962_s3 + $0x140] sm:$0xff] }
 0x170   : > { %v1971_v5 = vpack.c.bf16 %v5353_v44, %v1831_v47  ;;  %v7444_v47 = vld [vmem:[#allocation74_spill] sm:$0xff] }
 0x171   : > { %2327 = vmatmul.bf16.gmra.mxu2 %v6085_v45 }
 0x172   : > { %2609 = vmatmul.bf16.gmra.mxu0 %v7435_v14  ;;  %v4369_v14 = vld [vmem:[%s6962_s3 + $0x148] sm:$0xff] }
 0x173   : > { %2359 = vmatpush.bf16.msrb.mxu3 %v4369_v14  ;;  %v4351_v14 = vld [vmem:[%s6962_s3 + $0xb8] sm:$0xff] }
 0x174   : > { %2764 = vmatpush.bf16.msra.mxu2 %v4351_v14 }
 0x176   : > { %v6099_v17 = vpop.f32.mrf.mxu2 }
 0x177   : > { %2360 = vmatpush.bf16.msrb.mxu3 %v4368_v3  ;;  %v7451_v3 = vld [vmem:[#allocation82_spill] sm:$0xff] }
 0x178   : > { %2765 = vmatpush.bf16.msra.mxu2 %v4350_v23  ;;  %v4336_v23 = vld [vmem:[%s6962_s3 + $0x40] sm:$0xff] }
 0x179   : > { %2243 = vmatmul.bf16.gmra.mxu3 %v1971_v5  ;;  %v6109_v5 = vpack.c.bf16 %v7444_v47, %v7443_v13  ;;  %v4349_v13 = vld [vmem:[%s6962_s3 + $0xa8] sm:$0xff]  ;;  %2682 = vmatpush.bf16.msrb.mxu1 %v4336_v23  ;;  %v4383_v23 = vld [vmem:[%s6962_s3 + $0x1b8] sm:$0xff] }
 0x17b   : > { %7445 = vst [vmem:[#allocation34_spill] sm:$0xff] %v6109_v5  ;;  %3317 = vmatpush.bf16.msra.mxu3 %v4383_v23  ;;  %v4344_v23 = vld [vmem:[%s6962_s3 + $0x80] sm:$0xff] }
 0x17c   : > { %2766 = vmatpush.bf16.msra.mxu2 %v4349_v13  ;;  %v7452_v13 = vld [vmem:[#allocation95_spill] sm:$0xff] }
 0x17e   : > { %2203 = vmatmul.bf16.gmra.mxu1 %v7440_v41  ;;  %v1833_v41 = vmul.f32 %v7421_v29, %v5456_v0  ;;  %v7446_v0 = vld [vmem:[#allocation93_spill] sm:$0xff]  ;;  %v7447_v29 = vld [vmem:[#allocation84_spill] sm:$0xff] }
 0x17f   : > { %v7448_v47 = vpack.c.bf16 %v7446_v0, %v7447_v29  ;;  %v6145_v29 = vpack.c.bf16 %v7452_v13, %v7451_v3  ;;  %v4345_v3 = vld [vmem:[%s6962_s3 + $0x88] sm:$0xff]  ;;  %v7456_v13 = vld [vmem:[#allocation112_spill] sm:$0xff] }
 0x180   : > { %v1974_v6 = vpack.c.bf16 %v5564_v10, %v1833_v41  ;;  %v7449_v41 = vld [vmem:[#allocation70_spill] sm:$0xff]  ;;  %2767 = vmatpush.bf16.msra.mxu2 %v4348_v49  ;;  %v4346_v49 = vld [vmem:[%s6962_s3 + $0x90] sm:$0xff] }
 0x181   : > { %2332 = vmatmul.bf16.gmra.mxu2 %v6109_v5  ;;  %7453 = vst [vmem:[#allocation18_spill] sm:$0xff] %v6145_v29  ;;  %v7521_v5 = vld [vmem:[#allocation68_spill] sm:$0xff] }
 0x182   : > { %2614 = vmatmul.bf16.gmra.mxu0 %v7442_v31  ;;  %v6117_v31 = vpop.f32.mrf.mxu2 }
 0x189   : > { %2248 = vmatmul.bf16.gmra.mxu3 %v1974_v6  ;;  %v7450_v6 = vpack.c.bf16 %v7438_v2, %v7449_v41 }
 0x18a   : > { %v6132_v14 = vpop.f32.mrf.mxu2 }
 0x18e   : > { %2208 = vmatmul.bf16.gmra.mxu1 %v7448_v47  ;;  %v4347_v47 = vld [vmem:[%s6962_s3 + $0x98] sm:$0xff] }
 0x18f   : > { %2768 = vmatpush.bf16.msra.mxu2 %v4347_v47  ;;  %v7457_v47 = vld [vmem:[#allocation105_spill] sm:$0xff] }
 0x190   : > { %v7458_v54 = vpack.c.bf16 %v7456_v13, %v7457_v47  ;;  %v4399_v47 = vld [vmem:[%s6962_s3 + $0x238] sm:$0xff] }
 0x191   : > { %2337 = vmatmul.bf16.gmra.mxu2 %v6145_v29  ;;  %3495 = vmatpush.bf16.msra.mxu1 %v4399_v47  ;;  %v7517_v29 = vld [vmem:[#allocation91_spill] sm:$0xff] }
 0x192   : > { %2619 = vmatmul.bf16.gmra.mxu0 %v7450_v6  ;;  %v6151_v41 = vpop.f32.mrf.mxu2  ;;  %v7454_v6 = vld [vmem:[#allocation116_spill] sm:$0xff] }
 0x193   : > { %v7455_v62 = vpack.c.bf16 %v5739_v61, %v7454_v6  ;;  %2769 = vmatpush.bf16.msra.mxu2 %v4346_v49  ;;  %v4391_v49 = vld [vmem:[%s6962_s3 + $0x1f8] sm:$0xff] }
 0x194   : > { %3406 = vmatpush.bf16.msra.mxu0 %v4391_v49  ;;  %v7468_v49 = vld [vmem:[#allocation110_spill] sm:$0xff] }
 0x195   : > { %v7469_v47 = vpack.c.bf16 %v7456_v13, %v7468_v49  ;;  %v7480_v13 = vld [vmem:[#allocation28_spill] sm:$0xff] }
 0x197   : > { %2770 = vmatpush.bf16.msra.mxu2 %v4345_v3  ;;  %v7465_v3 = vld [vmem:[#allocation4_spill] sm:$0xff] }
 0x198   : > { %v1553_v27 = vrot.slane %v7465_v3, 1 }
 0x199   : > { %2253 = vmatmul.bf16.gmra.mxu3 %v7455_v62  ;;  %v7460_v62 = vld [vmem:[#allocation89_spill] sm:$0xff] }
 0x19a   : > { %v6168_v6 = vpop.f32.mrf.mxu2  ;;  %v7461_v56 = vpack.c.bf16 %v7446_v0, %v7460_v62 }
 0x19b   : > { %7459 = vst [vmem:[#allocation27_spill] sm:$0xff] %v6168_v6  ;;  %2771 = vmatpush.bf16.msra.mxu2 %v4344_v23  ;;  %v7470_v23 = vld [vmem:[#allocation25_spill] sm:$0xff]  ;;  %v7520_v6 = vpack.c.bf16 %v5353_v44, %v7519_v52  ;;  %v4386_v52 = vld [vmem:[%s6962_s3 + $0x1d0] sm:$0xff] }
 0x19c   : > { %v1610_v0 = vsel %vm1582_vm1, %v1553_v27, %v7470_v23  ;;  %v7473_v23 = vld [vmem:[#allocation130_spill] sm:$0xff]  ;;  %v7528_v44 = vld [vmem:[#allocation9_spill] sm:$0xff] }
 0x19d   : > { %v1904_v2 = vmul.f32 %v7400_v8, %v1610_v0  ;;  %v7472_v8 = vpack.c.bf16 %v5840_v37, %v5762_v20  ;;  %v7479_v37 = vld [vmem:[#allocation26_spill] sm:$0xff] }
 0x19e   : > { %2213 = vmatmul.bf16.gmra.mxu1 %v7458_v54  ;;  %v7462_v54 = vld [vmem:[#allocation114_spill] sm:$0xff]  ;;  %v7481_v15 = vpack.c.bf16 %v7479_v37, %v7480_v13 }
 0x1a1   : > { %2342 = vmatmul.bf16.gmra.mxu2 %v7462_v54 }
 0x1a2   : > { %2624 = vmatmul.bf16.gmra.mxu0 %v7461_v56  ;;  %v6183_v62 = vpop.f32.mrf.mxu2  ;;  %v7464_v56 = vpack.c.bf16 %v5902_v21, %v5848_v43  ;;  %v1611_v43 = vsel %vm1582_vm1, %v5773_v60, %v1553_v27  ;;  %v7474_v27 = vld [vmem:[#allocation40_spill] sm:$0xff] }
 0x1a3   : > { %7463 = vst [vmem:[#allocation38_spill] sm:$0xff] %v6183_v62  ;;  %v1937_v1 = vpack.c.bf16 %v1904_v2, %v1611_v43  ;;  %v7475_v2 = vpack.c.bf16 %v7473_v23, %v7474_v27  ;;  %v7477_v23 = vpack.c.bf16 %v5927_v12, %v5922_v35  ;;  %v7485_v12 = vld [vmem:[#allocation21_spill] sm:$0xff]  ;;  %v7506_v60 = vld [vmem:[#allocation80_spill] sm:$0xff] }
 0x1a4   : > { %v1618_v35 = vmul.f32 %v7485_v12, %v1610_v0  ;;  %v1538_v0 = vmul.f32 %v5589_v59, %v5974_v40  ;;  %v4397_v59 = vld [vmem:[%s6962_s3 + $0x228] sm:$0xff]  ;;  %v7497_v40 = vld [vmem:[#allocation53_spill] sm:$0xff] }
 0x1a9   : > { %2258 = vmatmul.bf16.gmra.mxu3 %v7464_v56  ;;  %v4382_v56 = vld [vmem:[%s6962_s3 + $0x1b0] sm:$0xff] }
 0x1aa   : > { %v6192_v63 = vpop.f32.mrf.mxu2  ;;  %3318 = vmatpush.bf16.msra.mxu3 %v4382_v56  ;;  %v4398_v56 = vld [vmem:[%s6962_s3 + $0x230] sm:$0xff] }
 0x1ab   : > { %7467 = vst [vmem:[#allocation50_spill] sm:$0xff] %v6192_v63  ;;  %3496 = vmatpush.bf16.msra.mxu1 %v4398_v56  ;;  %v7501_v63 = vld [vmem:[#allocation33_spill] sm:$0xff] }
 0x1ae   : > { %2218 = vmatmul.bf16.gmra.mxu1 %v7466_v19 }
 0x1af   : > { %3497 = vmatpush.bf16.msra.mxu1 %v4397_v59 }
 0x1b1   : > { %2347 = vmatmul.bf16.gmra.mxu2 %v5876_v24 }
 0x1b2   : > { %2629 = vmatmul.bf16.gmra.mxu0 %v7469_v47 }
 0x1b4   : > { %v6205_v19 = vpop.f32.mrf.mxu2 }
 0x1b5   : > { %7471 = vst [vmem:[#allocation35_spill] sm:$0xff] %v6205_v19 }
 0x1b9   : > { %2361 = vmatmul.bf16.vlgmr.msrb.gmra.mxu3 %v1937_v1  ;;  %v2224_v49 = vpop.f32.mrf.mxu3  ;;  %v4390_v1 = vld [vmem:[%s6962_s3 + $0x1f0] sm:$0xff] }
 0x1ba   : > { %3407 = vmatpush.bf16.msra.mxu0 %v4390_v1 }
 0x1bb   : > { %v6210_v3 = vpop.f32.mrf.mxu1 }
 0x1bc   : > { %v6220_v21 = vpop.f32.mrf.mxu2 }
 0x1bd   : > { %7476 = vst [vmem:[#allocation46_spill] sm:$0xff] %v6220_v21  ;;  %v7484_v21 = vld [vmem:[#allocation5_spill] sm:$0xff] }
 0x1be   : > { %2683 = vmatmul.bf16.vlgmr.msrb.gmra.mxu1 %v7475_v2 }
 0x1bf   : > { %v6212_v47 = vpop.f32.mrf.mxu0 }
 0x1c1   : > { %v2226_v20 = vpop.f32.mrf.mxu3  ;;  %2772 = vmatmul.bf16.vlgmr.msra.gmra.mxu2 %v7477_v23 }
 0x1c2   : > { %2634 = vmatmul.bf16.gmra.mxu0 %v7472_v8 }
 0x1c3   : > { %v6228_v24 = vpop.f32.mrf.mxu1 }
 0x1c4   : > { %v2313_v27 = vpop.f32.mrf.mxu2 }
 0x1c5   : > { %v6235_v2 = vadd.f32 %v2313_v27, %v2224_v49  ;;  %v1652_v27 = vpack.c.bf16 %v1618_v35, %v1611_v43 }
 0x1c7   : > { %v6230_v8 = vpop.f32.mrf.mxu0  ;;  %7478 = vst [vmem:[#allocation54_spill] sm:$0xff] %v6235_v2 }
 0x1c9   : > { %2366 = vmatmul.bf16.gmra.mxu3 %v7481_v15 }
 0x1cb   : > { %v6240_v9 = vpop.f32.mrf.mxu1 }
 0x1cc   : > { %v2229_v1 = vpop.f32.mrf.mxu3  ;;  %v2315_v23 = vpop.f32.mrf.mxu2 }
 0x1cd   : > { %v6249_v49 = vadd.f32 %v2315_v23, %v2226_v20  ;;  %v4389_v23 = vld [vmem:[%s6962_s3 + $0x1e8] sm:$0xff] }
 0x1ce   : > { %2688 = vmatmul.bf16.gmra.mxu1 %v7484_v21  ;;  %v4381_v21 = vld [vmem:[%s6962_s3 + $0x1a8] sm:$0xff]  ;;  %3408 = vmatpush.bf16.msra.mxu0 %v4389_v23 }
 0x1cf   : > { %v6242_v56 = vpop.f32.mrf.mxu0  ;;  %7486 = vst [vmem:[#allocation69_spill] sm:$0xff] %v6249_v49  ;;  %3319 = vmatpush.bf16.msra.mxu3 %v4381_v21 }
 0x1d1   : > { %2777 = vmatmul.bf16.gmra.mxu2 %v1652_v27 }
 0x1d2   : > { %2639 = vmatmul.bf16.gmra.mxu0 %v7483_v32  ;;  %v7490_v32 = vpack.c.bf16 %v7488_v25, %v7489_v11 }
 0x1d3   : > { %v6251_v2 = vpop.f32.mrf.mxu1 }
 0x1d4   : > { %v2231_v37 = vpop.f32.mrf.mxu3  ;;  %v2318_v54 = vpop.f32.mrf.mxu2 }
 0x1d5   : > { %v6255_v19 = vadd.f32 %v2318_v54, %v2229_v1  ;;  %v1677_v54 = vpack.c.bf16 %v5996_v38, %v1538_v0  ;;  %v7491_v1 = vld [vmem:[#allocation15_spill] sm:$0xff]  ;;  %v7493_v0 = vld [vmem:[#allocation30_spill] sm:$0xff] }
 0x1d6   : > { %v7496_v38 = vld [vmem:[#allocation62_spill] sm:$0xff] }
 0x1d7   : > { %v6253_v15 = vpop.f32.mrf.mxu0  ;;  %7487 = vst [vmem:[#allocation51_spill] sm:$0xff] %v6255_v19  ;;  %v7498_v48 = vpack.c.bf16 %v7496_v38, %v7497_v40  ;;  %v7499_v19 = vld [vmem:[#allocation41_spill] sm:$0xff] }
 0x1d8   : > { %v7500_v49 = vpack.c.bf16 %v4986_v18, %v7499_v19  ;;  %v7507_v19 = vld [vmem:[#allocation71_spill] sm:$0xff] }
 0x1d9   : > { %2371 = vmatmul.bf16.gmra.mxu3 %v7490_v32 }
 0x1db   : > { %v6265_v43 = vpop.f32.mrf.mxu1 }
 0x1dc   : > { %v2234_v20 = vpop.f32.mrf.mxu3  ;;  %v2320_v25 = vpop.f32.mrf.mxu2 }
 0x1dd   : > { %v6271_v35 = vadd.f32 %v2320_v25, %v2231_v37 }
 0x1de   : > { %2693 = vmatmul.bf16.gmra.mxu1 %v7491_v1 }
 0x1df   : > { %v6267_v12 = vpop.f32.mrf.mxu0  ;;  %7492 = vst [vmem:[#allocation64_spill] sm:$0xff] %v6271_v35 }
 0x1e2   : > { %2644 = vmatmul.bf16.gmra.mxu0 %v1677_v54  ;;  %v7494_v54 = vpack.c.bf16 %v7493_v0, %v7480_v13 }
 0x1e3   : > { %v6279_v27 = vpop.f32.mrf.mxu1 }
 0x1e4   : > { %v2236_v32 = vpop.f32.mrf.mxu3  ;;  %2782 = vmatmul.bf16.gmra.mxu2 %v7494_v54  ;;  %v2323_v37 = vpop.f32.mrf.mxu2 }
 0x1e5   : > { %v6286_v25 = vadd.f32 %v2323_v37, %v2234_v20 }
 0x1e7   : > { %v6281_v21 = vpop.f32.mrf.mxu0  ;;  %7495 = vst [vmem:[#allocation74_spill] sm:$0xff] %v6286_v25 }
 0x1e9   : > { %2376 = vmatmul.bf16.gmra.mxu3 %v7498_v48  ;;  %v7503_v48 = vld [vmem:[#allocation47_spill] sm:$0xff] }
 0x1ea   : > { %v7504_v38 = vpack.c.bf16 %v7503_v48, %v7489_v11  ;;  %v7509_v48 = vld [vmem:[#allocation58_spill] sm:$0xff] }
 0x1eb   : > { %v6291_v35 = vpop.f32.mrf.mxu1 }
 0x1ec   : > { %v2239_v23 = vpop.f32.mrf.mxu3  ;;  %v2325_v0 = vpop.f32.mrf.mxu2 }
 0x1ed   : > { %v6299_v54 = vadd.f32 %v2325_v0, %v2236_v32  ;;  %v4380_v32 = vld [vmem:[%s6962_s3 + $0x1a0] sm:$0xff] }
 0x1ee   : > { %2698 = vmatmul.bf16.gmra.mxu1 %v7501_v63  ;;  %3320 = vmatpush.bf16.msra.mxu3 %v4380_v32 }
 0x1ef   : > { %v6293_v59 = vpop.f32.mrf.mxu0  ;;  %7502 = vst [vmem:[#allocation84_spill] sm:$0xff] %v6299_v54 }
 0x1f2   : > { %2649 = vmatmul.bf16.gmra.mxu0 %v7500_v49  ;;  %v7508_v49 = vpack.c.bf16 %v7506_v60, %v7507_v19  ;;  %v4388_v60 = vld [vmem:[%s6962_s3 + $0x1e0] sm:$0xff] }
 0x1f3   : > { %v6301_v20 = vpop.f32.mrf.mxu1  ;;  %3409 = vmatpush.bf16.msra.mxu0 %v4388_v60 }
 0x1f4   : > { %v2241_v37 = vpop.f32.mrf.mxu3  ;;  %2787 = vmatmul.bf16.gmra.mxu2 %v7504_v38  ;;  %v2328_v13 = vpop.f32.mrf.mxu2  ;;  %v7510_v38 = vpack.c.bf16 %v7430_v51, %v7509_v48 }
 0x1f5   : > { %v6308_v42 = vadd.f32 %v2328_v13, %v2239_v23  ;;  %v7511_v13 = vld [vmem:[#allocation49_spill] sm:$0xff] }
 0x1f7   : > { %v6303_v25 = vpop.f32.mrf.mxu0  ;;  %7505 = vst [vmem:[#allocation70_spill] sm:$0xff] %v6308_v42 }
 0x1f9   : > { %2381 = vmatmul.bf16.gmra.mxu3 %v7508_v49  ;;  %v4396_v49 = vld [vmem:[%s6962_s3 + $0x220] sm:$0xff] }
 0x1fa   : > { %3498 = vmatpush.bf16.msra.mxu1 %v4396_v49 }
 0x1fb   : > { %v6316_v0 = vpop.f32.mrf.mxu1 }
 0x1fc   : > { %v2244_v18 = vpop.f32.mrf.mxu3  ;;  %v2330_v23 = vpop.f32.mrf.mxu2 }
 0x1fd   : > { %v6324_v42 = vadd.f32 %v2330_v23, %v2241_v37 }
 0x1fe   : > { %2703 = vmatmul.bf16.gmra.mxu1 %v7511_v13 }
 0x1ff   : > { %v6318_v54 = vpop.f32.mrf.mxu0  ;;  %7512 = vst [vmem:[#allocation82_spill] sm:$0xff] %v6324_v42  ;;  %v7516_v42 = vld [vmem:[#allocation100_spill] sm:$0xff] }
 0x200   : > { %v7518_v62 = vpack.c.bf16 %v7516_v42, %v7517_v29 }
 0x202   : > { %2654 = vmatmul.bf16.gmra.mxu0 %v7510_v38  ;;  %v7513_v38 = vld [vmem:[#allocation66_spill] sm:$0xff] }
 0x203   : > { %v6332_v32 = vpop.f32.mrf.mxu1  ;;  %v7514_v51 = vpack.c.bf16 %v7513_v38, %v7497_v40  ;;  %v4384_v40 = vld [vmem:[%s6962_s3 + $0x1c0] sm:$0xff] }
 0x204   : > { %v2246_v11 = vpop.f32.mrf.mxu3  ;;  %v2333_v37 = vpop.f32.mrf.mxu2 }
 0x205   : > { %2792 = vmatmul.bf16.gmra.mxu2 %v7514_v51  ;;  %v6339_v23 = vadd.f32 %v2333_v37, %v2244_v18  ;;  %v4387_v18 = vld [vmem:[%s6962_s3 + $0x1d8] sm:$0xff] }
 0x206   : > { %3410 = vmatpush.bf16.msra.mxu0 %v4387_v18  ;;  %v7524_v37 = vld [vmem:[#allocation81_spill] sm:$0xff]  ;;  %v7529_v18 = vpack.c.bf16 %v7528_v44, %v5675_v4 }
 0x207   : > { %v6334_v48 = vpop.f32.mrf.mxu0  ;;  %7515 = vst [vmem:[#allocation95_spill] sm:$0xff] %v6339_v23  ;;  %v7525_v23 = vpack.c.bf16 %v7524_v37, %v7507_v19 }
 0x209   : > { %2386 = vmatmul.bf16.gmra.mxu3 %v7518_v62 }
 0x20a   : > { %3411 = vmatpush.bf16.msra.mxu0 %v4386_v52 }
 0x20b   : > { %v6344_v46 = vpop.f32.mrf.mxu1 }
 0x20c   : > { %v2249_v60 = vpop.f32.mrf.mxu3  ;;  %v2335_v38 = vpop.f32.mrf.mxu2 }
 0x20d   : > { %v6352_v51 = vadd.f32 %v2335_v38, %v2246_v11 }
 0x20e   : > { %2708 = vmatmul.bf16.gmra.mxu1 %v7521_v5 }
 0x20f   : > { %v6346_v49 = vpop.f32.mrf.mxu0  ;;  %7522 = vst [vmem:[#allocation116_spill] sm:$0xff] %v6352_v51  ;;  %v4385_v51 = vld [vmem:[%s6962_s3 + $0x1c8] sm:$0xff] }
 0x210   : > { %3412 = vmatpush.bf16.msra.mxu0 %v4385_v51  ;;  %v4395_v51 = vld [vmem:[%s6962_s3 + $0x218] sm:$0xff] }
 0x211   : > { %3499 = vmatpush.bf16.msra.mxu1 %v4395_v51  ;;  %v7543_v51 = vld [vmem:[#allocation117_spill] sm:$0xff] }
 0x212   : > { %2659 = vmatmul.bf16.gmra.mxu0 %v7520_v6 }
 0x213   : > { %v6357_v42 = vpop.f32.mrf.mxu1 }
 0x214   : > { %7523 = vst [vmem:[#allocation105_spill] sm:$0xff] %v6357_v42  ;;  %v2251_v62 = vpop.f32.mrf.mxu3  ;;  %v2338_v11 = vpop.f32.mrf.mxu2  ;;  %3413 = vmatpush.bf16.msra.mxu0 %v4384_v40  ;;  %v7553_v42 = vld [vmem:[#allocation12_spill] sm:$0xff] }
 0x215   : > { %2797 = vmatmul.bf16.gmra.mxu2 %v7525_v23  ;;  %v6367_v38 = vadd.f32 %v2338_v11, %v2249_v60  ;;  %v4379_v23 = vld [vmem:[%s6962_s3 + $0x198] sm:$0xff]  ;;  %v7531_v60 = vld [vmem:[#allocation90_spill] sm:$0xff] }
 0x216   : > { %3321 = vmatpush.bf16.msra.mxu3 %v4379_v23  ;;  %v7532_v11 = vpack.c.bf16 %v5564_v10, %v7531_v60 }
 0x217   : > { %v6365_v6 = vpop.f32.mrf.mxu0  ;;  %7527 = vst [vmem:[#allocation4_spill] sm:$0xff] %v6367_v38  ;;  %v7533_v38 = vld [vmem:[#allocation88_spill] sm:$0xff] }
 0x218   : > { %7526 = vst [vmem:[#allocation89_spill] sm:$0xff] %v6365_v6  ;;  %v7545_v6 = vld [vmem:[#allocation109_spill] sm:$0xff] }
 0x219   : > { %2391 = vmatmul.bf16.gmra.mxu3 %v7529_v18 }
 0x21b   : > { %v6378_v37 = vpop.f32.mrf.mxu1 }
 0x21c   : > { %7530 = vst [vmem:[#allocation110_spill] sm:$0xff] %v6378_v37  ;;  %v2254_v52 = vpop.f32.mrf.mxu3  ;;  %v2340_v44 = vpop.f32.mrf.mxu2 }
 0x21d   : > { %v6386_v19 = vadd.f32 %v2340_v44, %v2251_v62  ;;  %v7540_v44 = vpack.c.bf16 %v5882_v50, %v5865_v26 }
 0x21e   : > { %2713 = vmatmul.bf16.gmra.mxu1 %v7533_v38 }
 0x21f   : > { %v6384_v18 = vpop.f32.mrf.mxu0  ;;  %7535 = vst [vmem:[#allocation40_spill] sm:$0xff] %v6386_v19 }
 0x220   : > { %7534 = vst [vmem:[#allocation130_spill] sm:$0xff] %v6384_v18 }
 0x222   : > { %2664 = vmatmul.bf16.gmra.mxu0 %v7532_v11  ;;  %v7537_v11 = vld [vmem:[#allocation101_spill] sm:$0xff] }
 0x223   : > { %v6394_v23 = vpop.f32.mrf.mxu1  ;;  %v7538_v10 = vpack.c.bf16 %v7537_v11, %v7517_v29 }
 0x224   : > { %7536 = vst [vmem:[#allocation26_spill] sm:$0xff] %v6394_v23  ;;  %v2256_v60 = vpop.f32.mrf.mxu3  ;;  %v2343_v18 = vpop.f32.mrf.mxu2  ;;  %v7544_v23 = vpack.c.bf16 %v5739_v61, %v7543_v51 }
 0x225   : > { %2802 = vmatmul.bf16.gmra.mxu2 %v7538_v10  ;;  %v6399_v62 = vadd.f32 %v2343_v18, %v2254_v52  ;;  %v7547_v52 = vld [vmem:[#allocation22_spill] sm:$0xff]  ;;  %v7548_v18 = vld [vmem:[#allocation63_spill] sm:$0xff] }
 0x227   : > { %7539 = vst [vmem:[#allocation128_spill] sm:$0xff] %v6399_v62  ;;  %v6404_v19 = vpop.f32.mrf.mxu0  ;;  %v1920_v62 = vmul.f32 %v7548_v18, %v7547_v52 }
 0x228   : > { %7541 = vst [vmem:[#allocation5_spill] sm:$0xff] %v6404_v19  ;;  %v7551_v19 = vld [vmem:[#allocation120_spill] sm:$0xff] }
 0x229   : > { %2396 = vmatmul.bf16.gmra.mxu3 %v7540_v44  ;;  %v1961_v51 = vpack.c.bf16 %v1920_v62, %v7553_v42 }
 0x22b   : > { %v6406_v37 = vpop.f32.mrf.mxu1 }
 0x22c   : > { %7542 = vst [vmem:[#allocation21_spill] sm:$0xff] %v6406_v37  ;;  %v2259_v40 = vpop.f32.mrf.mxu3  ;;  %v2345_v11 = vpop.f32.mrf.mxu2  ;;  %v7552_v37 = vpack.c.bf16 %v7551_v19, %v5675_v4 }
 0x22d   : > { %v6412_v10 = vadd.f32 %v2345_v11, %v2256_v60  ;;  %v4378_v60 = vld [vmem:[%s6962_s3 + $0x190] sm:$0xff]  ;;  %v2274_v11 = vadd.f32 %v6003_v7, %v6210_v3  ;;  %v2276_v3 = vadd.f32 %v6018_v28, %v6228_v24  ;;  %v2279_v24 = vadd.f32 %v6036_v39, %v6240_v9 }
 0x22e   : > { %2718 = vmatmul.bf16.gmra.mxu1 %v7545_v6  ;;  %3322 = vmatpush.bf16.msra.mxu3 %v4378_v60  ;;  %v4394_v7 = vld [vmem:[%s6962_s3 + $0x210] sm:$0xff] }
 0x22f   : > { %7546 = vst [vmem:[#allocation45_spill] sm:$0xff] %v6412_v10  ;;  %v6418_v44 = vpop.f32.mrf.mxu0  ;;  %3500 = vmatpush.bf16.msra.mxu1 %v4394_v7 }
 0x230   : > { %7550 = vst [vmem:[#allocation30_spill] sm:$0xff] %v6418_v44 }
 0x232   : > { %2669 = vmatmul.bf16.gmra.mxu0 %v7544_v23 }
 0x233   : > { %v6416_v29 = vpop.f32.mrf.mxu1 }
 0x234   : > { %7549 = vst [vmem:[#allocation15_spill] sm:$0xff] %v6416_v29  ;;  %v2261_v50 = vpop.f32.mrf.mxu3  ;;  %v2348_v23 = vpop.f32.mrf.mxu2 }
 0x235   : > { %2807 = vmatmul.bf16.gmra.mxu2 %v7552_v37  ;;  %v6424_v61 = vadd.f32 %v2348_v23, %v2259_v40  ;;  %v7554_v37 = vld [vmem:[#allocation125_spill] sm:$0xff] }
 0x237   : > { %v6431_v44 = vpop.f32.mrf.mxu0 }
 0x239   : > { %2401 = vmatmul.bf16.gmra.mxu3 %v1961_v51 }
 0x23b   : > { %v2684_v10 = vpop.f32.mrf.mxu1 }
 0x23c   : > { %v2362_v18 = vpop.f32.mrf.mxu3  ;;  %v2350_v62 = vpop.f32.mrf.mxu2 }
 0x23d   : > { %v2363_v29 = vadd.f32 %v2362_v18, %v2274_v11  ;;  %v6436_v51 = vadd.f32 %v2350_v62, %v2261_v50  ;;  %v7558_v62 = vld [vmem:[#allocation32_spill] sm:$0xff] }
 0x23e   : > { %2723 = vmatmul.bf16.gmra.mxu1 %v7554_v37 }
 0x23f   : > { %v2596_v19 = vadd.f32 %v6212_v47, %v2363_v29  ;;  %7555 = vst [vmem:[#allocation62_spill] sm:$0xff] %v6436_v51  ;;  %v7556_v29 = vpack.c.bf16 %v5885_v33, %v5865_v26 }
 0x241   : > { %v2685_v40 = vadd.f32 %v2684_v10, %v2596_v19  ;;  %v6447_v10 = vpop.f32.mrf.mxu0  ;;  %v7557_v19 = vld [vmem:[#allocation39_spill] sm:$0xff] }
 0x242   : > { %3414 = vmatmul.bf16.vlgmr.msra.gmra.mxu0 %v7491_v1  ;;  %v7559_v51 = vpack.c.bf16 %v7557_v19, %v7558_v62 }
 0x243   : > { %v2686_v60 = vpop.f32.mrf.mxu1 }
 0x244   : > { %v2364_v23 = vpop.f32.mrf.mxu3  ;;  %v2773_v1 = vpop.f32.mrf.mxu2 }
 0x245   : > { %v2365_v11 = vadd.f32 %v2364_v23, %v2276_v3  ;;  %2812 = vmatmul.bf16.gmra.mxu2 %v7556_v29  ;;  %v6449_v18 = vadd.f32 %v2773_v1, %v2685_v40 }
 0x247   : > { %v2598_v47 = vadd.f32 %v6230_v8, %v2365_v11  ;;  %v7560_v8 = vld [vmem:[#allocation23_spill] sm:$0xff] }
 0x248   : > { %v1634_v40 = vmul.f32 %v7560_v8, %v7547_v52 }
 0x249   : > { %v2687_v50 = vadd.f32 %v2686_v60, %v2598_v47  ;;  %2406 = vmatmul.bf16.gmra.mxu3 %v7559_v51  ;;  %v2281_v51 = vadd.f32 %v6051_v34, %v6251_v2  ;;  %v6465_v9 = vpop.f32.mrf.mxu0  ;;  %v4377_v34 = vld [vmem:[%s6962_s3 + $0x188] sm:$0xff]  ;;  %v2284_v2 = vadd.f32 %v6066_v36, %v6265_v43  ;;  %v2286_v43 = vadd.f32 %v6075_v16, %v6279_v27 }
 0x24a   : > { %v1676_v39 = vpack.c.bf16 %v1634_v40, %v7553_v42  ;;  %3323 = vmatpush.bf16.msra.mxu3 %v4377_v34  ;;  %v4393_v36 = vld [vmem:[%s6962_s3 + $0x208] sm:$0xff]  ;;  %v2289_v16 = vadd.f32 %v6090_v55, %v6291_v35 }
 0x24b   : > { %v2689_v7 = vpop.f32.mrf.mxu1  ;;  %3501 = vmatpush.bf16.msra.mxu1 %v4393_v36 }
 0x24c   : > { %v2367_v28 = vpop.f32.mrf.mxu3  ;;  %v2775_v23 = vpop.f32.mrf.mxu2 }
 0x24d   : > { %v2368_v3 = vadd.f32 %v2367_v28, %v2279_v24  ;;  %v6461_v11 = vadd.f32 %v2775_v23, %v2687_v50  ;;  %v7561_v24 = vld [vmem:[#allocation56_spill] sm:$0xff]  ;;  %v7562_v50 = vld [vmem:[#allocation43_spill] sm:$0xff] }
 0x24e   : > { %2728 = vmatmul.bf16.gmra.mxu1 %v5984_v22  ;;  %v7563_v28 = vpack.c.bf16 %v7561_v24, %v7562_v50  ;;  %v7566_v24 = vld [vmem:[#allocation75_spill] sm:$0xff] }
 0x24f   : > { %v2601_v33 = vadd.f32 %v6242_v56, %v2368_v3 }
 0x251   : > { %v2690_v60 = vadd.f32 %v2689_v7, %v2601_v33  ;;  %v6479_v33 = vpop.f32.mrf.mxu0 }
 0x252   : > { %3419 = vmatmul.bf16.gmra.mxu0 %v7501_v63 }
 0x253   : > { %v2691_v56 = vpop.f32.mrf.mxu1 }
 0x254   : > { %v2369_v29 = vpop.f32.mrf.mxu3  ;;  %v2778_v1 = vpop.f32.mrf.mxu2 }
 0x255   : > { %v2370_v47 = vadd.f32 %v2369_v29, %v2281_v51  ;;  %2817 = vmatmul.bf16.gmra.mxu2 %v1676_v39  ;;  %v6469_v52 = vadd.f32 %v2778_v1, %v2690_v60 }
 0x257   : > { %v2603_v63 = vadd.f32 %v6253_v15, %v2370_v47 }
 0x259   : > { %v2692_v19 = vadd.f32 %v2691_v56, %v2603_v63  ;;  %2411 = vmatmul.bf16.gmra.mxu3 %v7563_v28  ;;  %v7567_v28 = vld [vmem:[#allocation60_spill] sm:$0xff] }
 0x25a   : > { %v7568_v34 = vpack.c.bf16 %v7566_v24, %v7567_v28 }
 0x25b   : > { %v2694_v3 = vpop.f32.mrf.mxu1 }
 0x25c   : > { %v2372_v7 = vpop.f32.mrf.mxu3  ;;  %v2780_v40 = vpop.f32.mrf.mxu2 }
 0x25d   : > { %v2373_v15 = vadd.f32 %v2372_v7, %v2284_v2  ;;  %v6484_v60 = vadd.f32 %v2780_v40, %v2692_v19 }
 0x25e   : > { %2733 = vmatmul.bf16.gmra.mxu1 %v6029_v58 }
 0x25f   : > { %v2606_v8 = vadd.f32 %v6267_v12, %v2373_v15  ;;  %v7564_v12 = vld [vmem:[#allocation44_spill] sm:$0xff] }
 0x260   : > { %v7565_v56 = vpack.c.bf16 %v7564_v12, %v7558_v62  ;;  %v7571_v12 = vld [vmem:[#allocation92_spill] sm:$0xff] }
 0x261   : > { %v2695_v23 = vadd.f32 %v2694_v3, %v2606_v8 }
 0x262   : > { %3424 = vmatmul.bf16.gmra.mxu0 %v7511_v13  ;;  %v6494_v13 = vpop.f32.mrf.mxu0 }
 0x263   : > { %v2696_v39 = vpop.f32.mrf.mxu1 }
 0x264   : > { %v2374_v51 = vpop.f32.mrf.mxu3 }
 0x265   : > { %v2375_v29 = vadd.f32 %v2374_v51, %v2286_v43  ;;  %2822 = vmatmul.bf16.gmra.mxu2 %v7565_v56  ;;  %v7569_v43 = vld [vmem:[#allocation61_spill] sm:$0xff]  ;;  %v7572_v56 = vpack.c.bf16 %v7571_v12, %v5362_v53  ;;  %v7579_v12 = vld [vmem:[#allocation27_spill] sm:$0xff] }
 0x266   : > { %v7570_v51 = vpack.c.bf16 %v7569_v43, %v7562_v50 }
 0x267   : > { %v2608_v47 = vadd.f32 %v6281_v21, %v2375_v29  ;;  %v2783_v63 = vpop.f32.mrf.mxu2 }
 0x268   : > { %v6497_v19 = vadd.f32 %v2783_v63, %v2695_v23  ;;  %v2291_v23 = vadd.f32 %v6099_v17, %v6301_v20  ;;  %v4376_v17 = vld [vmem:[%s6962_s3 + $0x180] sm:$0xff]  ;;  %v2294_v20 = vadd.f32 %v6117_v31, %v6316_v0  ;;  %v2296_v0 = vadd.f32 %v6132_v14, %v6332_v32 }
 0x269   : > { %v2697_v1 = vadd.f32 %v2696_v39, %v2608_v47  ;;  %2416 = vmatmul.bf16.gmra.mxu3 %v7568_v34  ;;  %v4392_v31 = vld [vmem:[%s6962_s3 + $0x200] sm:$0xff]  ;;  %v2299_v14 = vadd.f32 %v6151_v41, %v6344_v46 }
 0x26a   : > { %v6507_v15 = vpop.f32.mrf.mxu0  ;;  %3324 = vmatpush.bf16.msra.mxu3 %v4376_v17  ;;  %3502 = vmatpush.bf16.msra.mxu1 %v4392_v31  ;;  %v7580_v46 = vld [vmem:[#allocation94_spill] sm:$0xff] }
 0x26b   : > { %v2699_v2 = vpop.f32.mrf.mxu1  ;;  %v7581_v41 = vpack.c.bf16 %v7580_v46, %v5362_v53 }
 0x26c   : > { %v2377_v27 = vpop.f32.mrf.mxu3 }
 0x26d   : > { %v2378_v7 = vadd.f32 %v2377_v27, %v2289_v16 }
 0x26e   : > { %2738 = vmatmul.bf16.gmra.mxu1 %v6061_v30 }
 0x26f   : > { %v2611_v3 = vadd.f32 %v6293_v59, %v2378_v7  ;;  %v2785_v21 = vpop.f32.mrf.mxu2 }
 0x270   : > { %v6509_v40 = vadd.f32 %v2785_v21, %v2697_v1  ;;  %v7573_v21 = vld [vmem:[#allocation76_spill] sm:$0xff] }
 0x271   : > { %v2700_v8 = vadd.f32 %v2699_v2, %v2611_v3 }
 0x272   : > { %3429 = vmatmul.bf16.gmra.mxu0 %v7521_v5  ;;  %v6527_v47 = vpop.f32.mrf.mxu0 }
 0x273   : > { %v2701_v55 = vpop.f32.mrf.mxu1 }
 0x274   : > { %v2379_v36 = vpop.f32.mrf.mxu3 }
 0x275   : > { %v2380_v35 = vadd.f32 %v2379_v36, %v2291_v23  ;;  %2827 = vmatmul.bf16.gmra.mxu2 %v7570_v51  ;;  %v7575_v36 = vld [vmem:[#allocation111_spill] sm:$0xff] }
 0x277   : > { %v2613_v59 = vadd.f32 %v6303_v25, %v2380_v35  ;;  %v2788_v39 = vpop.f32.mrf.mxu2 }
 0x278   : > { %v6517_v29 = vadd.f32 %v2788_v39, %v2700_v8  ;;  %v7577_v39 = vld [vmem:[#allocation34_spill] sm:$0xff] }
 0x279   : > { %v2702_v5 = vadd.f32 %v2701_v55, %v2613_v59  ;;  %2421 = vmatmul.bf16.gmra.mxu3 %v7572_v56  ;;  %v7576_v55 = vpack.c.bf16 %v7575_v36, %v5572_v57 }
 0x27b   : > { %v2704_v25 = vpop.f32.mrf.mxu1 }
 0x27c   : > { %v2382_v63 = vpop.f32.mrf.mxu3 }
 0x27d   : > { %v2383_v1 = vadd.f32 %v2382_v63, %v2294_v20 }
 0x27e   : > { %2743 = vmatmul.bf16.gmra.mxu1 %v6085_v45 }
 0x27f   : > { %v2616_v24 = vadd.f32 %v6318_v54, %v2383_v1  ;;  %v2790_v34 = vpop.f32.mrf.mxu2  ;;  %v6541_v54 = vpop.f32.mrf.mxu0 }
 0x280   : > { %v6534_v27 = vadd.f32 %v2790_v34, %v2702_v5  ;;  %v7578_v5 = vld [vmem:[#allocation105_spill] sm:$0xff]  ;;  %v7583_v34 = vld [vmem:[#allocation132_spill] sm:$0xff] }
 0x281   : > { %v6532_v16 = vadd.f32 %v2704_v25, %v2616_v24  ;;  %v2301_v56 = vadd.f32 %v7579_v12, %v7578_v5  ;;  %v7582_v25 = vld [vmem:[#allocation89_spill] sm:$0xff]  ;;  %v7593_v12 = vld [vmem:[#allocation26_spill] sm:$0xff] }
 0x282   : > { %3434 = vmatmul.bf16.gmra.mxu0 %v7533_v38  ;;  %v7574_v38 = vpack.c.bf16 %v7573_v21, %v7567_v28 }
 0x283   : > { %v2706_v7 = vpop.f32.mrf.mxu1 }
 0x284   : > { %v2384_v2 = vpop.f32.mrf.mxu3 }
 0x285   : > { %v2385_v3 = vadd.f32 %v2384_v2, %v2296_v0  ;;  %2832 = vmatmul.bf16.gmra.mxu2 %v7574_v38  ;;  %v7586_v0 = vld [vmem:[#allocation110_spill] sm:$0xff]  ;;  %v7588_v38 = vld [vmem:[#allocation129_spill] sm:$0xff] }
 0x286   : > { %v7587_v2 = vld [vmem:[#allocation38_spill] sm:$0xff] }
 0x287   : > { %v2618_v8 = vadd.f32 %v6334_v48, %v2385_v3  ;;  %v6554_v51 = vpop.f32.mrf.mxu0 }
 0x289   : > { %v6547_v23 = vadd.f32 %v2706_v7, %v2618_v8  ;;  %2426 = vmatmul.bf16.gmra.mxu3 %v7576_v55  ;;  %v2304_v7 = vadd.f32 %v7587_v2, %v7586_v0  ;;  %v6577_v8 = vrot.slane %v7588_v38, 1  ;;  %v7589_v55 = vld [vmem:[#allocation130_spill] sm:$0xff] }
 0x28b   : > { %v2709_v35 = vpop.f32.mrf.mxu1 }
 0x28c   : > { %v2387_v32 = vpop.f32.mrf.mxu3 }
 0x28d   : > { %v2388_v43 = vadd.f32 %v2387_v32, %v2299_v14  ;;  %v7590_v32 = vld [vmem:[#allocation18_spill] sm:$0xff] }
 0x28e   : > { %2748 = vmatmul.bf16.gmra.mxu1 %v7577_v39 }
 0x28f   : > { %v2621_v59 = vadd.f32 %v6346_v49, %v2388_v43  ;;  %v6567_v24 = vpop.f32.mrf.mxu0 }
 0x291   : > { %v6559_v48 = vadd.f32 %v2709_v35, %v2621_v59  ;;  %v7591_v35 = vld [vmem:[#allocation122_spill] sm:$0xff] }
 0x292   : > { %3439 = vmatmul.bf16.gmra.mxu0 %v7545_v6  ;;  %v7584_v6 = vld [vmem:[#allocation119_spill] sm:$0xff]  ;;  %v1902_v59 = vsel %vm1582_vm1, %v6577_v8, %v7591_v35 }
 0x293   : > { %v2711_v20 = vpop.f32.mrf.mxu1  ;;  %v7585_v31 = vpack.c.bf16 %v7583_v34, %v7584_v6  ;;  %v7596_v34 = vld [vmem:[#allocation113_spill] sm:$0xff] }
 0x294   : > { %v2389_v17 = vpop.f32.mrf.mxu3 }
 0x295   : > { %v2390_v63 = vadd.f32 %v2389_v17, %v2301_v56  ;;  %2837 = vmatmul.bf16.gmra.mxu2 %v7581_v41  ;;  %v7594_v56 = vld [vmem:[#allocation50_spill] sm:$0xff] }
 0x296   : > { %v2306_v17 = vadd.f32 %v7594_v56, %v7593_v12 }
 0x297   : > { %v2623_v1 = vadd.f32 %v7582_v25, %v2390_v63  ;;  %v7595_v63 = vld [vmem:[#allocation7_spill] sm:$0xff] }
 0x298   : > { %v1934_v46 = vmul.f32 %v7595_v63, %v1902_v59 }
 0x299   : > { %v6569_v49 = vadd.f32 %v2711_v20, %v2623_v1  ;;  %2431 = vmatmul.bf16.gmra.mxu3 %v7585_v31  ;;  %v6590_v20 = vpop.f32.mrf.mxu0  ;;  %v7598_v31 = vld [vmem:[#allocation121_spill] sm:$0xff] }
 0x29a   : > { %v7599_v0 = vrot.slane %v7598_v31, 1 }
 0x29b   : > { %v2714_v21 = vpop.f32.mrf.mxu1 }
 0x29c   : > { %v2392_v3 = vpop.f32.mrf.mxu3  ;;  %v6601_v2 = vsel %vm1582_vm1, %v7599_v0, %v6577_v8 }
 0x29d   : > { %v2393_v36 = vadd.f32 %v2392_v3, %v2304_v7  ;;  %v7600_v7 = vld [vmem:[#allocation5_spill] sm:$0xff] }
 0x29e   : > { %2753 = vmatmul.bf16.gmra.mxu1 %v7590_v32 }
 0x29f   : > { %v2626_v14 = vadd.f32 %v7589_v55, %v2393_v36  ;;  %v7601_v36 = vld [vmem:[#allocation21_spill] sm:$0xff]  ;;  %v7602_v55 = vld [vmem:[#allocation35_spill] sm:$0xff] }
 0x2a1   : > { %v6586_v5 = vadd.f32 %v2714_v21, %v2626_v14  ;;  %v1982_v21 = vpack.c.bf16 %v1934_v46, %v6601_v2  ;;  %v2309_v14 = vadd.f32 %v7602_v55, %v7601_v36  ;;  %v6609_v12 = vpop.f32.mrf.mxu0  ;;  %v7605_v46 = vld [vmem:[#allocation15_spill] sm:$0xff] }
 0x2a2   : > { %3444 = vmatmul.bf16.gmra.mxu0 %v7554_v37  ;;  %v7597_v37 = vpack.c.bf16 %v7596_v34, %v5572_v57  ;;  %v7604_v34 = vld [vmem:[#allocation114_spill] sm:$0xff] }
 0x2a3   : > { %v2716_v25 = vpop.f32.mrf.mxu1 }
 0x2a4   : > { %v2394_v41 = vpop.f32.mrf.mxu3 }
 0x2a5   : > { %v2395_v1 = vadd.f32 %v2394_v41, %v2306_v17  ;;  %2842 = vmatmul.bf16.gmra.mxu2 %v7597_v37  ;;  %v7603_v17 = vld [vmem:[#allocation30_spill] sm:$0xff] }
 0x2a7   : > { %v2628_v3 = vadd.f32 %v7600_v7, %v2395_v1 }
 0x2a9   : > { %v6605_v38 = vadd.f32 %v2716_v25, %v2628_v3  ;;  %2436 = vmatmul.bf16.gmra.mxu3 %v1982_v21  ;;  %v7606_v25 = vld [vmem:[#allocation46_spill] sm:$0xff]  ;;  %v7607_v3 = vld [vmem:[#allocation20_spill] sm:$0xff]  ;;  %v6621_v36 = vpop.f32.mrf.mxu0 }
 0x2aa   : > { %v2311_v37 = vadd.f32 %v7606_v25, %v7605_v46  ;;  %v7608_v21 = vpack.c.bf16 %v7607_v3, %v7584_v6 }
 0x2ab   : > { %v2719_v59 = vpop.f32.mrf.mxu1 }
 0x2ac   : > { %v2397_v35 = vpop.f32.mrf.mxu3 }
 0x2ad   : > { %v2398_v56 = vadd.f32 %v2397_v35, %v2309_v14  ;;  %v7609_v35 = vld [vmem:[#allocation19_spill] sm:$0xff] }
 0x2ae   : > { %2758 = vmatmul.bf16.gmra.mxu1 %v7604_v34 }
 0x2af   : > { %v2631_v41 = vadd.f32 %v7603_v17, %v2398_v56 }
 0x2b1   : > { %v6614_v1 = vadd.f32 %v2719_v59, %v2631_v41  ;;  %v7612_v41 = vld [vmem:[#allocation54_spill] sm:$0xff] }
 0x2b2   : > { %3449 = vmatmul.bf16.gmra.mxu0 %v5984_v22  ;;  %v7610_v22 = vld [vmem:[#allocation17_spill] sm:$0xff] }
 0x2b3   : > { %v2721_v0 = vpop.f32.mrf.mxu1  ;;  %v7611_v59 = vpack.c.bf16 %v7609_v35, %v7610_v22 }
 0x2b4   : > { %v2399_v31 = vpop.f32.mrf.mxu3 }
 0x2b5   : > { %v2400_v7 = vadd.f32 %v2399_v31, %v2311_v37  ;;  %2847 = vmatmul.bf16.gmra.mxu2 %v7608_v21  ;;  %v7613_v37 = vld [vmem:[#allocation29_spill] sm:$0xff]  ;;  %v7614_v31 = vld [vmem:[#allocation28_spill] sm:$0xff]  ;;  %v6635_v21 = vpop.f32.mrf.mxu0 }
 0x2b6   : > { %v7615_v3 = vpack.c.bf16 %v7613_v37, %v7614_v31  ;;  %v7621_v31 = vld [vmem:[#allocation51_spill] sm:$0xff] }
 0x2b7   : > { %v2633_v55 = vadd.f32 %v6431_v44, %v2400_v7 }
 0x2b9   : > { %v6624_v14 = vadd.f32 %v2721_v0, %v2633_v55  ;;  %3325 = vmatmul.bf16.vlgmr.msra.gmra.mxu3 %v7611_v59  ;;  %v7616_v55 = vld [vmem:[#allocation69_spill] sm:$0xff] }
 0x2bb   : > { %v2724_v17 = vpop.f32.mrf.mxu1 }
 0x2bc   : > { %v2402_v56 = vpop.f32.mrf.mxu3 }
 0x2bd   : > { %v2403_v46 = vadd.f32 %v2402_v56, %v7612_v41  ;;  %v7618_v56 = vld [vmem:[#allocation36_spill] sm:$0xff] }
 0x2be   : > { %3503 = vmatmul.bf16.vlgmr.msra.gmra.mxu1 %v7615_v3 }
 0x2bf   : > { %v2636_v25 = vadd.f32 %v6447_v10, %v2403_v46  ;;  %v7619_v10 = vld [vmem:[#allocation67_spill] sm:$0xff] }
 0x2c0   : > { %v7620_v41 = vpack.c.bf16 %v7618_v56, %v7619_v10  ;;  %v7625_v56 = vld [vmem:[#allocation64_spill] sm:$0xff] }
 0x2c1   : > { %v6637_v44 = vadd.f32 %v2724_v17, %v2636_v25  ;;  %v7622_v25 = vld [vmem:[#allocation79_spill] sm:$0xff] }
 0x2c2   : > { %3454 = vmatmul.bf16.gmra.mxu0 %v6029_v58  ;;  %v6646_v58 = vpop.f32.mrf.mxu0 }
 0x2c3   : > { %v2726_v7 = vpop.f32.mrf.mxu1 }
 0x2c4   : > { %v2404_v0 = vpop.f32.mrf.mxu3 }
 0x2c5   : > { %v2405_v35 = vadd.f32 %v2404_v0, %v7616_v55  ;;  %v7623_v0 = vld [vmem:[#allocation37_spill] sm:$0xff] }
 0x2c6   : > { %v7624_v55 = vpack.c.bf16 %v7622_v25, %v7623_v0  ;;  %v7630_v25 = vld [vmem:[#allocation74_spill] sm:$0xff] }
 0x2c7   : > { %v2638_v22 = vadd.f32 %v6465_v9, %v2405_v35 }
 0x2c9   : > { %v6641_v59 = vadd.f32 %v2726_v7, %v2638_v22  ;;  %3330 = vmatmul.bf16.gmra.mxu3 %v7620_v41 }
 0x2ca   : > { %v6656_v22 = vpop.f32.mrf.mxu0 }
 0x2cb   : > { %7617 = vst [vmem:[#allocation41_spill] sm:$0xff] %v6641_v59  ;;  %v2729_v37 = vpop.f32.mrf.mxu1 }
 0x2cc   : > { %v2407_v46 = vpop.f32.mrf.mxu3 }
 0x2cd   : > { %v2408_v3 = vadd.f32 %v2407_v46, %v7621_v31  ;;  %v7627_v46 = vld [vmem:[#allocation52_spill] sm:$0xff] }
 0x2ce   : > { %3508 = vmatmul.bf16.gmra.mxu1 %v7624_v55  ;;  %v7631_v55 = vld [vmem:[#allocation85_spill] sm:$0xff] }
 0x2cf   : > { %v2641_v17 = vadd.f32 %v6479_v33, %v2408_v3  ;;  %v7628_v33 = vld [vmem:[#allocation83_spill] sm:$0xff] }
 0x2d0   : > { %v7629_v31 = vpack.c.bf16 %v7627_v46, %v7628_v33 }
 0x2d1   : > { %v6654_v9 = vadd.f32 %v2729_v37, %v2641_v17 }
 0x2d2   : > { %3459 = vmatmul.bf16.gmra.mxu0 %v6061_v30  ;;  %v6666_v37 = vpop.f32.mrf.mxu0 }
 0x2d3   : > { %v2731_v35 = vpop.f32.mrf.mxu1 }
 0x2d4   : > { %v2409_v7 = vpop.f32.mrf.mxu3 }
 0x2d5   : > { %v2410_v10 = vadd.f32 %v2409_v7, %v7625_v56  ;;  %v7632_v7 = vld [vmem:[#allocation53_spill] sm:$0xff] }
 0x2d6   : > { %v7633_v56 = vpack.c.bf16 %v7631_v55, %v7632_v7  ;;  %v7638_v55 = vld [vmem:[#allocation70_spill] sm:$0xff] }
 0x2d7   : > { %v2643_v41 = vadd.f32 %v6494_v13, %v2410_v10 }
 0x2d9   : > { %v6660_v59 = vadd.f32 %v2731_v35, %v2643_v41  ;;  %3335 = vmatmul.bf16.gmra.mxu3 %v7629_v31  ;;  %v7634_v41 = vld [vmem:[#allocation84_spill] sm:$0xff] }
 0x2da   : > { %v6677_v31 = vpop.f32.mrf.mxu0 }
 0x2db   : > { %7626 = vst [vmem:[#allocation33_spill] sm:$0xff] %v6660_v59  ;;  %v2734_v3 = vpop.f32.mrf.mxu1 }
 0x2dc   : > { %v2412_v30 = vpop.f32.mrf.mxu3 }
 0x2dd   : > { %v2413_v0 = vadd.f32 %v2412_v30, %v7630_v25  ;;  %v7635_v25 = vld [vmem:[#allocation72_spill] sm:$0xff] }
 0x2de   : > { %3513 = vmatmul.bf16.gmra.mxu1 %v7633_v56  ;;  %v7640_v56 = vld [vmem:[#allocation71_spill] sm:$0xff] }
 0x2df   : > { %v2646_v17 = vadd.f32 %v6507_v15, %v2413_v0  ;;  %v7636_v15 = vld [vmem:[#allocation86_spill] sm:$0xff] }
 0x2e0   : > { %v7637_v0 = vpack.c.bf16 %v7635_v25, %v7636_v15 }
 0x2e1   : > { %v6673_v13 = vadd.f32 %v2734_v3, %v2646_v17  ;;  %v7639_v17 = vld [vmem:[#allocation87_spill] sm:$0xff] }
 0x2e2   : > { %3464 = vmatmul.bf16.gmra.mxu0 %v6085_v45 }
 0x2e3   : > { %v2736_v10 = vpop.f32.mrf.mxu1 }
 0x2e4   : > { %v2414_v35 = vpop.f32.mrf.mxu3 }
 0x2e5   : > { %v2415_v46 = vadd.f32 %v2414_v35, %v7634_v41  ;;  %v7641_v35 = vpack.c.bf16 %v7639_v17, %v7640_v56 }
 0x2e7   : > { %v2648_v33 = vadd.f32 %v6527_v47, %v2415_v46 }
 0x2e9   : > { %v6679_v30 = vadd.f32 %v2736_v10, %v2648_v33  ;;  %3340 = vmatmul.bf16.gmra.mxu3 %v7637_v0  ;;  %v6692_v10 = vpop.f32.mrf.mxu0  ;;  %v7642_v33 = vld [vmem:[#allocation82_spill] sm:$0xff] }
 0x2eb   : > { %v2739_v59 = vpop.f32.mrf.mxu1 }
 0x2ec   : > { %v2417_v45 = vpop.f32.mrf.mxu3 }
 0x2ed   : > { %v2418_v7 = vadd.f32 %v2417_v45, %v7638_v55  ;;  %v7644_v45 = vld [vmem:[#allocation93_spill] sm:$0xff] }
 0x2ee   : > { %3518 = vmatmul.bf16.gmra.mxu1 %v7641_v35  ;;  %v7648_v35 = vld [vmem:[#allocation106_spill] sm:$0xff] }
 0x2ef   : > { %v2651_v3 = vadd.f32 %v6541_v54, %v2418_v7  ;;  %v7645_v54 = vld [vmem:[#allocation96_spill] sm:$0xff] }
 0x2f0   : > { %v7646_v55 = vpack.c.bf16 %v7644_v45, %v7645_v54 }
 0x2f1   : > { %v6690_v47 = vadd.f32 %v2739_v59, %v2651_v3  ;;  %v6701_v17 = vpop.f32.mrf.mxu0  ;;  %v7647_v59 = vld [vmem:[#allocation95_spill] sm:$0xff] }
 0x2f2   : > { %3469 = vmatmul.bf16.gmra.mxu0 %v7577_v39 }
 0x2f3   : > { %v2741_v46 = vpop.f32.mrf.mxu1 }
 0x2f4   : > { %v2419_v41 = vpop.f32.mrf.mxu3 }
 0x2f5   : > { %v2420_v25 = vadd.f32 %v2419_v41, %v7642_v33  ;;  %v7649_v41 = vld [vmem:[#allocation91_spill] sm:$0xff] }
 0x2f6   : > { %v7650_v33 = vpack.c.bf16 %v7648_v35, %v7649_v41  ;;  %v7655_v35 = vld [vmem:[#allocation4_spill] sm:$0xff] }
 0x2f7   : > { %v2653_v15 = vadd.f32 %v6554_v51, %v2420_v25 }
 0x2f9   : > { %v6696_v0 = vadd.f32 %v2741_v46, %v2653_v15  ;;  %3345 = vmatmul.bf16.gmra.mxu3 %v7646_v55  ;;  %v7651_v15 = vld [vmem:[#allocation116_spill] sm:$0xff]  ;;  %v6712_v54 = vpop.f32.mrf.mxu0 }
 0x2fb   : > { %7643 = vst [vmem:[#allocation47_spill] sm:$0xff] %v6696_v0  ;;  %v2744_v7 = vpop.f32.mrf.mxu1 }
 0x2fc   : > { %v2422_v39 = vpop.f32.mrf.mxu3 }
 0x2fd   : > { %v2423_v3 = vadd.f32 %v2422_v39, %v7647_v59  ;;  %v7652_v39 = vld [vmem:[#allocation112_spill] sm:$0xff] }
 0x2fe   : > { %3523 = vmatmul.bf16.gmra.mxu1 %v7650_v33 }
 0x2ff   : > { %v2656_v56 = vadd.f32 %v6567_v24, %v2423_v3  ;;  %v7653_v24 = vld [vmem:[#allocation107_spill] sm:$0xff] }
 0x300   : > { %v7654_v59 = vpack.c.bf16 %v7652_v39, %v7653_v24 }
 0x301   : > { %v6709_v51 = vadd.f32 %v2744_v7, %v2656_v56  ;;  %v7656_v56 = vld [vmem:[#allocation123_spill] sm:$0xff] }
 0x302   : > { %3474 = vmatmul.bf16.gmra.mxu0 %v7590_v32  ;;  %v7657_v33 = vpack.c.bf16 %v7656_v56, %v5675_v4 }
 0x303   : > { %v2746_v25 = vpop.f32.mrf.mxu1 }
 0x304   : > { %v2424_v46 = vpop.f32.mrf.mxu3 }
 0x305   : > { %v2425_v45 = vadd.f32 %v2424_v46, %v7651_v15  ;;  %v6726_v46 = vpop.f32.mrf.mxu0 }
 0x307   : > { %v2658_v55 = vadd.f32 %v6590_v20, %v2425_v45  ;;  %v7658_v45 = vld [vmem:[#allocation40_spill] sm:$0xff] }
 0x309   : > { %v6715_v0 = vadd.f32 %v2746_v25, %v2658_v55  ;;  %3350 = vmatmul.bf16.gmra.mxu3 %v7654_v59  ;;  %v7659_v59 = vld [vmem:[#allocation127_spill] sm:$0xff] }
 0x30b   : > { %v2749_v3 = vpop.f32.mrf.mxu1 }
 0x30c   : > { %v2427_v32 = vpop.f32.mrf.mxu3 }
 0x30d   : > { %v2428_v41 = vadd.f32 %v2427_v32, %v7655_v35 }
 0x30e   : > { %3528 = vmatmul.bf16.gmra.mxu1 %v7657_v33  ;;  %v7664_v33 = vld [vmem:[#allocation14_spill] sm:$0xff] }
 0x30f   : > { %v2661_v7 = vadd.f32 %v6609_v12, %v2428_v41  ;;  %v7660_v12 = vld [vmem:[#allocation124_spill] sm:$0xff] }
 0x310   : > { %v7661_v32 = vpack.c.bf16 %v7659_v59, %v7660_v12  ;;  %v7662_v41 = vld [vmem:[#allocation128_spill] sm:$0xff] }
 0x311   : > { %v6728_v20 = vadd.f32 %v2749_v3, %v2661_v7  ;;  %v7663_v7 = vld [vmem:[#allocation11_spill] sm:$0xff] }
 0x312   : > { %3479 = vmatmul.bf16.gmra.mxu0 %v7604_v34  ;;  %v6737_v34 = vpop.f32.mrf.mxu0 }
 0x313   : > { %v2751_v15 = vpop.f32.mrf.mxu1 }
 0x314   : > { %v2429_v25 = vpop.f32.mrf.mxu3 }
 0x315   : > { %v2430_v55 = vadd.f32 %v2429_v25, %v7658_v45  ;;  %v7665_v25 = vpack.c.bf16 %v7664_v33, %v5865_v26  ;;  %v7673_v33 = vld [vmem:[#allocation10_spill] sm:$0xff] }
 0x317   : > { %v2663_v39 = vadd.f32 %v6621_v36, %v2430_v55 }
 0x319   : > { %v6732_v24 = vadd.f32 %v2751_v15, %v2663_v39  ;;  %3355 = vmatmul.bf16.gmra.mxu3 %v7661_v32  ;;  %v7667_v39 = vld [vmem:[#allocation45_spill] sm:$0xff] }
 0x31a   : > { %v6747_v55 = vpop.f32.mrf.mxu0 }
 0x31b   : > { %v2754_v35 = vpop.f32.mrf.mxu1 }
 0x31c   : > { %v2432_v4 = vpop.f32.mrf.mxu3 }
 0x31d   : > { %v2433_v56 = vadd.f32 %v2432_v4, %v7662_v41  ;;  %v7669_v4 = vld [vmem:[#allocation8_spill] sm:$0xff] }
 0x31e   : > { %3533 = vmatmul.bf16.gmra.mxu1 %v7665_v25 }
 0x31f   : > { %v2666_v3 = vadd.f32 %v6635_v21, %v2433_v56  ;;  %v7670_v21 = vld [vmem:[#allocation31_spill] sm:$0xff] }
 0x320   : > { %v7671_v41 = vpack.c.bf16 %v7669_v4, %v7670_v21  ;;  %v7672_v56 = vld [vmem:[#allocation3_spill] sm:$0xff]  ;;  %v7675_v21 = vld [vmem:[#allocation62_spill] sm:$0xff] }
 0x321   : > { %v6745_v36 = vadd.f32 %v2754_v35, %v2666_v3 }
 0x322   : > { %3484 = vmatmul.bf16.gmra.mxu0 %v7663_v7  ;;  %v6757_v7 = vmul.f32 0.0, %v7672_v56  ;;  %v7676_v56 = vld [vmem:[#allocation133_spill] sm:$0xff] }
 0x323   : > { %7666 = vst [vmem:[#allocation80_spill] sm:$0xff] %v6745_v36  ;;  %v2756_v45 = vpop.f32.mrf.mxu1  ;;  %v7678_v36 = vld [vmem:[#allocation24_spill] sm:$0xff] }
 0x324   : > { %v2434_v15 = vpop.f32.mrf.mxu3  ;;  %v3123_v25 = vpack.c.bf16 %v7673_v33, %v6757_v7 }
 0x325   : > { %v2435_v59 = vadd.f32 %v2434_v15, %v7667_v39  ;;  %v7674_v15 = vld [vmem:[#allocation97_spill] sm:$0xff] }
 0x326   : > { %v3100_v39 = vpack.c.bf16 %v7674_v15, %v7553_v42 }
 0x327   : > { %v2668_v12 = vadd.f32 %v6646_v58, %v2435_v59  ;;  %v6764_v58 = vpop.f32.mrf.mxu0 }
 0x329   : > { %v6751_v32 = vadd.f32 %v2756_v45, %v2668_v12  ;;  %3360 = vmatmul.bf16.gmra.mxu3 %v7671_v41 }
 0x32b   : > { %7668 = vst [vmem:[#allocation58_spill] sm:$0xff] %v6751_v32  ;;  %v2759_v35 = vpop.f32.mrf.mxu1 }
 0x32c   : > { %v2437_v26 = vpop.f32.mrf.mxu3 }
 0x32d   : > { %v2438_v3 = vadd.f32 %v2437_v26, %v6424_v61  ;;  %v7677_v61 = vld [vmem:[#allocation115_spill] sm:$0xff] }
 0x32e   : > { %3538 = vmatmul.bf16.gmra.mxu1 %v3100_v39  ;;  %v2965_v26 = vmul.f32 %v7677_v61, %v7676_v56 }
 0x32f   : > { %v2671_v45 = vadd.f32 %v6656_v22, %v2438_v3 }
 0x330   : > { %v3101_v42 = vpack.c.bf16 %v7678_v36, %v2965_v26 }
 0x331   : > { %v6767_v59 = vadd.f32 %v2759_v35, %v2671_v45 }
 0x332   : > { %3489 = vmatmul.bf16.gmra.mxu0 %v3123_v25  ;;  %v7679_v25 = vld [vmem:[#allocation99_spill] sm:$0xff] }
 0x333   : > { %v2761_v4 = vpop.f32.mrf.mxu1  ;;  %v7680_v39 = vpack.c.bf16 %v7679_v25, %v7558_v62 }
 0x334   : > { %v2439_v12 = vpop.f32.mrf.mxu3 }
 0x335   : > { %v2440_v41 = vadd.f32 %v2439_v12, %v7675_v21 }
 0x337   : > { %v2673_v32 = vadd.f32 %v6666_v37, %v2440_v41 }
 0x339   : > { %v6774_v15 = vadd.f32 %v2761_v4, %v2673_v32  ;;  %3365 = vmatmul.bf16.gmra.mxu3 %v3101_v42  ;;  %v7681_v32 = vld [vmem:[#allocation42_spill] sm:$0xff]  ;;  %v7682_v4 = vld [vmem:[#allocation104_spill] sm:$0xff] }
 0x33a   : > { %v7683_v61 = vpack.c.bf16 %v7681_v32, %v7682_v4 }
 0x33b   : > { %v3504_v3 = vpop.f32.mrf.mxu1 }
 0x33c   : > { %v3326_v22 = vpop.f32.mrf.mxu3 }
 0x33d   : > { %v3416_v35 = vadd.f32 %v6677_v31, %v3326_v22  ;;  %v6793_v22 = vpop.f32.mrf.mxu2 }
 0x33e   : > { %3543 = vmatmul.bf16.gmra.mxu1 %v7680_v39  ;;  %v7684_v39 = vld [vmem:[#allocation108_spill] sm:$0xff] }
 0x33f   : > { %v3505_v45 = vadd.f32 %v3504_v3, %v3416_v35 }
 0x341   : > { %v3584_v37 = vadd.f32 %v3505_v45, %v6449_v18  ;;  %v7685_v45 = vpack.c.bf16 %v7684_v39, %v7562_v50  ;;  %v7687_v50 = vld [vmem:[#allocation55_spill] sm:$0xff]  ;;  %v7689_v39 = vld [vmem:[#allocation73_spill] sm:$0xff] }
 0x343   : > { %v3506_v21 = vpop.f32.mrf.mxu1  ;;  %v3717_v62 = vmul.f32 %v3584_v37, %v3584_v37 }
 0x344   : > { %v3328_v12 = vpop.f32.mrf.mxu3 }
 0x345   : > { %v3418_v56 = vadd.f32 %v6692_v10, %v3328_v12  ;;  %v6804_v4 = vpop.f32.mrf.mxu2 }
 0x347   : > { %v3507_v41 = vadd.f32 %v3506_v21, %v3418_v56 }
 0x349   : > { %v3585_v36 = vadd.f32 %v3507_v41, %v6461_v11  ;;  %3370 = vmatmul.bf16.gmra.mxu3 %v7683_v61  ;;  %v6795_v11 = vpop.f32.mrf.mxu0 }
 0x34b   : > { %v4403_v31 = vpack.c.bf16 %v3585_v36, %v3584_v37  ;;  %v3680_v26 = vadd.f32 %v3585_v36, %v3584_v37  ;;  %v3718_v10 = vmul.f32 %v3585_v36, %v3585_v36  ;;  %v3509_v18 = vpop.f32.mrf.mxu1 }
 0x34c   : > { %v3331_v42 = vpop.f32.mrf.mxu3 }
 0x34d   : > { %4404 = vst [vmem:[%s6791_s25] sm:$0xff] %v4403_v31   ;;  %v3749_v3 = vadd.f32 %v3718_v10, %v3717_v62  ;;  %v3421_v35 = vadd.f32 %v6701_v17, %v3331_v42  ;;  %v7686_v31 = vld [vmem:[#allocation59_spill] sm:$0xff] }
 0x34e   : > { %3548 = vmatmul.bf16.gmra.mxu1 %v7685_v45  ;;  %v7688_v10 = vpack.c.bf16 %v7686_v31, %v7687_v50  ;;  %v7690_v45 = vpack.c.bf16 %v7689_v39, %v7567_v28  ;;  %v7691_v31 = vld [vmem:[#allocation78_spill] sm:$0xff]  ;;  %v7692_v28 = vld [vmem:[#allocation13_spill] sm:$0xff] }
 0x34f   : > { %v3510_v25 = vadd.f32 %v3509_v18, %v3421_v35  ;;  %v7693_v50 = vpack.c.bf16 %v7691_v31, %v7692_v28 }
 0x351   : > { %v3586_v12 = vadd.f32 %v3510_v25, %v6469_v52  ;;  %v6806_v61 = vpop.f32.mrf.mxu0 }
 0x353   : > { %v3681_v21 = vadd.f32 %v3680_v26, %v3586_v12  ;;  %v3719_v56 = vmul.f32 %v3586_v12, %v3586_v12  ;;  %v3511_v41 = vpop.f32.mrf.mxu1 }
 0x354   : > { %v3333_v37 = vpop.f32.mrf.mxu3 }
 0x355   : > { %v3750_v36 = vadd.f32 %v3749_v3, %v3719_v56  ;;  %v3423_v32 = vadd.f32 %v6712_v54, %v3333_v37  ;;  %v6817_v56 = vpop.f32.mrf.mxu2 }
 0x357   : > { %v3512_v17 = vadd.f32 %v3511_v41, %v3423_v32 }
 0x359   : > { %v3587_v62 = vadd.f32 %v3512_v17, %v6484_v60  ;;  %3375 = vmatmul.bf16.gmra.mxu3 %v7688_v10  ;;  %v6819_v60 = vpop.f32.mrf.mxu0 }
 0x35b   : > { %v4408_v52 = vpack.c.bf16 %v3587_v62, %v3586_v12  ;;  %v3682_v26 = vadd.f32 %v3681_v21, %v3587_v62  ;;  %v3720_v42 = vmul.f32 %v3587_v62, %v3587_v62  ;;  %v3514_v35 = vpop.f32.mrf.mxu1 }
 0x35c   : > { %v3336_v18 = vpop.f32.mrf.mxu3 }
 0x35d   : > { %4480 = vst [vmem:[%s6791_s25 + $0x8] sm:$0xff] %v4408_v52   ;;  %v3751_v3 = vadd.f32 %v3750_v36, %v3720_v42  ;;  %v3426_v54 = vadd.f32 %v6726_v46, %v3336_v18  ;;  %v6827_v10 = vpop.f32.mrf.mxu2 }
 0x35e   : > { %3553 = vmatmul.bf16.gmra.mxu1 %v7690_v45 }
 0x35f   : > { %v3515_v25 = vadd.f32 %v3514_v35, %v3426_v54 }
 0x361   : > { %v3588_v37 = vadd.f32 %v3515_v25, %v6497_v19  ;;  %v6829_v52 = vpop.f32.mrf.mxu0  ;;  %v7694_v25 = vld [vmem:[#allocation57_spill] sm:$0xff] }
 0x363   : > { %v3683_v12 = vadd.f32 %v3682_v26, %v3588_v37  ;;  %v3721_v21 = vmul.f32 %v3588_v37, %v3588_v37  ;;  %v3516_v32 = vpop.f32.mrf.mxu1 }
 0x364   : > { %v3338_v41 = vpop.f32.mrf.mxu3 }
 0x365   : > { %v3752_v17 = vadd.f32 %v3751_v3, %v3721_v21  ;;  %v3428_v36 = vadd.f32 %v6737_v34, %v3338_v41 }
 0x367   : > { %v3517_v46 = vadd.f32 %v3516_v32, %v3428_v36 }
 0x369   : > { %v3589_v62 = vadd.f32 %v3517_v46, %v6509_v40  ;;  %3380 = vmatmul.bf16.gmra.mxu3 %v7693_v50  ;;  %v7695_v40 = vpack.c.bf16 %v7694_v25, %v5362_v53  ;;  %v6839_v32 = vpop.f32.mrf.mxu0  ;;  %v7697_v53 = vld [vmem:[#allocation48_spill] sm:$0xff] }
 0x36b   : > { %v4413_v19 = vpack.c.bf16 %v3589_v62, %v3588_v37  ;;  %v3684_v26 = vadd.f32 %v3683_v12, %v3589_v62  ;;  %v3722_v42 = vmul.f32 %v3589_v62, %v3589_v62  ;;  %v3519_v35 = vpop.f32.mrf.mxu1  ;;  %v6837_v12 = vpop.f32.mrf.mxu2  ;;  %v7696_v62 = vld [vmem:[#allocation98_spill] sm:$0xff] }
 0x36c   : > { %v3341_v18 = vpop.f32.mrf.mxu3  ;;  %v7698_v31 = vpack.c.bf16 %v7696_v62, %v7697_v53 }
 0x36d   : > { %4481 = vst [vmem:[%s6791_s25 + $0x10] sm:$0xff] %v4413_v19   ;;  %v3753_v3 = vadd.f32 %v3752_v17, %v3722_v42  ;;  %v3431_v34 = vadd.f32 %v6747_v55, %v3341_v18 }
 0x36e   : > { %3558 = vmatmul.bf16.gmra.mxu1 %v7695_v40 }
 0x36f   : > { %v3520_v54 = vadd.f32 %v3519_v35, %v3431_v34  ;;  %v2794_v35 = vadd.f32 %v6793_v22, %v6532_v16  ;;  %v7699_v34 = vld [vmem:[#allocation134_spill] sm:$0xff]  ;;  %v2796_v16 = vadd.f32 %v6804_v4, %v6547_v23  ;;  %v2799_v23 = vadd.f32 %v6817_v56, %v6559_v48 }
 0x370   : > { %v2801_v56 = vadd.f32 %v6827_v10, %v6569_v49 }
 0x371   : > { %v3590_v39 = vadd.f32 %v3520_v54, %v6517_v29  ;;  %v7700_v54 = vpack.c.bf16 %v7699_v34, %v5572_v57  ;;  %v7701_v57 = vld [vmem:[#allocation118_spill] sm:$0xff] }
 0x373   : > { %v3685_v45 = vadd.f32 %v3684_v26, %v3590_v39  ;;  %v3723_v21 = vmul.f32 %v3590_v39, %v3590_v39  ;;  %v3521_v37 = vpop.f32.mrf.mxu1 }
 0x374   : > { %v3343_v41 = vpop.f32.mrf.mxu3 }
 0x375   : > { %v3754_v36 = vadd.f32 %v3753_v3, %v3723_v21  ;;  %v3433_v17 = vadd.f32 %v6764_v58, %v3343_v41  ;;  %v6850_v58 = vpop.f32.mrf.mxu2  ;;  %v6852_v3 = vpop.f32.mrf.mxu0 }
 0x377   : > { %v3522_v55 = vadd.f32 %v3521_v37, %v3433_v17 }
 0x379   : > { %v3591_v46 = vadd.f32 %v3522_v55, %v6534_v27  ;;  %3385 = vmatmul.bf16.gmra.mxu3 %v7698_v31  ;;  %v7702_v55 = vld [vmem:[#allocation16_spill] sm:$0xff] }
 0x37b   : > { %v4418_v29 = vpack.c.bf16 %v3591_v46, %v3590_v39  ;;  %v3686_v28 = vadd.f32 %v3685_v45, %v3591_v46  ;;  %v3724_v50 = vmul.f32 %v3591_v46, %v3591_v46  ;;  %v3524_v26 = vpop.f32.mrf.mxu1  ;;  %v7703_v46 = vpack.c.bf16 %v7701_v57, %v7702_v55 }
 0x37c   : > { %v3346_v19 = vpop.f32.mrf.mxu3 }
 0x37d   : > { %4482 = vst [vmem:[%s6791_s25 + $0x18] sm:$0xff] %v4418_v29   ;;  %v3755_v42 = vadd.f32 %v3754_v36, %v3724_v50  ;;  %v3436_v18 = vadd.f32 %v6795_v11, %v3346_v19  ;;  %v6860_v37 = vpop.f32.mrf.mxu2  ;;  %v6862_v36 = vpop.f32.mrf.mxu0  ;;  %v7704_v19 = vld [vmem:[#allocation65_spill] sm:$0xff] }
 0x37e   : > { %3563 = vmatmul.bf16.gmra.mxu1 %v7700_v54 }
 0x37f   : > { %v3525_v27 = vadd.f32 %v3524_v26, %v3436_v18  ;;  %v7705_v26 = vpack.c.bf16 %v7704_v19, %v7584_v6 }
 0x381   : > { %v3592_v25 = vadd.f32 %v3525_v27, %v2794_v35 }
 0x383   : > { %v3687_v40 = vadd.f32 %v3686_v28, %v3592_v25  ;;  %v3725_v39 = vmul.f32 %v3592_v25, %v3592_v25  ;;  %v3526_v21 = vpop.f32.mrf.mxu1 }
 0x384   : > { %v3348_v45 = vpop.f32.mrf.mxu3 }
 0x385   : > { %v3756_v41 = vadd.f32 %v3755_v42, %v3725_v39  ;;  %v3438_v11 = vadd.f32 %v6806_v61, %v3348_v45  ;;  %v6874_v18 = vpop.f32.mrf.mxu2  ;;  %v6876_v35 = vpop.f32.mrf.mxu0 }
 0x387   : > { %v3527_v22 = vadd.f32 %v3526_v21, %v3438_v11  ;;  %v7706_v21 = vld [vmem:[#allocation6_spill] sm:$0xff] }
 0x389   : > { %v3593_v17 = vadd.f32 %v3527_v22, %v2796_v16  ;;  %3390 = vmatmul.bf16.gmra.mxu3 %v7703_v46  ;;  %v7709_v16 = vld [vmem:[#allocation103_spill] sm:$0xff] }
 0x38b   : > { %v4423_v62 = vpack.c.bf16 %v3593_v17, %v3592_v25  ;;  %v3688_v53 = vadd.f32 %v3687_v40, %v3593_v17  ;;  %v3726_v31 = vmul.f32 %v3593_v17, %v3593_v17  ;;  %v3529_v28 = vpop.f32.mrf.mxu1  ;;  %v3011_v40 = vrot.slane %v6757_v7, 1 }
 0x38c   : > { %v3351_v29 = vpop.f32.mrf.mxu3 }
 0x38d   : > { %4483 = vst [vmem:[%s6791_s25 + $0x20] sm:$0xff] %v4423_v62   ;;  %v3757_v61 = vadd.f32 %v3756_v41, %v3726_v31  ;;  %v3441_v50 = vadd.f32 %v6819_v60, %v3351_v29  ;;  %v3014_v6 = vsel %vm1582_vm1, %v6577_v8, %v3011_v40  ;;  %v7707_v41 = vld [vmem:[#allocation126_spill] sm:$0xff]  ;;  %v6889_v62 = vpop.f32.mrf.mxu2  ;;  %v2915_v31 = vrot.slane %v6757_v7, 7 }
 0x38e   : > { %3568 = vmatmul.bf16.gmra.mxu1 %v7705_v26  ;;  %v7708_v11 = vpack.c.bf16 %v7706_v21, %v7707_v41  ;;  %v3074_v22 = vmul.f32 %v7709_v16, %v3014_v6  ;;  %v2804_v29 = vadd.f32 %v6837_v12, %v6586_v5  ;;  %v7711_v26 = vld [vmem:[#allocation102_spill] sm:$0xff]  ;;  %v7712_v5 = vrot.slane %v7673_v33, 7 }
 0x38f   : > { %v3530_v4 = vadd.f32 %v3529_v28, %v3441_v50 }
 0x390   : > { %v3121_v10 = vpack.c.bf16 %v3074_v22, %v6601_v2  ;;  %v3012_v2 = vrot.slane %v7673_v33, 1  ;;  %v2917_v12 = vsel %vm1485_vm0, %v2915_v31, %v7712_v5 }
 0x391   : > { %v3594_v42 = vadd.f32 %v3530_v4, %v2799_v23 }
 0x392   : > { %v3013_v22 = vsel %vm1582_vm1, %v3011_v40, %v3012_v2 }
 0x393   : > { %v3689_v27 = vadd.f32 %v3688_v53, %v3594_v42  ;;  %v3727_v34 = vmul.f32 %v3594_v42, %v3594_v42  ;;  %v3531_v25 = vpop.f32.mrf.mxu1  ;;  %v6891_v53 = vpop.f32.mrf.mxu0 }
 0x394   : > { %v3353_v54 = vpop.f32.mrf.mxu3 }
 0x395   : > { %v3758_v60 = vadd.f32 %v3757_v61, %v3727_v34  ;;  %v3443_v48 = vadd.f32 %v6829_v52, %v3353_v54  ;;  %v7710_v61 = vld [vmem:[#allocation131_spill] sm:$0xff]  ;;  %v7713_v54 = vld [vmem:[#allocation25_spill] sm:$0xff] }
 0x396   : > { %v2918_v50 = vsel %vm1485_vm0, %v7710_v61, %v2915_v31  ;;  %vm3786_vm0 = vcmask 1040384  }
 0x397   : > { %v3532_v39 = vadd.f32 %v3531_v25, %v3443_v48  ;;  %v3044_v25 = vsel %vm1582_vm1, %v3012_v2, %v7713_v54  ;;  %v2815_v48 = vpop.f32.mrf.mxu2 }
 0x399   : > { %v3595_v45 = vadd.f32 %v3532_v39, %v2801_v56  ;;  %3395 = vmatmul.bf16.gmra.mxu3 %v7708_v11 }
 0x39b   : > { %v4428_v17 = vpack.c.bf16 %v3595_v45, %v3594_v42  ;;  %v3690_v57 = vadd.f32 %v3689_v27, %v3595_v45  ;;  %v3728_v55 = vmul.f32 %v3595_v45, %v3595_v45  ;;  %v3534_v52 = vpop.f32.mrf.mxu1  ;;  %v2979_v42 = vmul.f32 %v7711_v26, %v2918_v50  ;;  %v3457_v6 = vpop.f32.mrf.mxu0 }
 0x39c   : > { %v3356_v46 = vpop.f32.mrf.mxu3 }
 0x39d   : > { %4484 = vst [vmem:[%s6791_s25 + $0x28] sm:$0xff] %v4428_v17   ;;  %v3759_v8 = vadd.f32 %v3758_v60, %v3728_v55  ;;  %v3446_v49 = vadd.f32 %v6839_v32, %v3356_v46  ;;  %v2806_v60 = vadd.f32 %v6850_v58, %v6605_v38  ;;  %v3122_v39 = vpack.c.bf16 %v2917_v12, %v2979_v42 }
 0x39e   : > { %3573 = vmatmul.bf16.gmra.mxu1 %v3121_v10 }
 0x39f   : > { %v3535_v28 = vadd.f32 %v3534_v52, %v3446_v49  ;;  %v2818_v46 = vpop.f32.mrf.mxu2 }
 0x3a1   : > { %v3596_v23 = vadd.f32 %v3535_v28, %v2804_v29 }
 0x3a3   : > { %v3691_v4 = vadd.f32 %v3690_v57, %v3596_v23  ;;  %v3729_v19 = vmul.f32 %v3596_v23, %v3596_v23  ;;  %v3536_v32 = vpop.f32.mrf.mxu1  ;;  %v2809_v57 = vadd.f32 %v6860_v37, %v6614_v1 }
 0x3a4   : > { %v3358_v27 = vpop.f32.mrf.mxu3 }
 0x3a5   : > { %v3760_v34 = vadd.f32 %v3759_v8, %v3729_v19  ;;  %v3448_v7 = vadd.f32 %v6852_v3, %v3358_v27  ;;  %v3076_v3 = vmul.f32 %v7595_v63, %v3044_v25  ;;  %v3460_v63 = vpop.f32.mrf.mxu0  ;;  %v2814_v27 = vadd.f32 %v6889_v62, %v6637_v44  ;;  %v7714_v25 = vld [vmem:[#allocation41_spill] sm:$0xff] }
 0x3a7   : > { %v3537_v56 = vadd.f32 %v3536_v32, %v3448_v7  ;;  %v3124_v58 = vpack.c.bf16 %v3076_v3, %v3013_v22  ;;  %v2820_v61 = vpop.f32.mrf.mxu2 }
 0x3a9   : > { %v3597_v45 = vadd.f32 %v3537_v56, %v2806_v60  ;;  %3400 = vmatmul.bf16.gmra.mxu3 %v3122_v39  ;;  %v2816_v60 = vadd.f32 %v2815_v48, %v7714_v25 }
 0x3ab   : > { %v4433_v33 = vpack.c.bf16 %v3597_v45, %v3596_v23  ;;  %v3692_v21 = vadd.f32 %v3691_v4, %v3597_v45  ;;  %v3730_v41 = vmul.f32 %v3597_v45, %v3597_v45  ;;  %v3539_v16 = vpop.f32.mrf.mxu1 }
 0x3ac   : > { %v3361_v11 = vpop.f32.mrf.mxu3 }
 0x3ad   : > { %4485 = vst [vmem:[%s6791_s25 + $0x30] sm:$0xff] %v4433_v33   ;;  %v3761_v17 = vadd.f32 %v3760_v34, %v3730_v41  ;;  %v3451_v38 = vadd.f32 %v6862_v36, %v3361_v11  ;;  %v2811_v36 = vadd.f32 %v6874_v18, %v6624_v14  ;;  %v3462_v1 = vpop.f32.mrf.mxu0  ;;  %v2819_v41 = vadd.f32 %v2818_v46, %v6654_v9 }
 0x3ae   : > { %3578 = vmatmul.bf16.gmra.mxu1 %v3124_v58 }
 0x3af   : > { %v3540_v55 = vadd.f32 %v3539_v16, %v3451_v38  ;;  %v2823_v7 = vpop.f32.mrf.mxu2 }
 0x3b1   : > { %v3598_v52 = vadd.f32 %v3540_v55, %v2809_v57 }
 0x3b3   : > { %v3693_v8 = vadd.f32 %v3692_v21, %v3598_v52  ;;  %v3731_v49 = vmul.f32 %v3598_v52, %v3598_v52  ;;  %v3541_v31 = vpop.f32.mrf.mxu1 }
 0x3b4   : > { %v3363_v10 = vpop.f32.mrf.mxu3 }
 0x3b5   : > { %v3762_v43 = vadd.f32 %v3761_v17, %v3731_v49  ;;  %v3453_v40 = vadd.f32 %v6876_v35, %v3363_v10  ;;  %v3465_v5 = vpop.f32.mrf.mxu0 }
 0x3b7   : > { %v3542_v29 = vadd.f32 %v3541_v31, %v3453_v40  ;;  %v2825_v11 = vpop.f32.mrf.mxu2 }
 0x3b9   : > { %v3599_v28 = vadd.f32 %v3542_v29, %v2811_v36 }
 0x3bb   : > { %v4438_v37 = vpack.c.bf16 %v3599_v28, %v3598_v52  ;;  %v3694_v50 = vadd.f32 %v3693_v8, %v3599_v28  ;;  %v3732_v23 = vmul.f32 %v3599_v28, %v3599_v28  ;;  %v3544_v19 = vpop.f32.mrf.mxu1  ;;  %v7715_v52 = vld [vmem:[#allocation33_spill] sm:$0xff] }
 0x3bc   : > { %v3366_v4 = vpop.f32.mrf.mxu3  ;;  %v2821_v8 = vadd.f32 %v2820_v61, %v7715_v52 }
 0x3bd   : > { %4486 = vst [vmem:[%s6791_s25 + $0x38] sm:$0xff] %v4438_v37   ;;  %v3763_v26 = vadd.f32 %v3762_v43, %v3732_v23  ;;  %v3456_v42 = vadd.f32 %v6891_v53, %v3366_v4  ;;  %v3467_v16 = vpop.f32.mrf.mxu0  ;;  %v2824_v37 = vadd.f32 %v2823_v7, %v6673_v13 }
 0x3bf   : > { %v3545_v35 = vadd.f32 %v3544_v19, %v3456_v42  ;;  %v2828_v10 = vpop.f32.mrf.mxu2 }
 0x3c1   : > { %v3600_v32 = vadd.f32 %v3545_v35, %v2814_v27 }
 0x3c3   : > { %v3695_v2 = vadd.f32 %v3694_v50, %v3600_v32  ;;  %v3733_v14 = vmul.f32 %v3600_v32, %v3600_v32  ;;  %v3546_v34 = vpop.f32.mrf.mxu1 }
 0x3c4   : > { %v3368_v18 = vpop.f32.mrf.mxu3 }
 0x3c5   : > { %v3764_v12 = vadd.f32 %v3763_v26, %v3733_v14  ;;  %v3458_v54 = vadd.f32 %v3457_v6, %v3368_v18  ;;  %v3470_v31 = vpop.f32.mrf.mxu0 }
 0x3c7   : > { %v3547_v56 = vadd.f32 %v3546_v34, %v3458_v54  ;;  %v2830_v4 = vpop.f32.mrf.mxu2 }
 0x3c9   : > { %v3601_v39 = vadd.f32 %v3547_v56, %v2816_v60  ;;  %v2829_v56 = vadd.f32 %v2828_v10, %v6690_v47 }
 0x3cb   : > { %v4443_v45 = vpack.c.bf16 %v3601_v39, %v3600_v32  ;;  %v3696_v53 = vadd.f32 %v3695_v2, %v3601_v39  ;;  %v3734_v3 = vmul.f32 %v3601_v39, %v3601_v39  ;;  %v3549_v44 = vpop.f32.mrf.mxu1  ;;  %v2826_v32 = vadd.f32 %v2825_v11, %v6679_v30 }
 0x3cc   : > { %v3371_v33 = vpop.f32.mrf.mxu3 }
 0x3cd   : > { %4487 = vst [vmem:[%s6791_s25 + $0x40] sm:$0xff] %v4443_v45   ;;  %v3765_v62 = vadd.f32 %v3764_v12, %v3734_v3  ;;  %v3461_v21 = vadd.f32 %v3460_v63, %v3371_v33 }
 0x3cf   : > { %v3550_v22 = vadd.f32 %v3549_v44, %v3461_v21  ;;  %v2833_v7 = vpop.f32.mrf.mxu2  ;;  %v7716_v21 = vld [vmem:[#allocation47_spill] sm:$0xff] }
 0x3d0   : > { %v2834_v52 = vadd.f32 %v2833_v7, %v6709_v51 }
 0x3d1   : > { %v3602_v17 = vadd.f32 %v3550_v22, %v2819_v41  ;;  %v2831_v41 = vadd.f32 %v2830_v4, %v7716_v21 }
 0x3d3   : > { %v3697_v38 = vadd.f32 %v3696_v53, %v3602_v17  ;;  %v3735_v6 = vmul.f32 %v3602_v17, %v3602_v17  ;;  %v3551_v58 = vpop.f32.mrf.mxu1 }
 0x3d4   : > { %v3373_v48 = vpop.f32.mrf.mxu3 }
 0x3d5   : > { %v3766_v57 = vadd.f32 %v3765_v62, %v3735_v6  ;;  %v3463_v55 = vadd.f32 %v3462_v1, %v3373_v48  ;;  %v3472_v1 = vpop.f32.mrf.mxu0 }
 0x3d7   : > { %v3552_v49 = vadd.f32 %v3551_v58, %v3463_v55  ;;  %v2835_v11 = vpop.f32.mrf.mxu2 }
 0x3d9   : > { %v3603_v43 = vadd.f32 %v3552_v49, %v2821_v8 }
 0x3db   : > { %v4448_v63 = vpack.c.bf16 %v3603_v43, %v3602_v17  ;;  %v3698_v40 = vadd.f32 %v3697_v38, %v3603_v43  ;;  %v3736_v9 = vmul.f32 %v3603_v43, %v3603_v43  ;;  %v3554_v36 = vpop.f32.mrf.mxu1 }
 0x3dc   : > { %v3376_v46 = vpop.f32.mrf.mxu3 }
 0x3dd   : > { %4488 = vst [vmem:[%s6791_s25 + $0x48] sm:$0xff] %v4448_v63   ;;  %v3767_v29 = vadd.f32 %v3766_v57, %v3736_v9  ;;  %v3466_v28 = vadd.f32 %v3465_v5, %v3376_v46  ;;  %v3475_v54 = vpop.f32.mrf.mxu0 }
 0x3df   : > { %v3555_v50 = vadd.f32 %v3554_v36, %v3466_v28  ;;  %v2838_v49 = vpop.f32.mrf.mxu2 }
 0x3e1   : > { %v3604_v23 = vadd.f32 %v3555_v50, %v2824_v37 }
 0x3e3   : > { %v3699_v19 = vadd.f32 %v3698_v40, %v3604_v23  ;;  %v3737_v61 = vmul.f32 %v3604_v23, %v3604_v23  ;;  %v3556_v42 = vpop.f32.mrf.mxu1 }
 0x3e4   : > { %v3378_v26 = vpop.f32.mrf.mxu3 }
 0x3e5   : > { %v3768_v27 = vadd.f32 %v3767_v29, %v3737_v61  ;;  %v3468_v35 = vadd.f32 %v3467_v16, %v3378_v26  ;;  %v3477_v16 = vpop.f32.mrf.mxu0  ;;  %v2836_v29 = vadd.f32 %v2835_v11, %v6715_v0 }
 0x3e7   : > { %v3557_v2 = vadd.f32 %v3556_v42, %v3468_v35  ;;  %v2840_v50 = vpop.f32.mrf.mxu2 }
 0x3e8   : > { %v2841_v7 = vadd.f32 %v2840_v50, %v6732_v24 }
 0x3e9   : > { %v3605_v14 = vadd.f32 %v3557_v2, %v2826_v32 }
 0x3eb   : > { %v4453_v18 = vpack.c.bf16 %v3605_v14, %v3604_v23  ;;  %v3700_v34 = vadd.f32 %v3699_v19, %v3605_v14  ;;  %v3738_v5 = vmul.f32 %v3605_v14, %v3605_v14  ;;  %v3559_v13 = vpop.f32.mrf.mxu1 }
 0x3ec   : > { %v3381_v12 = vpop.f32.mrf.mxu3 }
 0x3ed   : > { %4489 = vst [vmem:[%s6791_s25 + $0x50] sm:$0xff] %v4453_v18   ;;  %v3769_v25 = vadd.f32 %v3768_v27, %v3738_v5  ;;  %v3471_v60 = vadd.f32 %v3470_v31, %v3381_v12  ;;  %v3480_v10 = vpop.f32.mrf.mxu0  ;;  %v2839_v27 = vadd.f32 %v2838_v49, %v6728_v20 }
 0x3ef   : > { %v3560_v39 = vadd.f32 %v3559_v13, %v3471_v60 }
 0x3f1   : > { %v3606_v45 = vadd.f32 %v3560_v39, %v2829_v56 }
 0x3f3   : > { %v3701_v53 = vadd.f32 %v3700_v34, %v3606_v45  ;;  %v3739_v3 = vmul.f32 %v3606_v45, %v3606_v45  ;;  %v3561_v33 = vpop.f32.mrf.mxu1  ;;  %v2843_v34 = vpop.f32.mrf.mxu2 }
 0x3f4   : > { %v3383_v30 = vpop.f32.mrf.mxu3 }
 0x3f5   : > { %v3770_v44 = vadd.f32 %v3769_v25, %v3739_v3  ;;  %v3473_v62 = vadd.f32 %v3472_v1, %v3383_v30  ;;  %v3482_v23 = vpop.f32.mrf.mxu0  ;;  %v7717_v30 = vld [vmem:[#allocation80_spill] sm:$0xff] }
 0x3f7   : > { %v3562_v22 = vadd.f32 %v3561_v33, %v3473_v62  ;;  %v2844_v33 = vadd.f32 %v2843_v34, %v7717_v30 }
 0x3f9   : > { %v3607_v17 = vadd.f32 %v3562_v22, %v2831_v41 }
 0x3fb   : > { %v4458_v38 = vpack.c.bf16 %v3607_v17, %v3606_v45  ;;  %v3702_v6 = vadd.f32 %v3701_v53, %v3607_v17  ;;  %v3740_v48 = vmul.f32 %v3607_v17, %v3607_v17  ;;  %v3564_v47 = vpop.f32.mrf.mxu1 }
 0x3fc   : > { %v3386_v58 = vpop.f32.mrf.mxu3 }
 0x3fd   : > { %4490 = vst [vmem:[%s6791_s25 + $0x58] sm:$0xff] %v4458_v38   ;;  %v3771_v57 = vadd.f32 %v3770_v44, %v3740_v48  ;;  %v3476_v55 = vadd.f32 %v3475_v54, %v3386_v58  ;;  %v3485_v13 = vpop.f32.mrf.mxu0  ;;  %v2845_v44 = vpop.f32.mrf.mxu2 }
 0x3ff   : > { %v3565_v8 = vadd.f32 %v3564_v47, %v3476_v55 }
 0x401   : > { %v3608_v31 = vadd.f32 %v3565_v8, %v2834_v52 }
 0x403   : > { %v3703_v43 = vadd.f32 %v3702_v6, %v3608_v31  ;;  %v3741_v63 = vmul.f32 %v3608_v31, %v3608_v31  ;;  %v3566_v9 = vpop.f32.mrf.mxu1  ;;  %v7718_v6 = vld [vmem:[#allocation58_spill] sm:$0xff] }
 0x404   : > { %v3388_v40 = vpop.f32.mrf.mxu3  ;;  %v2846_v48 = vadd.f32 %v2845_v44, %v7718_v6 }
 0x405   : > { %v3772_v46 = vadd.f32 %v3771_v57, %v3741_v63  ;;  %v3478_v36 = vadd.f32 %v3477_v16, %v3388_v40  ;;  %v3487_v21 = vpop.f32.mrf.mxu0  ;;  %v2848_v47 = vpop.f32.mrf.mxu2 }
 0x406   : > { %v2849_v40 = vadd.f32 %v2848_v47, %v6767_v59 }
 0x407   : > { %v3567_v28 = vadd.f32 %v3566_v9, %v3478_v36 }
 0x409   : > { %v3609_v37 = vadd.f32 %v3567_v28, %v2836_v29 }
 0x40b   : > { %v4463_v4 = vpack.c.bf16 %v3609_v37, %v3608_v31  ;;  %v3704_v1 = vadd.f32 %v3703_v43, %v3609_v37  ;;  %v3742_v51 = vmul.f32 %v3609_v37, %v3609_v37  ;;  %v3569_v61 = vpop.f32.mrf.mxu1 }
 0x40c   : > { %v3391_v19 = vpop.f32.mrf.mxu3 }
 0x40d   : > { %4491 = vst [vmem:[%s6791_s25 + $0x60] sm:$0xff] %v4463_v4   ;;  %v3773_v26 = vadd.f32 %v3772_v46, %v3742_v51  ;;  %v3481_v42 = vadd.f32 %v3480_v10, %v3391_v19  ;;  %v3490_v55 = vpop.f32.mrf.mxu0  ;;  %v2850_v36 = vpop.f32.mrf.mxu2 }
 0x40e   : > { %v2851_v51 = vadd.f32 %v2850_v36, %v6774_v15 }
 0x40f   : > { %v3570_v35 = vadd.f32 %v3569_v61, %v3481_v42 }
 0x411   : > { %v3610_v32 = vadd.f32 %v3570_v35, %v2839_v27 }
 0x413   : > { %v3705_v2 = vadd.f32 %v3704_v1, %v3610_v32  ;;  %v3743_v14 = vmul.f32 %v3610_v32, %v3610_v32  ;;  %v3571_v18 = vpop.f32.mrf.mxu1 }
 0x414   : > { %v3393_v0 = vpop.f32.mrf.mxu3 }
 0x415   : > { %v3774_v5 = vadd.f32 %v3773_v26, %v3743_v14  ;;  %v3483_v12 = vadd.f32 %v3482_v23, %v3393_v0  ;;  %v3492_v37 = vpop.f32.mrf.mxu0 }
 0x417   : > { %v3572_v54 = vadd.f32 %v3571_v18, %v3483_v12 }
 0x419   : > { %v3611_v25 = vadd.f32 %v3572_v54, %v2841_v7 }
 0x41b   : > { %v4468_v60 = vpack.c.bf16 %v3611_v25, %v3610_v32  ;;  %v3706_v56 = vadd.f32 %v3705_v2, %v3611_v25  ;;  %v3744_v39 = vmul.f32 %v3611_v25, %v3611_v25  ;;  %v3574_v20 = vpop.f32.mrf.mxu1 }
 0x41c   : > { %v3396_v45 = vpop.f32.mrf.mxu3 }
 0x41d   : > { %4492 = vst [vmem:[%s6791_s25 + $0x68] sm:$0xff] %v4468_v60   ;;  %v3775_v53 = vadd.f32 %v3774_v5, %v3744_v39  ;;  %v3486_v3 = vadd.f32 %v3485_v13, %v3396_v45 }
 0x41f   : > { %v3575_v62 = vadd.f32 %v3574_v20, %v3486_v3 }
 0x421   : > { %v3612_v41 = vadd.f32 %v3575_v62, %v2844_v33 }
 0x423   : > { %v3707_v11 = vadd.f32 %v3706_v56, %v3612_v41  ;;  %v3745_v16 = vmul.f32 %v3612_v41, %v3612_v41  ;;  %v3576_v22 = vpop.f32.mrf.mxu1 }
 0x424   : > { %v3398_v24 = vpop.f32.mrf.mxu3 }
 0x425   : > { %v3776_v17 = vadd.f32 %v3775_v53, %v3745_v16  ;;  %v3488_v38 = vadd.f32 %v3487_v21, %v3398_v24 }
 0x427   : > { %v3577_v58 = vadd.f32 %v3576_v22, %v3488_v38 }
 0x429   : > { %v3613_v57 = vadd.f32 %v3577_v58, %v2846_v48 }
 0x42b   : > { %v4473_v52 = vpack.c.bf16 %v3613_v57, %v3612_v41  ;;  %v3708_v8 = vadd.f32 %v3707_v11, %v3613_v57  ;;  %v3746_v49 = vmul.f32 %v3613_v57, %v3613_v57  ;;  %v3579_v31 = vpop.f32.mrf.mxu1 }
 0x42c   : > { %v3401_v10 = vpop.f32.mrf.mxu3 }
 0x42d   : > { %4493 = vst [vmem:[%s6791_s25 + $0x70] sm:$0xff] %v4473_v52   ;;  %v3777_v43 = vadd.f32 %v3776_v17, %v3746_v49  ;;  %v3491_v63 = vadd.f32 %v3490_v55, %v3401_v10 }
 0x42f   : > { %v3580_v9 = vadd.f32 %v3579_v31, %v3491_v63 }
 0x431   : > { %v3614_v46 = vadd.f32 %v3580_v9, %v2849_v40 }
 0x433   : > { %v3709_v29 = vadd.f32 %v3708_v8, %v3614_v46  ;;  %v3747_v28 = vmul.f32 %v3614_v46, %v3614_v46  ;;  %v3581_v1 = vpop.f32.mrf.mxu1 }
 0x434   : > { %v3403_v50 = vpop.f32.mrf.mxu3 }
 0x435   : > { %v3778_v23 = vadd.f32 %v3777_v43, %v3747_v28  ;;  %v3493_v4 = vadd.f32 %v3492_v37, %v3403_v50 }
 0x437   : > { %v3582_v19 = vadd.f32 %v3581_v1, %v3493_v4 }
 0x439   : > { %v3615_v61 = vadd.f32 %v3582_v19, %v2851_v51 }
 0x43b   : > { %v4478_v26 = vpack.c.bf16 %v3615_v61, %v3614_v46  ;;  %v3710_v42 = vadd.f32 %v3709_v29, %v3615_v61  ;;  %v3748_v59 = vmul.f32 %v3615_v61, %v3615_v61 }
 0x43d   : > { %4494 = vst [vmem:[%s6791_s25 + $0x78] sm:$0xff] %v4478_v26   ;;  %v3711_v27 = vrot.slane %v3710_v42, 4  ;;  %v3779_v35 = vadd.f32 %v3778_v23, %v3748_v59 }
 0x43f   : > { %v3712_v32 = vadd.f32 %v3711_v27, %v3710_v42  ;;  %v3780_v2 = vrot.slane %v3779_v35, 4 }
 0x441   : > { %v3713_v14 = vrot.slane %v3712_v32, 2  ;;  %v3781_v0 = vadd.f32 %v3780_v2, %v3779_v35 }
 0x443   : > { %v3714_v18 = vadd.f32 %v3713_v14, %v3712_v32  ;;  %v3782_v34 = vrot.slane %v3781_v0, 2 }
 0x445   : > { %v3715_v5 = vrot.slane %v3714_v18, 1  ;;  %v3783_v12 = vadd.f32 %v3782_v34, %v3781_v0 }
 0x447   : > { %v3784_v15 = vrot.slane %v3783_v12, 1  ;;  %v3716_v13 = vadd.f32 %v3715_v5, %v3714_v18 }
 0x449   : > { %v3785_v7 = vadd.f32 %v3784_v15, %v3783_v12 }
 0x44b   : > { %v3787_v54 = vsel %vm3786_vm0, %v3716_v13, %v3785_v7 }
 0x44c   : > { %3788 = vst [vmem:[%s238_s27] sm:$0x3] %v3787_v54 }
 0x44d PF: > { %s16_s18 = sadd.s32 1, %s4530_s18  }
 0x44e   : > { %p13_p5 = scmp.ge.s32.totalorder %s16_s18, 4  }
 0x450   :  { %15 = sbr.rel (!%p13_p5) target bundleno = 1 (0x1), region = 78 }

</bundles_post_ra>
